<compile_context>
chip_gen: v5e
topology: v5e:2x2
jax: 0.10.0
libtpu: 0.0.40
codegen_flags: <defaults>
</compile_context>

<pallas_src>
import functools
import math

import jax
import jax.numpy as jnp
from jax.experimental import pallas as pl
from jax.experimental.pallas import tpu as pltpu


# ------------------------------- Pallas kernel -------------------------------

def _gibgcn_kernel(xcat_ref, adj_ref,
                   w1_ref, b1_ref,                  # cluster1 (concat fused into one K)
                   w2_ref, b2_ref,                  # cluster2
                   wf1_ref, bf1_ref,                # fc1
                   wf2_ref, bf2_ref,                # fc2
                   out_ref, pos_ref, gemb_ref, pen_ref, asg_ref,
                   *, bt, n_pad, p_pad, n_real, eps):
    f32 = jnp.float32
    bf16 = jnp.bfloat16

    x4 = xcat_ref[0]                                   # (Bt, Np, Dp) bf16
    d_pad = x4.shape[-1]
    x2 = x4.reshape(bt * n_pad, d_pad)                 # (Bt*Np, Dp)

    # --- assignment = softmax(cluster2(relu(cluster1([emb, mol]))), -1) -------
    # one batched K=Dp matmul for the whole block (concat fused in the wrapper)
    h1 = jnp.dot(x2, w1_ref[...], preferred_element_type=f32) + b1_ref[...]
    h1 = jnp.maximum(h1, 0.0)                          # (Bt*Np, Pp) f32

    logits = jnp.dot(h1.astype(bf16), w2_ref[...],
                     preferred_element_type=f32) + b2_ref[...]      # (Bt*Np, Cp)
    lane = jax.lax.broadcasted_iota(jnp.int32, logits.shape, 1)
    logits = jnp.where(lane < 2, logits, -1e30)        # mask padded class lanes
    zmax = jnp.max(logits, axis=-1, keepdims=True)
    ez = jnp.exp(logits - zmax)
    s = ez / jnp.sum(ez, axis=-1, keepdims=True)       # lanes >= 2 are exactly 0

    c_pad = s.shape[-1]
    s3 = s.reshape(bt, n_pad, c_pad)                   # (Bt, Np, Cp) f32
    asg_ref[0] = s3.astype(jnp.bfloat16)               # bf16 writeback (halved bytes)

    # --- pooling (mean over the N real nodes; padded x rows are zero) ---------
    inv_n = 1.0 / float(n_real)
    x_emb = x4[:, :, 0:p_pad].astype(f32)              # (Bt, Np, Pp) emb part of concat
    s0_3 = s3[:, :, 0:1]                               # (Bt, Np, 1) static lane slice
    pos = jnp.sum(s0_3 * x_emb, axis=1) * inv_n        # (Bt, Pp)
    gemb = jnp.sum(x_emb, axis=1) * inv_n              # (Bt, Pp)
    pos_ref[0] = pos
    gemb_ref[0] = gemb

    # --- per-sample S^T A S (2x2), L1 row-normalize, diag-vs-ones MSE ---------
    # static unroll over the Bt samples in the block; padded adjacency rows/cols
    # are zero and padded class lanes of s are exactly zero, so the 2x2 is exact.
    adj = adj_ref[...]                                 # (Np, Np) bf16
    pen_rows = []
    for b in range(bt):
        s_b = s3[b]                                    # (Np, Cp) f32
        a_s = jnp.dot(adj, s_b.astype(bf16), preferred_element_type=f32)  # (Np, Cp)
        s0_b = s_b[:, 0:1]                             # (Np, 1) static lane slices
        s1_b = s_b[:, 1:2]
        row0 = jnp.sum(s0_b * a_s, axis=0, keepdims=True)   # (1, Cp) = new_adj[0, :]
        row1 = jnp.sum(s1_b * a_s, axis=0, keepdims=True)   # (1, Cp) = new_adj[1, :]
        na00 = row0[:, 0:1]
        na01 = row0[:, 1:2]
        na10 = row1[:, 0:1]
        na11 = row1[:, 1:2]
        l0 = jnp.maximum(jnp.abs(na00) + jnp.abs(na01), eps)
        l1 = jnp.maximum(jnp.abs(na10) + jnp.abs(na11), eps)
        d0 = na00 / l0
        d1 = na11 / l1
        pen_b = 0.5 * ((d0 - 1.0) ** 2 + (d1 - 1.0) ** 2)    # (1, 1) MSE(diag, ones(2))
        pen_rows.append(jnp.broadcast_to(pen_b, (1, c_pad)))
    pen_ref[0] = jnp.concatenate(pen_rows, axis=0)           # (Bt, Cp), lane 0 is used

    # --- out = fc2(dropout(relu(fc1(pos)))) ; dropout = identity in eval ------
    # batched over the Bt samples of the block (no more M=1 matmuls)
    h = jnp.maximum(jnp.dot(pos.astype(bf16), wf1_ref[...],
                            preferred_element_type=f32) + bf1_ref[...], 0.0)
    out_ref[0] = jnp.dot(h.astype(bf16), wf2_ref[...],
                         preferred_element_type=f32) + bf2_ref[...]


# ------------------------------ wrapper / glue --------------------------------

def _round_up(v, m):
    return ((v + m - 1) // m) * m


def gibgcn_forward(params, emb, edge_index, batch, molecule_embedding, num_groups,
                   block_b=8):
    """Fused GIBGCN forward.  `batch` is assumed sorted & contiguous starting at 0
    (same assumption the reference while-loop grouping relies on)."""
    f32, bf16 = jnp.float32, jnp.bfloat16
    B, N, P = emb.shape
    H = molecule_embedding.shape[-1]

    Pp = _round_up(P, 128)          # protein_dim3 padded to 128 lanes
    Hp = _round_up(H, 128)          # hidden_dim padded to 128 lanes
    Np = _round_up(N, 16)           # nodes padded for bf16 sublane packing
    Dp = Pp + Hp                    # fused concat width (K of cluster1)
    Cp = 128                        # 2-way assignment padded to a full lane width

    # samples per grid step; keep the grid >= 2 blocks when B >= 2 (v7x: 2 TCs)
    Bt = max(1, min(block_b, -(-B // 2)))
    G = -(-B // Bt)
    Bp = G * Bt

    # ---- streamed input: emb || mol pre-concatenated, zero-padded, bf16 -------
    emb_p = jnp.pad(emb, ((0, Bp - B), (0, Np - N), (0, Pp - P)))
    mol_p = jnp.pad(molecule_embedding, ((0, Bp - B), (0, Np - N), (0, Hp - H)))
    xcat = jnp.concatenate([emb_p, mol_p], axis=-1).astype(bf16)
    xcat = xcat.reshape(G, Bt, Np, Dp)

    # ---- shared dense adjacency (to_dense_adj counts), VMEM-resident ----------
    src, dst = edge_index[0], edge_index[1]
    adj = jnp.zeros((N, N), f32).at[src, dst].add(1.0)
    adj_p = jnp.pad(adj, ((0, Np - N), (0, Np - N))).astype(bf16)

    # ---- zero-padded bf16 weights (biases stay f32 for the epilogue) ----------
    w1 = params["w1"]               # (P + H, P)  cluster1; rows laid out to match xcat
    w1_cat = jnp.concatenate(
        [jnp.pad(w1[:P], ((0, Pp - P), (0, Pp - P))),
         jnp.pad(w1[P:], ((0, Hp - H), (0, Pp - P)))], axis=0).astype(bf16)   # (Dp, Pp)
    b1 = jnp.pad(params["b1"], (0, Pp - P)).reshape(1, Pp)
    w2 = jnp.pad(params["w2"], ((0, Pp - P), (0, Cp - 2))).astype(bf16)
    b2 = jnp.pad(params["b2"], (0, Cp - 2)).reshape(1, Cp)
    wf1 = jnp.pad(params["wf1"], ((0, Pp - P), (0, Pp - P))).astype(bf16)
    bf1 = jnp.pad(params["bf1"], (0, Pp - P)).reshape(1, Pp)
    wf2 = jnp.pad(params["wf2"], ((0, Pp - P), (0, Hp - H))).astype(bf16)
    bf2 = jnp.pad(params["bf2"], (0, Hp - H)).reshape(1, Hp)

    kernel = functools.partial(_gibgcn_kernel, bt=Bt, n_pad=Np, p_pad=Pp,
                               n_real=N, eps=1e-5)
    operands = (xcat, adj_p, w1_cat, b1, w2, b2, wf1, bf1, wf2, bf2)

    out_shapes = (
        jax.ShapeDtypeStruct((G, Bt, Hp), f32),        # out
        jax.ShapeDtypeStruct((G, Bt, Pp), f32),        # all_subgraph_embedding (pos)
        jax.ShapeDtypeStruct((G, Bt, Pp), f32),        # all_graph_embedding
        jax.ShapeDtypeStruct((G, Bt, Cp), f32),        # per-sample penalty (lane 0)
        jax.ShapeDtypeStruct((G, Bt, Np, Cp), bf16),   # assignment (padded, bf16)
    )

    def build(single_buffer_residents):
        def per_block(shape):       # one block per grid step (Bt samples)
            return pl.BlockSpec(shape, lambda g, s=shape: (g,) + (0,) * (len(s) - 1))

        def resident(shape):        # constant block index -> stays VMEM-resident
            kw = {}
            if single_buffer_residents:
                kw["pipeline_mode"] = pl.Buffered(1)   # never changes: single buffer
            return pl.BlockSpec(shape, lambda g, s=shape: (0,) * len(s), **kw)

        grid_spec = pltpu.PrefetchScalarGridSpec(
            num_scalar_prefetch=0,
            grid=(G,),
            in_specs=[
                per_block((1, Bt, Np, Dp)),                       # emb || mol (streamed)
                resident((Np, Np)),                               # dense adjacency
                resident((Dp, Pp)), resident((1, Pp)),            # cluster1
                resident((Pp, Cp)), resident((1, Cp)),            # cluster2
                resident((Pp, Pp)), resident((1, Pp)),            # fc1
                resident((Pp, Hp)), resident((1, Hp)),            # fc2
            ],
            out_specs=[
                per_block((1, Bt, Hp)),
                per_block((1, Bt, Pp)),
                per_block((1, Bt, Pp)),
                per_block((1, Bt, Cp)),
                per_block((1, Bt, Np, Cp)),
            ],
        )
        return pl.pallas_call(
            kernel,
            out_shape=out_shapes,
            grid_spec=grid_spec,
            compiler_params=pltpu.CompilerParams(
                dimension_semantics=("parallel",),     # sample blocks shard across TCs
                vmem_limit_bytes=32 * 1024 * 1024,
            ),
        )

    try:
        out_p, pos_p, gemb_p, pen_p, asg_p = build(True)(*operands)
    except Exception:
        # pipeline_mode=pl.Buffered(1) not supported by this JAX build: default buffering
        out_p, pos_p, gemb_p, pen_p, asg_p = build(False)(*operands)

    # ---- slice the lane / batch padding back off -------------------------------
    out = out_p.reshape(Bp, Hp)[:B, :H]
    all_subgraph_embedding = pos_p.reshape(Bp, Pp)[:B, :P]
    all_graph_embedding = gemb_p.reshape(Bp, Pp)[:B, :P]
    pen = pen_p.reshape(Bp, Cp)[:B, 0]
    assignment = asg_p.reshape(Bp, Np, Cp)[:B, :N, :2].astype(f32)

    # grouped penalty mean: mean over groups of (mean over samples in the group)
    g_sum = jnp.zeros((num_groups,), f32).at[batch].add(pen)
    g_cnt = jnp.zeros((num_groups,), f32).at[batch].add(1.0)
    all_pos_penalty = jnp.mean(g_sum / jnp.maximum(g_cnt, 1.0))

    return out, all_subgraph_embedding, all_graph_embedding, all_pos_penalty, assignment


# ------------------------------ params & reference -----------------------------

def init_params(key, protein_dim3, hidden_dim):
    """torch.nn.Linear-style init (U(-1/sqrt(fan_in), 1/sqrt(fan_in))). Deterministic."""
    def lin(k, fan_in, fan_out):
        kw, kb = jax.random.split(k)
        bound = 1.0 / math.sqrt(fan_in)
        w = jax.random.uniform(kw, (fan_in, fan_out), jnp.float32, -bound, bound)
        b = jax.random.uniform(kb, (fan_out,), jnp.float32, -bound, bound)
        return w, b

    k1, k2, k3, k4 = jax.random.split(key, 4)
    w1, b1 = lin(k1, protein_dim3 + hidden_dim, protein_dim3)   # cluster1
    w2, b2 = lin(k2, protein_dim3, 2)                           # cluster2
    wf1, bf1 = lin(k3, protein_dim3, protein_dim3)              # fc1
    wf2, bf2 = lin(k4, protein_dim3, hidden_dim)                # fc2
    return dict(w1=w1, b1=b1, w2=w2, b2=b2, wf1=wf1, bf1=bf1, wf2=wf2, bf2=bf2)


def reference_forward(params, emb, edge_index, batch, mol, num_groups):
    """Pure-JAX f32 reference of GIBGCN.forward (eval mode)."""
    B, N, P = emb.shape
    z = jnp.concatenate([emb, mol], axis=-1)
    h1 = jax.nn.relu(z @ params["w1"] + params["b1"])
    assignment = jax.nn.softmax(h1 @ params["w2"] + params["b2"], axis=-1)     # (B,N,2)
    adj = jnp.zeros((N, N), jnp.float32).at[edge_index[0], edge_index[1]].add(1.0)
    pos = jnp.mean(assignment[..., 0:1] * emb, axis=1)                         # (B,P)
    gemb = jnp.mean(emb, axis=1)                                               # (B,P)
    na = jnp.einsum("bnc,nm,bmd->bcd", assignment, adj, assignment)            # (B,2,2)
    l1 = jnp.maximum(jnp.sum(jnp.abs(na), axis=2, keepdims=True), 1e-5)
    nrm = na / l1
    diag = jnp.stack([nrm[:, 0, 0], nrm[:, 1, 1]], axis=-1)                    # (B,2)
    pen = jnp.mean((diag - 1.0) ** 2, axis=-1)                                 # (B,)
    g_sum = jnp.zeros((num_groups,), jnp.float32).at[batch].add(pen)
    g_cnt = jnp.zeros((num_groups,), jnp.float32).at[batch].add(1.0)
    all_pos_penalty = jnp.mean(g_sum / jnp.maximum(g_cnt, 1.0))
    h = jax.nn.relu(pos @ params["wf1"] + params["bf1"])
    out = h @ params["wf2"] + params["bf2"]
    return out, pos, gemb, all_pos_penalty, assignment


# ------------------------------------ main -------------------------------------

if __name__ == "__main__":
    key = jax.random.PRNGKey(0)
    ks = jax.random.split(key, 5)

    B, N = 4, 16          # samples, nodes (residues) per sample
    P = 32                # protein_dim3
    H = 64                # hidden_dim
    E = 48                # directed edges in the shared residue graph
    NUM_GROUPS = 2
    batch = jnp.array([0, 0, 1, 1], jnp.int32)   # sorted, contiguous (as the reference assumes)

    emb = jax.random.normal(ks[0], (B, N, P), jnp.float32)
    molecule_embedding = jax.random.normal(ks[1], (B, N, H), jnp.float32)
    src = jax.random.randint(ks[2], (E,), 0, N, dtype=jnp.int32)
    dst = jax.random.randint(ks[3], (E,), 0, N, dtype=jnp.int32)
    edge_index = jnp.stack([src, dst])

    params = init_params(ks[4], P, H)

    results = gibgcn_forward(params, emb, edge_index, batch, molecule_embedding, NUM_GROUPS)
    for r in results:
        jax.block_until_ready(r)
    out, sub_emb, graph_emb, pos_penalty, assignment = results

    assert out.shape == (B, H)
    assert sub_emb.shape == (B, P)
    assert graph_emb.shape == (B, P)
    assert assignment.shape == (B, N, 2)
    for r in results:
        assert jnp.all(jnp.isfinite(jnp.asarray(r)))

    # loose check against the pure-JAX f32 reference (bf16 matmul operands -> small drift)
    ref = reference_forward(params, emb, edge_index, batch, molecule_embedding, NUM_GROUPS)
    for got, want in zip(results, ref):
        assert jnp.allclose(jnp.asarray(got), jnp.asarray(want), rtol=1e-1, atol=1e-1)

    print("KERNEL_OK")
</pallas_src>

<mosaic_0001>
module attributes {stable_mosaic.version = 11 : i64} {
  func.func @_gibgcn_kernel(%arg0: i32, %arg1: memref<1x2x16x256xbf16, #tpu.memory_space<vmem>>, %arg2: memref<16x16xbf16, #tpu.memory_space<vmem>>, %arg3: memref<256x128xbf16, #tpu.memory_space<vmem>>, %arg4: memref<1x128xf32, #tpu.memory_space<vmem>>, %arg5: memref<128x128xbf16, #tpu.memory_space<vmem>>, %arg6: memref<1x128xf32, #tpu.memory_space<vmem>>, %arg7: memref<128x128xbf16, #tpu.memory_space<vmem>>, %arg8: memref<1x128xf32, #tpu.memory_space<vmem>>, %arg9: memref<128x128xbf16, #tpu.memory_space<vmem>>, %arg10: memref<1x128xf32, #tpu.memory_space<vmem>>, %arg11: memref<1x2x128xf32, #tpu.memory_space<vmem>>, %arg12: memref<1x2x128xf32, #tpu.memory_space<vmem>>, %arg13: memref<1x2x128xf32, #tpu.memory_space<vmem>>, %arg14: memref<1x2x128xf32, #tpu.memory_space<vmem>>, %arg15: memref<1x2x16x128xbf16, #tpu.memory_space<vmem>>) attributes {dimension_semantics = [#tpu.dimension_semantics<parallel>], iteration_bounds = array<i64: 2>, scalar_prefetch = 0 : i64, scratch_operands = 0 : i64, tpu.core_type = #tpu.core_type<tc>, window_params = [{transform_indices = @transform_0, window_bounds = array<i64: 1, 2, 16, 256>}, {pipeline_mode = #tpu.pipeline_mode<synchronous>, transform_indices = @transform_1, window_bounds = array<i64: 16, 16>}, {pipeline_mode = #tpu.pipeline_mode<synchronous>, transform_indices = @transform_2, window_bounds = array<i64: 256, 128>}, {pipeline_mode = #tpu.pipeline_mode<synchronous>, transform_indices = @transform_3, window_bounds = array<i64: 1, 128>}, {pipeline_mode = #tpu.pipeline_mode<synchronous>, transform_indices = @transform_4, window_bounds = array<i64: 128, 128>}, {pipeline_mode = #tpu.pipeline_mode<synchronous>, transform_indices = @transform_5, window_bounds = array<i64: 1, 128>}, {pipeline_mode = #tpu.pipeline_mode<synchronous>, transform_indices = @transform_6, window_bounds = array<i64: 128, 128>}, {pipeline_mode = #tpu.pipeline_mode<synchronous>, transform_indices = @transform_7, window_bounds = array<i64: 1, 128>}, {pipeline_mode = #tpu.pipeline_mode<synchronous>, transform_indices = @transform_8, window_bounds = array<i64: 128, 128>}, {pipeline_mode = #tpu.pipeline_mode<synchronous>, transform_indices = @transform_9, window_bounds = array<i64: 1, 128>}, {transform_indices = @transform_10, window_bounds = array<i64: 1, 2, 128>}, {transform_indices = @transform_11, window_bounds = array<i64: 1, 2, 128>}, {transform_indices = @transform_12, window_bounds = array<i64: 1, 2, 128>}, {transform_indices = @transform_13, window_bounds = array<i64: 1, 2, 128>}, {transform_indices = @transform_14, window_bounds = array<i64: 1, 2, 16, 128>}]} {
    %c0 = arith.constant 0 : index
    %c0_0 = arith.constant 0 : index
    %c0_1 = arith.constant 0 : index
    %c0_2 = arith.constant 0 : index
    %0 = vector.load %arg1[%c0, %c0_0, %c0_1, %c0_2] : memref<1x2x16x256xbf16, #tpu.memory_space<vmem>>, vector<1x2x16x256xbf16>
    %1 = vector.shape_cast %0 : vector<1x2x16x256xbf16> to vector<2x16x256xbf16>
    %2 = vector.shape_cast %1 : vector<2x16x256xbf16> to vector<32x256xbf16>
    %c0_3 = arith.constant 0 : index
    %c0_4 = arith.constant 0 : index
    %3 = vector.load %arg3[%c0_3, %c0_4] : memref<256x128xbf16, #tpu.memory_space<vmem>>, vector<256x128xbf16>
    %cst = arith.constant dense<0.000000e+00> : vector<32x128xf32>
    %4 = tpu.matmul %2, %3, %cst {dimension_numbers = #tpu.dot_dimension_numbers<[1], [0], [0], [1], [0, 0, 1, 1], [], []>} : vector<32x256xbf16>, vector<256x128xbf16>, vector<32x128xf32> -> vector<32x128xf32>
    %c0_5 = arith.constant 0 : index
    %c0_6 = arith.constant 0 : index
    %5 = vector.load %arg4[%c0_5, %c0_6] : memref<1x128xf32, #tpu.memory_space<vmem>>, vector<1x128xf32>
    %6 = vector.broadcast %5 : vector<1x128xf32> to vector<32x128xf32>
    %7 = arith.addf %4, %6 : vector<32x128xf32>
    %cst_7 = arith.constant 0.000000e+00 : f32
    %8 = vector.broadcast %cst_7 : f32 to vector<32x128xf32>
    %9 = arith.maximumf %7, %8 : vector<32x128xf32>
    %10 = arith.truncf %9 : vector<32x128xf32> to vector<32x128xbf16>
    %c0_8 = arith.constant 0 : index
    %c0_9 = arith.constant 0 : index
    %11 = vector.load %arg5[%c0_8, %c0_9] : memref<128x128xbf16, #tpu.memory_space<vmem>>, vector<128x128xbf16>
    %cst_10 = arith.constant dense<0.000000e+00> : vector<32x128xf32>
    %12 = tpu.matmul %10, %11, %cst_10 {dimension_numbers = #tpu.dot_dimension_numbers<[1], [0], [0], [1], [0, 0, 1, 1], [], []>} : vector<32x128xbf16>, vector<128x128xbf16>, vector<32x128xf32> -> vector<32x128xf32>
    %c0_11 = arith.constant 0 : index
    %c0_12 = arith.constant 0 : index
    %13 = vector.load %arg6[%c0_11, %c0_12] : memref<1x128xf32, #tpu.memory_space<vmem>>, vector<1x128xf32>
    %14 = vector.broadcast %13 : vector<1x128xf32> to vector<32x128xf32>
    %15 = arith.addf %12, %14 : vector<32x128xf32>
    %16 = tpu.iota {dimensions = array<i32: 1>} : vector<32x128xi32>
    %c2_i32 = arith.constant 2 : i32
    %17 = vector.broadcast %c2_i32 : i32 to vector<32x128xi32>
    %18 = arith.cmpi slt, %16, %17 : vector<32x128xi32>
    %cst_13 = arith.constant -1.000000e+30 : f32
    %19 = vector.broadcast %cst_13 : f32 to vector<32x128xf32>
    %20 = arith.select %18, %15, %19 : vector<32x128xi1>, vector<32x128xf32>
    %cst_14 = arith.constant dense<0xFF800000> : vector<32xf32>
    %21 = vector.multi_reduction <maximumf>, %20, %cst_14 [1] : vector<32x128xf32> to vector<32xf32>
    %22 = vector.shape_cast %21 : vector<32xf32> to vector<32x1xf32>
    %23 = vector.broadcast %22 : vector<32x1xf32> to vector<32x128xf32>
    %24 = arith.subf %20, %23 : vector<32x128xf32>
    %25 = math.exp %24 : vector<32x128xf32>
    %cst_15 = arith.constant dense<0.000000e+00> : vector<32xf32>
    %26 = vector.multi_reduction <add>, %25, %cst_15 [1] : vector<32x128xf32> to vector<32xf32>
    %27 = vector.shape_cast %26 : vector<32xf32> to vector<32x1xf32>
    %28 = vector.broadcast %27 : vector<32x1xf32> to vector<32x128xf32>
    %29 = arith.divf %25, %28 : vector<32x128xf32>
    %30 = vector.shape_cast %29 : vector<32x128xf32> to vector<2x16x128xf32>
    %31 = arith.truncf %30 : vector<2x16x128xf32> to vector<2x16x128xbf16>
    %c0_16 = arith.constant 0 : index
    %c0_17 = arith.constant 0 : index
    %c0_18 = arith.constant 0 : index
    %c0_19 = arith.constant 0 : index
    %32 = vector.load %arg15[%c0_16, %c0_17, %c0_18, %c0_19] : memref<1x2x16x128xbf16, #tpu.memory_space<vmem>>, vector<1x2x16x128xbf16>
    %33 = vector.shape_cast %32 : vector<1x2x16x128xbf16> to vector<2x16x128xbf16>
    %34 = vector.shape_cast %31 : vector<2x16x128xbf16> to vector<1x2x16x128xbf16>
    tpu.vector_store %arg15[%c0_16, %c0_17, %c0_18, %c0_19], %34 {strides = array<i32>} : memref<1x2x16x128xbf16, #tpu.memory_space<vmem>>, vector<1x2x16x128xbf16>,
    %35 = vector.extract_strided_slice %1 {offsets = [0, 0, 0], sizes = [2, 16, 128], strides = [1, 1, 1]} : vector<2x16x256xbf16> to vector<2x16x128xbf16>
    %36 = arith.extf %35 : vector<2x16x128xbf16> to vector<2x16x128xf32>
    %37 = vector.extract_strided_slice %30 {offsets = [0, 0, 0], sizes = [2, 16, 1], strides = [1, 1, 1]} : vector<2x16x128xf32> to vector<2x16x1xf32>
    %38 = vector.broadcast %37 : vector<2x16x1xf32> to vector<2x16x128xf32>
    %39 = arith.mulf %38, %36 : vector<2x16x128xf32>
    %cst_20 = arith.constant dense<0.000000e+00> : vector<2x128xf32>
    %40 = vector.multi_reduction <add>, %39, %cst_20 [1] : vector<2x16x128xf32> to vector<2x128xf32>
    %cst_21 = arith.constant 6.250000e-02 : f32
    %41 = vector.broadcast %cst_21 : f32 to vector<2x128xf32>
    %42 = arith.mulf %40, %41 : vector<2x128xf32>
    %cst_22 = arith.constant dense<0.000000e+00> : vector<2x128xf32>
    %43 = vector.multi_reduction <add>, %36, %cst_22 [1] : vector<2x16x128xf32> to vector<2x128xf32>
    %cst_23 = arith.constant 6.250000e-02 : f32
    %44 = vector.broadcast %cst_23 : f32 to vector<2x128xf32>
    %45 = arith.mulf %43, %44 : vector<2x128xf32>
    %c0_24 = arith.constant 0 : index
    %c0_25 = arith.constant 0 : index
    %c0_26 = arith.constant 0 : index
    %46 = vector.load %arg12[%c0_24, %c0_25, %c0_26] : memref<1x2x128xf32, #tpu.memory_space<vmem>>, vector<1x2x128xf32>
    %47 = vector.shape_cast %46 : vector<1x2x128xf32> to vector<2x128xf32>
    %48 = vector.shape_cast %42 : vector<2x128xf32> to vector<1x2x128xf32>
    tpu.vector_store %arg12[%c0_24, %c0_25, %c0_26], %48 {strides = array<i32>} : memref<1x2x128xf32, #tpu.memory_space<vmem>>, vector<1x2x128xf32>,
    %c0_27 = arith.constant 0 : index
    %c0_28 = arith.constant 0 : index
    %c0_29 = arith.constant 0 : index
    %49 = vector.load %arg13[%c0_27, %c0_28, %c0_29] : memref<1x2x128xf32, #tpu.memory_space<vmem>>, vector<1x2x128xf32>
    %50 = vector.shape_cast %49 : vector<1x2x128xf32> to vector<2x128xf32>
    %51 = vector.shape_cast %45 : vector<2x128xf32> to vector<1x2x128xf32>
    tpu.vector_store %arg13[%c0_27, %c0_28, %c0_29], %51 {strides = array<i32>} : memref<1x2x128xf32, #tpu.memory_space<vmem>>, vector<1x2x128xf32>,
    %c0_30 = arith.constant 0 : index
    %c0_31 = arith.constant 0 : index
    %52 = vector.load %arg2[%c0_30, %c0_31] : memref<16x16xbf16, #tpu.memory_space<vmem>>, vector<16x16xbf16>
    %53 = vector.extract_strided_slice %30 {offsets = [0, 0, 0], sizes = [1, 16, 128], strides = [1, 1, 1]} : vector<2x16x128xf32> to vector<1x16x128xf32>
    %54 = vector.shape_cast %53 : vector<1x16x128xf32> to vector<16x128xf32>
    %55 = arith.truncf %54 : vector<16x128xf32> to vector<16x128xbf16>
    %cst_32 = arith.constant dense<0.000000e+00> : vector<16x128xf32>
    %56 = tpu.matmul %52, %55, %cst_32 {dimension_numbers = #tpu.dot_dimension_numbers<[1], [0], [0], [1], [0, 0, 1, 1], [], []>} : vector<16x16xbf16>, vector<16x128xbf16>, vector<16x128xf32> -> vector<16x128xf32>
    %57 = vector.extract_strided_slice %54 {offsets = [0, 0], sizes = [16, 1], strides = [1, 1]} : vector<16x128xf32> to vector<16x1xf32>
    %58 = vector.extract_strided_slice %54 {offsets = [0, 1], sizes = [16, 1], strides = [1, 1]} : vector<16x128xf32> to vector<16x1xf32>
    %59 = vector.broadcast %57 : vector<16x1xf32> to vector<16x128xf32>
    %60 = arith.mulf %59, %56 : vector<16x128xf32>
    %cst_33 = arith.constant dense<0.000000e+00> : vector<128xf32>
    %61 = vector.multi_reduction <add>, %60, %cst_33 [0] : vector<16x128xf32> to vector<128xf32>
    %62 = vector.shape_cast %61 : vector<128xf32> to vector<1x128xf32>
    %63 = vector.broadcast %58 : vector<16x1xf32> to vector<16x128xf32>
    %64 = arith.mulf %63, %56 : vector<16x128xf32>
    %cst_34 = arith.constant dense<0.000000e+00> : vector<128xf32>
    %65 = vector.multi_reduction <add>, %64, %cst_34 [0] : vector<16x128xf32> to vector<128xf32>
    %66 = vector.shape_cast %65 : vector<128xf32> to vector<1x128xf32>
    %67 = vector.extract_strided_slice %62 {offsets = [0, 0], sizes = [1, 1], strides = [1, 1]} : vector<1x128xf32> to vector<1x1xf32>
    %68 = vector.extract_strided_slice %62 {offsets = [0, 1], sizes = [1, 1], strides = [1, 1]} : vector<1x128xf32> to vector<1x1xf32>
    %69 = vector.extract_strided_slice %66 {offsets = [0, 0], sizes = [1, 1], strides = [1, 1]} : vector<1x128xf32> to vector<1x1xf32>
    %70 = vector.extract_strided_slice %66 {offsets = [0, 1], sizes = [1, 1], strides = [1, 1]} : vector<1x128xf32> to vector<1x1xf32>
    %71 = math.absf %67 : vector<1x1xf32>
    %72 = math.absf %68 : vector<1x1xf32>
    %73 = arith.addf %71, %72 : vector<1x1xf32>
    %cst_35 = arith.constant 9.99999974E-6 : f32
    %74 = vector.broadcast %cst_35 : f32 to vector<1x1xf32>
    %75 = arith.maximumf %73, %74 : vector<1x1xf32>
    %76 = math.absf %69 : vector<1x1xf32>
    %77 = math.absf %70 : vector<1x1xf32>
    %78 = arith.addf %76, %77 : vector<1x1xf32>
    %cst_36 = arith.constant 9.99999974E-6 : f32
    %79 = vector.broadcast %cst_36 : f32 to vector<1x1xf32>
    %80 = arith.maximumf %78, %79 : vector<1x1xf32>
    %81 = arith.divf %67, %75 : vector<1x1xf32>
    %82 = arith.divf %70, %80 : vector<1x1xf32>
    %cst_37 = arith.constant 1.000000e+00 : f32
    %83 = vector.broadcast %cst_37 : f32 to vector<1x1xf32>
    %84 = arith.subf %81, %83 : vector<1x1xf32>
    %85 = arith.mulf %84, %84 : vector<1x1xf32>
    %cst_38 = arith.constant 1.000000e+00 : f32
    %86 = vector.broadcast %cst_38 : f32 to vector<1x1xf32>
    %87 = arith.subf %82, %86 : vector<1x1xf32>
    %88 = arith.mulf %87, %87 : vector<1x1xf32>
    %89 = arith.addf %85, %88 : vector<1x1xf32>
    %cst_39 = arith.constant 5.000000e-01 : f32
    %90 = vector.broadcast %cst_39 : f32 to vector<1x1xf32>
    %91 = arith.mulf %90, %89 : vector<1x1xf32>
    %92 = vector.shape_cast %91 : vector<1x1xf32> to vector<1x1xf32>
    %93 = vector.broadcast %92 : vector<1x1xf32> to vector<1x128xf32>
    %94 = vector.extract_strided_slice %30 {offsets = [1, 0, 0], sizes = [1, 16, 128], strides = [1, 1, 1]} : vector<2x16x128xf32> to vector<1x16x128xf32>
    %95 = vector.shape_cast %94 : vector<1x16x128xf32> to vector<16x128xf32>
    %96 = arith.truncf %95 : vector<16x128xf32> to vector<16x128xbf16>
    %cst_40 = arith.constant dense<0.000000e+00> : vector<16x128xf32>
    %97 = tpu.matmul %52, %96, %cst_40 {dimension_numbers = #tpu.dot_dimension_numbers<[1], [0], [0], [1], [0, 0, 1, 1], [], []>} : vector<16x16xbf16>, vector<16x128xbf16>, vector<16x128xf32> -> vector<16x128xf32>
    %98 = vector.extract_strided_slice %95 {offsets = [0, 0], sizes = [16, 1], strides = [1, 1]} : vector<16x128xf32> to vector<16x1xf32>
    %99 = vector.extract_strided_slice %95 {offsets = [0, 1], sizes = [16, 1], strides = [1, 1]} : vector<16x128xf32> to vector<16x1xf32>
    %100 = vector.broadcast %98 : vector<16x1xf32> to vector<16x128xf32>
    %101 = arith.mulf %100, %97 : vector<16x128xf32>
    %cst_41 = arith.constant dense<0.000000e+00> : vector<128xf32>
    %102 = vector.multi_reduction <add>, %101, %cst_41 [0] : vector<16x128xf32> to vector<128xf32>
    %103 = vector.shape_cast %102 : vector<128xf32> to vector<1x128xf32>
    %104 = vector.broadcast %99 : vector<16x1xf32> to vector<16x128xf32>
    %105 = arith.mulf %104, %97 : vector<16x128xf32>
    %cst_42 = arith.constant dense<0.000000e+00> : vector<128xf32>
    %106 = vector.multi_reduction <add>, %105, %cst_42 [0] : vector<16x128xf32> to vector<128xf32>
    %107 = vector.shape_cast %106 : vector<128xf32> to vector<1x128xf32>
    %108 = vector.extract_strided_slice %103 {offsets = [0, 0], sizes = [1, 1], strides = [1, 1]} : vector<1x128xf32> to vector<1x1xf32>
    %109 = vector.extract_strided_slice %103 {offsets = [0, 1], sizes = [1, 1], strides = [1, 1]} : vector<1x128xf32> to vector<1x1xf32>
    %110 = vector.extract_strided_slice %107 {offsets = [0, 0], sizes = [1, 1], strides = [1, 1]} : vector<1x128xf32> to vector<1x1xf32>
    %111 = vector.extract_strided_slice %107 {offsets = [0, 1], sizes = [1, 1], strides = [1, 1]} : vector<1x128xf32> to vector<1x1xf32>
    %112 = math.absf %108 : vector<1x1xf32>
    %113 = math.absf %109 : vector<1x1xf32>
    %114 = arith.addf %112, %113 : vector<1x1xf32>
    %cst_43 = arith.constant 9.99999974E-6 : f32
    %115 = vector.broadcast %cst_43 : f32 to vector<1x1xf32>
    %116 = arith.maximumf %114, %115 : vector<1x1xf32>
    %117 = math.absf %110 : vector<1x1xf32>
    %118 = math.absf %111 : vector<1x1xf32>
    %119 = arith.addf %117, %118 : vector<1x1xf32>
    %cst_44 = arith.constant 9.99999974E-6 : f32
    %120 = vector.broadcast %cst_44 : f32 to vector<1x1xf32>
    %121 = arith.maximumf %119, %120 : vector<1x1xf32>
    %122 = arith.divf %108, %116 : vector<1x1xf32>
    %123 = arith.divf %111, %121 : vector<1x1xf32>
    %cst_45 = arith.constant 1.000000e+00 : f32
    %124 = vector.broadcast %cst_45 : f32 to vector<1x1xf32>
    %125 = arith.subf %122, %124 : vector<1x1xf32>
    %126 = arith.mulf %125, %125 : vector<1x1xf32>
    %cst_46 = arith.constant 1.000000e+00 : f32
    %127 = vector.broadcast %cst_46 : f32 to vector<1x1xf32>
    %128 = arith.subf %123, %127 : vector<1x1xf32>
    %129 = arith.mulf %128, %128 : vector<1x1xf32>
    %130 = arith.addf %126, %129 : vector<1x1xf32>
    %cst_47 = arith.constant 5.000000e-01 : f32
    %131 = vector.broadcast %cst_47 : f32 to vector<1x1xf32>
    %132 = arith.mulf %131, %130 : vector<1x1xf32>
    %133 = vector.shape_cast %132 : vector<1x1xf32> to vector<1x1xf32>
    %134 = vector.broadcast %133 : vector<1x1xf32> to vector<1x128xf32>
    %135 = tpu.concatenate %93, %134 in 0 : vector<1x128xf32>, vector<1x128xf32> -> vector<2x128xf32>
    %c0_48 = arith.constant 0 : index
    %c0_49 = arith.constant 0 : index
    %c0_50 = arith.constant 0 : index
    %136 = vector.load %arg14[%c0_48, %c0_49, %c0_50] : memref<1x2x128xf32, #tpu.memory_space<vmem>>, vector<1x2x128xf32>
    %137 = vector.shape_cast %136 : vector<1x2x128xf32> to vector<2x128xf32>
    %138 = vector.shape_cast %135 : vector<2x128xf32> to vector<1x2x128xf32>
    tpu.vector_store %arg14[%c0_48, %c0_49, %c0_50], %138 {strides = array<i32>} : memref<1x2x128xf32, #tpu.memory_space<vmem>>, vector<1x2x128xf32>,
    %139 = arith.truncf %42 : vector<2x128xf32> to vector<2x128xbf16>
    %c0_51 = arith.constant 0 : index
    %c0_52 = arith.constant 0 : index
    %140 = vector.load %arg7[%c0_51, %c0_52] : memref<128x128xbf16, #tpu.memory_space<vmem>>, vector<128x128xbf16>
    %cst_53 = arith.constant dense<0.000000e+00> : vector<2x128xf32>
    %141 = tpu.matmul %139, %140, %cst_53 {dimension_numbers = #tpu.dot_dimension_numbers<[1], [0], [0], [1], [0, 0, 1, 1], [], []>} : vector<2x128xbf16>, vector<128x128xbf16>, vector<2x128xf32> -> vector<2x128xf32>
    %c0_54 = arith.constant 0 : index
    %c0_55 = arith.constant 0 : index
    %142 = vector.load %arg8[%c0_54, %c0_55] : memref<1x128xf32, #tpu.memory_space<vmem>>, vector<1x128xf32>
    %143 = vector.broadcast %142 : vector<1x128xf32> to vector<2x128xf32>
    %144 = arith.addf %141, %143 : vector<2x128xf32>
    %cst_56 = arith.constant 0.000000e+00 : f32
    %145 = vector.broadcast %cst_56 : f32 to vector<2x128xf32>
    %146 = arith.maximumf %144, %145 : vector<2x128xf32>
    %147 = arith.truncf %146 : vector<2x128xf32> to vector<2x128xbf16>
    %c0_57 = arith.constant 0 : index
    %c0_58 = arith.constant 0 : index
    %148 = vector.load %arg9[%c0_57, %c0_58] : memref<128x128xbf16, #tpu.memory_space<vmem>>, vector<128x128xbf16>
    %cst_59 = arith.constant dense<0.000000e+00> : vector<2x128xf32>
    %149 = tpu.matmul %147, %148, %cst_59 {dimension_numbers = #tpu.dot_dimension_numbers<[1], [0], [0], [1], [0, 0, 1, 1], [], []>} : vector<2x128xbf16>, vector<128x128xbf16>, vector<2x128xf32> -> vector<2x128xf32>
    %c0_60 = arith.constant 0 : index
    %c0_61 = arith.constant 0 : index
    %150 = vector.load %arg10[%c0_60, %c0_61] : memref<1x128xf32, #tpu.memory_space<vmem>>, vector<1x128xf32>
    %151 = vector.broadcast %150 : vector<1x128xf32> to vector<2x128xf32>
    %152 = arith.addf %149, %151 : vector<2x128xf32>
    %c0_62 = arith.constant 0 : index
    %c0_63 = arith.constant 0 : index
    %c0_64 = arith.constant 0 : index
    %153 = vector.load %arg11[%c0_62, %c0_63, %c0_64] : memref<1x2x128xf32, #tpu.memory_space<vmem>>, vector<1x2x128xf32>
    %154 = vector.shape_cast %153 : vector<1x2x128xf32> to vector<2x128xf32>
    %155 = vector.shape_cast %152 : vector<2x128xf32> to vector<1x2x128xf32>
    tpu.vector_store %arg11[%c0_62, %c0_63, %c0_64], %155 {strides = array<i32>} : memref<1x2x128xf32, #tpu.memory_space<vmem>>, vector<1x2x128xf32>,
    return
  }
  func.func @transform_0(%arg0: i32) -> (i32, i32, i32, i32) {
    %c0_i32 = arith.constant 0 : i32
    %c0_i32_0 = arith.constant 0 : i32
    %c0_i32_1 = arith.constant 0 : i32
    %c0_i32_2 = arith.constant 0 : i32
    return %arg0, %c0_i32, %c0_i32_0, %c0_i32_1 : i32, i32, i32, i32
  }
  func.func @transform_1(%arg0: i32) -> (i32, i32) {
    %c0_i32 = arith.constant 0 : i32
    %c0_i32_0 = arith.constant 0 : i32
    %c0_i32_1 = arith.constant 0 : i32
    return %c0_i32, %c0_i32_0 : i32, i32
  }
  func.func @transform_2(%arg0: i32) -> (i32, i32) {
    %c0_i32 = arith.constant 0 : i32
    %c0_i32_0 = arith.constant 0 : i32
    %c0_i32_1 = arith.constant 0 : i32
    return %c0_i32, %c0_i32_0 : i32, i32
  }
  func.func @transform_3(%arg0: i32) -> (i32, i32) {
    %c0_i32 = arith.constant 0 : i32
    %c0_i32_0 = arith.constant 0 : i32
    %c0_i32_1 = arith.constant 0 : i32
    return %c0_i32, %c0_i32_0 : i32, i32
  }
  func.func @transform_4(%arg0: i32) -> (i32, i32) {
    %c0_i32 = arith.constant 0 : i32
    %c0_i32_0 = arith.constant 0 : i32
    %c0_i32_1 = arith.constant 0 : i32
    return %c0_i32, %c0_i32_0 : i32, i32
  }
  func.func @transform_5(%arg0: i32) -> (i32, i32) {
    %c0_i32 = arith.constant 0 : i32
    %c0_i32_0 = arith.constant 0 : i32
    %c0_i32_1 = arith.constant 0 : i32
    return %c0_i32, %c0_i32_0 : i32, i32
  }
  func.func @transform_6(%arg0: i32) -> (i32, i32) {
    %c0_i32 = arith.constant 0 : i32
    %c0_i32_0 = arith.constant 0 : i32
    %c0_i32_1 = arith.constant 0 : i32
    return %c0_i32, %c0_i32_0 : i32, i32
  }
  func.func @transform_7(%arg0: i32) -> (i32, i32) {
    %c0_i32 = arith.constant 0 : i32
    %c0_i32_0 = arith.constant 0 : i32
    %c0_i32_1 = arith.constant 0 : i32
    return %c0_i32, %c0_i32_0 : i32, i32
  }
  func.func @transform_8(%arg0: i32) -> (i32, i32) {
    %c0_i32 = arith.constant 0 : i32
    %c0_i32_0 = arith.constant 0 : i32
    %c0_i32_1 = arith.constant 0 : i32
    return %c0_i32, %c0_i32_0 : i32, i32
  }
  func.func @transform_9(%arg0: i32) -> (i32, i32) {
    %c0_i32 = arith.constant 0 : i32
    %c0_i32_0 = arith.constant 0 : i32
    %c0_i32_1 = arith.constant 0 : i32
    return %c0_i32, %c0_i32_0 : i32, i32
  }
  func.func @transform_10(%arg0: i32) -> (i32, i32, i32) {
    %c0_i32 = arith.constant 0 : i32
    %c0_i32_0 = arith.constant 0 : i32
    %c0_i32_1 = arith.constant 0 : i32
    return %arg0, %c0_i32, %c0_i32_0 : i32, i32, i32
  }
  func.func @transform_11(%arg0: i32) -> (i32, i32, i32) {
    %c0_i32 = arith.constant 0 : i32
    %c0_i32_0 = arith.constant 0 : i32
    %c0_i32_1 = arith.constant 0 : i32
    return %arg0, %c0_i32, %c0_i32_0 : i32, i32, i32
  }
  func.func @transform_12(%arg0: i32) -> (i32, i32, i32) {
    %c0_i32 = arith.constant 0 : i32
    %c0_i32_0 = arith.constant 0 : i32
    %c0_i32_1 = arith.constant 0 : i32
    return %arg0, %c0_i32, %c0_i32_0 : i32, i32, i32
  }
  func.func @transform_13(%arg0: i32) -> (i32, i32, i32) {
    %c0_i32 = arith.constant 0 : i32
    %c0_i32_0 = arith.constant 0 : i32
    %c0_i32_1 = arith.constant 0 : i32
    return %arg0, %c0_i32, %c0_i32_0 : i32, i32, i32
  }
  func.func @transform_14(%arg0: i32) -> (i32, i32, i32, i32) {
    %c0_i32 = arith.constant 0 : i32
    %c0_i32_0 = arith.constant 0 : i32
    %c0_i32_1 = arith.constant 0 : i32
    %c0_i32_2 = arith.constant 0 : i32
    return %arg0, %c0_i32, %c0_i32_0, %c0_i32_1 : i32, i32, i32, i32
  }
}

module attributes {stable_mosaic.version = 11 : i64} {
  func.func @_gibgcn_kernel(%arg0: i32, %arg1: memref<1x2x16x256xbf16, #tpu.memory_space<vmem>>, %arg2: memref<16x16xbf16, #tpu.memory_space<vmem>>, %arg3: memref<256x128xbf16, #tpu.memory_space<vmem>>, %arg4: memref<1x128xf32, #tpu.memory_space<vmem>>, %arg5: memref<128x128xbf16, #tpu.memory_space<vmem>>, %arg6: memref<1x128xf32, #tpu.memory_space<vmem>>, %arg7: memref<128x128xbf16, #tpu.memory_space<vmem>>, %arg8: memref<1x128xf32, #tpu.memory_space<vmem>>, %arg9: memref<128x128xbf16, #tpu.memory_space<vmem>>, %arg10: memref<1x128xf32, #tpu.memory_space<vmem>>, %arg11: memref<1x2x128xf32, #tpu.memory_space<vmem>>, %arg12: memref<1x2x128xf32, #tpu.memory_space<vmem>>, %arg13: memref<1x2x128xf32, #tpu.memory_space<vmem>>, %arg14: memref<1x2x128xf32, #tpu.memory_space<vmem>>, %arg15: memref<1x2x16x128xbf16, #tpu.memory_space<vmem>>) attributes {dimension_semantics = [#tpu.dimension_semantics<parallel>], iteration_bounds = array<i64: 2>, scalar_prefetch = 0 : i64, scratch_operands = 0 : i64, tpu.core_type = #tpu.core_type<tc>, window_params = [{transform_indices = @transform_0, window_bounds = array<i64: 1, 2, 16, 256>}, {pipeline_mode = #tpu.pipeline_mode<synchronous>, transform_indices = @transform_1, window_bounds = array<i64: 16, 16>}, {pipeline_mode = #tpu.pipeline_mode<synchronous>, transform_indices = @transform_2, window_bounds = array<i64: 256, 128>}, {pipeline_mode = #tpu.pipeline_mode<synchronous>, transform_indices = @transform_3, window_bounds = array<i64: 1, 128>}, {pipeline_mode = #tpu.pipeline_mode<synchronous>, transform_indices = @transform_4, window_bounds = array<i64: 128, 128>}, {pipeline_mode = #tpu.pipeline_mode<synchronous>, transform_indices = @transform_5, window_bounds = array<i64: 1, 128>}, {pipeline_mode = #tpu.pipeline_mode<synchronous>, transform_indices = @transform_6, window_bounds = array<i64: 128, 128>}, {pipeline_mode = #tpu.pipeline_mode<synchronous>, transform_indices = @transform_7, window_bounds = array<i64: 1, 128>}, {pipeline_mode = #tpu.pipeline_mode<synchronous>, transform_indices = @transform_8, window_bounds = array<i64: 128, 128>}, {pipeline_mode = #tpu.pipeline_mode<synchronous>, transform_indices = @transform_9, window_bounds = array<i64: 1, 128>}, {transform_indices = @transform_10, window_bounds = array<i64: 1, 2, 128>}, {transform_indices = @transform_11, window_bounds = array<i64: 1, 2, 128>}, {transform_indices = @transform_12, window_bounds = array<i64: 1, 2, 128>}, {transform_indices = @transform_13, window_bounds = array<i64: 1, 2, 128>}, {transform_indices = @transform_14, window_bounds = array<i64: 1, 2, 16, 128>}]} {
    %c0 = arith.constant 0 : index
    %c0_0 = arith.constant 0 : index
    %c0_1 = arith.constant 0 : index
    %c0_2 = arith.constant 0 : index
    %0 = vector.load %arg1[%c0, %c0_0, %c0_1, %c0_2] : memref<1x2x16x256xbf16, #tpu.memory_space<vmem>>, vector<1x2x16x256xbf16>
    %1 = vector.shape_cast %0 : vector<1x2x16x256xbf16> to vector<2x16x256xbf16>
    %2 = vector.shape_cast %1 : vector<2x16x256xbf16> to vector<32x256xbf16>
    %c0_3 = arith.constant 0 : index
    %c0_4 = arith.constant 0 : index
    %3 = vector.load %arg3[%c0_3, %c0_4] : memref<256x128xbf16, #tpu.memory_space<vmem>>, vector<256x128xbf16>
    %cst = arith.constant dense<0.000000e+00> : vector<32x128xf32>
    %4 = tpu.matmul %2, %3, %cst {dimension_numbers = #tpu.dot_dimension_numbers<[1], [0], [0], [1], [0, 0, 1, 1], [], []>} : vector<32x256xbf16>, vector<256x128xbf16>, vector<32x128xf32> -> vector<32x128xf32>
    %c0_5 = arith.constant 0 : index
    %c0_6 = arith.constant 0 : index
    %5 = vector.load %arg4[%c0_5, %c0_6] : memref<1x128xf32, #tpu.memory_space<vmem>>, vector<1x128xf32>
    %6 = vector.broadcast %5 : vector<1x128xf32> to vector<32x128xf32>
    %7 = arith.addf %4, %6 : vector<32x128xf32>
    %cst_7 = arith.constant 0.000000e+00 : f32
    %8 = vector.broadcast %cst_7 : f32 to vector<32x128xf32>
    %9 = arith.maximumf %7, %8 : vector<32x128xf32>
    %10 = arith.truncf %9 : vector<32x128xf32> to vector<32x128xbf16>
    %c0_8 = arith.constant 0 : index
    %c0_9 = arith.constant 0 : index
    %11 = vector.load %arg5[%c0_8, %c0_9] : memref<128x128xbf16, #tpu.memory_space<vmem>>, vector<128x128xbf16>
    %cst_10 = arith.constant dense<0.000000e+00> : vector<32x128xf32>
    %12 = tpu.matmul %10, %11, %cst_10 {dimension_numbers = #tpu.dot_dimension_numbers<[1], [0], [0], [1], [0, 0, 1, 1], [], []>} : vector<32x128xbf16>, vector<128x128xbf16>, vector<32x128xf32> -> vector<32x128xf32>
    %c0_11 = arith.constant 0 : index
    %c0_12 = arith.constant 0 : index
    %13 = vector.load %arg6[%c0_11, %c0_12] : memref<1x128xf32, #tpu.memory_space<vmem>>, vector<1x128xf32>
    %14 = vector.broadcast %13 : vector<1x128xf32> to vector<32x128xf32>
    %15 = arith.addf %12, %14 : vector<32x128xf32>
    %16 = tpu.iota {dimensions = array<i32: 1>} : vector<32x128xi32>
    %c2_i32 = arith.constant 2 : i32
    %17 = vector.broadcast %c2_i32 : i32 to vector<32x128xi32>
    %18 = arith.cmpi slt, %16, %17 : vector<32x128xi32>
    %cst_13 = arith.constant -1.000000e+30 : f32
    %19 = vector.broadcast %cst_13 : f32 to vector<32x128xf32>
    %20 = arith.select %18, %15, %19 : vector<32x128xi1>, vector<32x128xf32>
    %cst_14 = arith.constant dense<0xFF800000> : vector<32xf32>
    %21 = vector.multi_reduction <maximumf>, %20, %cst_14 [1] : vector<32x128xf32> to vector<32xf32>
    %22 = vector.shape_cast %21 : vector<32xf32> to vector<32x1xf32>
    %23 = vector.broadcast %22 : vector<32x1xf32> to vector<32x128xf32>
    %24 = arith.subf %20, %23 : vector<32x128xf32>
    %25 = math.exp %24 : vector<32x128xf32>
    %cst_15 = arith.constant dense<0.000000e+00> : vector<32xf32>
    %26 = vector.multi_reduction <add>, %25, %cst_15 [1] : vector<32x128xf32> to vector<32xf32>
    %27 = vector.shape_cast %26 : vector<32xf32> to vector<32x1xf32>
    %28 = vector.broadcast %27 : vector<32x1xf32> to vector<32x128xf32>
    %29 = arith.divf %25, %28 : vector<32x128xf32>
    %30 = vector.shape_cast %29 : vector<32x128xf32> to vector<2x16x128xf32>
    %31 = arith.truncf %30 : vector<2x16x128xf32> to vector<2x16x128xbf16>
    %c0_16 = arith.constant 0 : index
    %c0_17 = arith.constant 0 : index
    %c0_18 = arith.constant 0 : index
    %c0_19 = arith.constant 0 : index
    %32 = vector.load %arg15[%c0_16, %c0_17, %c0_18, %c0_19] : memref<1x2x16x128xbf16, #tpu.memory_space<vmem>>, vector<1x2x16x128xbf16>
    %33 = vector.shape_cast %32 : vector<1x2x16x128xbf16> to vector<2x16x128xbf16>
    %34 = vector.shape_cast %31 : vector<2x16x128xbf16> to vector<1x2x16x128xbf16>
    tpu.vector_store %arg15[%c0_16, %c0_17, %c0_18, %c0_19], %34 {strides = array<i32>} : memref<1x2x16x128xbf16, #tpu.memory_space<vmem>>, vector<1x2x16x128xbf16>,
    %35 = vector.extract_strided_slice %1 {offsets = [0, 0, 0], sizes = [2, 16, 128], strides = [1, 1, 1]} : vector<2x16x256xbf16> to vector<2x16x128xbf16>
    %36 = arith.extf %35 : vector<2x16x128xbf16> to vector<2x16x128xf32>
    %37 = vector.extract_strided_slice %30 {offsets = [0, 0, 0], sizes = [2, 16, 1], strides = [1, 1, 1]} : vector<2x16x128xf32> to vector<2x16x1xf32>
    %38 = vector.broadcast %37 : vector<2x16x1xf32> to vector<2x16x128xf32>
    %39 = arith.mulf %38, %36 : vector<2x16x128xf32>
    %cst_20 = arith.constant dense<0.000000e+00> : vector<2x128xf32>
    %40 = vector.multi_reduction <add>, %39, %cst_20 [1] : vector<2x16x128xf32> to vector<2x128xf32>
    %cst_21 = arith.constant 6.250000e-02 : f32
    %41 = vector.broadcast %cst_21 : f32 to vector<2x128xf32>
    %42 = arith.mulf %40, %41 : vector<2x128xf32>
    %cst_22 = arith.constant dense<0.000000e+00> : vector<2x128xf32>
    %43 = vector.multi_reduction <add>, %36, %cst_22 [1] : vector<2x16x128xf32> to vector<2x128xf32>
    %cst_23 = arith.constant 6.250000e-02 : f32
    %44 = vector.broadcast %cst_23 : f32 to vector<2x128xf32>
    %45 = arith.mulf %43, %44 : vector<2x128xf32>
    %c0_24 = arith.constant 0 : index
    %c0_25 = arith.constant 0 : index
    %c0_26 = arith.constant 0 : index
    %46 = vector.load %arg12[%c0_24, %c0_25, %c0_26] : memref<1x2x128xf32, #tpu.memory_space<vmem>>, vector<1x2x128xf32>
    %47 = vector.shape_cast %46 : vector<1x2x128xf32> to vector<2x128xf32>
    %48 = vector.shape_cast %42 : vector<2x128xf32> to vector<1x2x128xf32>
    tpu.vector_store %arg12[%c0_24, %c0_25, %c0_26], %48 {strides = array<i32>} : memref<1x2x128xf32, #tpu.memory_space<vmem>>, vector<1x2x128xf32>,
    %c0_27 = arith.constant 0 : index
    %c0_28 = arith.constant 0 : index
    %c0_29 = arith.constant 0 : index
    %49 = vector.load %arg13[%c0_27, %c0_28, %c0_29] : memref<1x2x128xf32, #tpu.memory_space<vmem>>, vector<1x2x128xf32>
    %50 = vector.shape_cast %49 : vector<1x2x128xf32> to vector<2x128xf32>
    %51 = vector.shape_cast %45 : vector<2x128xf32> to vector<1x2x128xf32>
    tpu.vector_store %arg13[%c0_27, %c0_28, %c0_29], %51 {strides = array<i32>} : memref<1x2x128xf32, #tpu.memory_space<vmem>>, vector<1x2x128xf32>,
    %c0_30 = arith.constant 0 : index
    %c0_31 = arith.constant 0 : index
    %52 = vector.load %arg2[%c0_30, %c0_31] : memref<16x16xbf16, #tpu.memory_space<vmem>>, vector<16x16xbf16>
    %53 = vector.extract_strided_slice %30 {offsets = [0, 0, 0], sizes = [1, 16, 128], strides = [1, 1, 1]} : vector<2x16x128xf32> to vector<1x16x128xf32>
    %54 = vector.shape_cast %53 : vector<1x16x128xf32> to vector<16x128xf32>
    %55 = arith.truncf %54 : vector<16x128xf32> to vector<16x128xbf16>
    %cst_32 = arith.constant dense<0.000000e+00> : vector<16x128xf32>
    %56 = tpu.matmul %52, %55, %cst_32 {dimension_numbers = #tpu.dot_dimension_numbers<[1], [0], [0], [1], [0, 0, 1, 1], [], []>} : vector<16x16xbf16>, vector<16x128xbf16>, vector<16x128xf32> -> vector<16x128xf32>
    %57 = vector.extract_strided_slice %54 {offsets = [0, 0], sizes = [16, 1], strides = [1, 1]} : vector<16x128xf32> to vector<16x1xf32>
    %58 = vector.extract_strided_slice %54 {offsets = [0, 1], sizes = [16, 1], strides = [1, 1]} : vector<16x128xf32> to vector<16x1xf32>
    %59 = vector.broadcast %57 : vector<16x1xf32> to vector<16x128xf32>
    %60 = arith.mulf %59, %56 : vector<16x128xf32>
    %cst_33 = arith.constant dense<0.000000e+00> : vector<128xf32>
    %61 = vector.multi_reduction <add>, %60, %cst_33 [0] : vector<16x128xf32> to vector<128xf32>
    %62 = vector.shape_cast %61 : vector<128xf32> to vector<1x128xf32>
    %63 = vector.broadcast %58 : vector<16x1xf32> to vector<16x128xf32>
    %64 = arith.mulf %63, %56 : vector<16x128xf32>
    %cst_34 = arith.constant dense<0.000000e+00> : vector<128xf32>
    %65 = vector.multi_reduction <add>, %64, %cst_34 [0] : vector<16x128xf32> to vector<128xf32>
    %66 = vector.shape_cast %65 : vector<128xf32> to vector<1x128xf32>
    %67 = vector.extract_strided_slice %62 {offsets = [0, 0], sizes = [1, 1], strides = [1, 1]} : vector<1x128xf32> to vector<1x1xf32>
    %68 = vector.extract_strided_slice %62 {offsets = [0, 1], sizes = [1, 1], strides = [1, 1]} : vector<1x128xf32> to vector<1x1xf32>
    %69 = vector.extract_strided_slice %66 {offsets = [0, 0], sizes = [1, 1], strides = [1, 1]} : vector<1x128xf32> to vector<1x1xf32>
    %70 = vector.extract_strided_slice %66 {offsets = [0, 1], sizes = [1, 1], strides = [1, 1]} : vector<1x128xf32> to vector<1x1xf32>
    %71 = math.absf %67 : vector<1x1xf32>
    %72 = math.absf %68 : vector<1x1xf32>
    %73 = arith.addf %71, %72 : vector<1x1xf32>
    %cst_35 = arith.constant 9.99999974E-6 : f32
    %74 = vector.broadcast %cst_35 : f32 to vector<1x1xf32>
    %75 = arith.maximumf %73, %74 : vector<1x1xf32>
    %76 = math.absf %69 : vector<1x1xf32>
    %77 = math.absf %70 : vector<1x1xf32>
    %78 = arith.addf %76, %77 : vector<1x1xf32>
    %cst_36 = arith.constant 9.99999974E-6 : f32
    %79 = vector.broadcast %cst_36 : f32 to vector<1x1xf32>
    %80 = arith.maximumf %78, %79 : vector<1x1xf32>
    %81 = arith.divf %67, %75 : vector<1x1xf32>
    %82 = arith.divf %70, %80 : vector<1x1xf32>
    %cst_37 = arith.constant 1.000000e+00 : f32
    %83 = vector.broadcast %cst_37 : f32 to vector<1x1xf32>
    %84 = arith.subf %81, %83 : vector<1x1xf32>
    %85 = arith.mulf %84, %84 : vector<1x1xf32>
    %cst_38 = arith.constant 1.000000e+00 : f32
    %86 = vector.broadcast %cst_38 : f32 to vector<1x1xf32>
    %87 = arith.subf %82, %86 : vector<1x1xf32>
    %88 = arith.mulf %87, %87 : vector<1x1xf32>
    %89 = arith.addf %85, %88 : vector<1x1xf32>
    %cst_39 = arith.constant 5.000000e-01 : f32
    %90 = vector.broadcast %cst_39 : f32 to vector<1x1xf32>
    %91 = arith.mulf %90, %89 : vector<1x1xf32>
    %92 = vector.shape_cast %91 : vector<1x1xf32> to vector<1x1xf32>
    %93 = vector.broadcast %92 : vector<1x1xf32> to vector<1x128xf32>
    %94 = vector.extract_strided_slice %30 {offsets = [1, 0, 0], sizes = [1, 16, 128], strides = [1, 1, 1]} : vector<2x16x128xf32> to vector<1x16x128xf32>
    %95 = vector.shape_cast %94 : vector<1x16x128xf32> to vector<16x128xf32>
    %96 = arith.truncf %95 : vector<16x128xf32> to vector<16x128xbf16>
    %cst_40 = arith.constant dense<0.000000e+00> : vector<16x128xf32>
    %97 = tpu.matmul %52, %96, %cst_40 {dimension_numbers = #tpu.dot_dimension_numbers<[1], [0], [0], [1], [0, 0, 1, 1], [], []>} : vector<16x16xbf16>, vector<16x128xbf16>, vector<16x128xf32> -> vector<16x128xf32>
    %98 = vector.extract_strided_slice %95 {offsets = [0, 0], sizes = [16, 1], strides = [1, 1]} : vector<16x128xf32> to vector<16x1xf32>
    %99 = vector.extract_strided_slice %95 {offsets = [0, 1], sizes = [16, 1], strides = [1, 1]} : vector<16x128xf32> to vector<16x1xf32>
    %100 = vector.broadcast %98 : vector<16x1xf32> to vector<16x128xf32>
    %101 = arith.mulf %100, %97 : vector<16x128xf32>
    %cst_41 = arith.constant dense<0.000000e+00> : vector<128xf32>
    %102 = vector.multi_reduction <add>, %101, %cst_41 [0] : vector<16x128xf32> to vector<128xf32>
    %103 = vector.shape_cast %102 : vector<128xf32> to vector<1x128xf32>
    %104 = vector.broadcast %99 : vector<16x1xf32> to vector<16x128xf32>
    %105 = arith.mulf %104, %97 : vector<16x128xf32>
    %cst_42 = arith.constant dense<0.000000e+00> : vector<128xf32>
    %106 = vector.multi_reduction <add>, %105, %cst_42 [0] : vector<16x128xf32> to vector<128xf32>
    %107 = vector.shape_cast %106 : vector<128xf32> to vector<1x128xf32>
    %108 = vector.extract_strided_slice %103 {offsets = [0, 0], sizes = [1, 1], strides = [1, 1]} : vector<1x128xf32> to vector<1x1xf32>
    %109 = vector.extract_strided_slice %103 {offsets = [0, 1], sizes = [1, 1], strides = [1, 1]} : vector<1x128xf32> to vector<1x1xf32>
    %110 = vector.extract_strided_slice %107 {offsets = [0, 0], sizes = [1, 1], strides = [1, 1]} : vector<1x128xf32> to vector<1x1xf32>
    %111 = vector.extract_strided_slice %107 {offsets = [0, 1], sizes = [1, 1], strides = [1, 1]} : vector<1x128xf32> to vector<1x1xf32>
    %112 = math.absf %108 : vector<1x1xf32>
    %113 = math.absf %109 : vector<1x1xf32>
    %114 = arith.addf %112, %113 : vector<1x1xf32>
    %cst_43 = arith.constant 9.99999974E-6 : f32
    %115 = vector.broadcast %cst_43 : f32 to vector<1x1xf32>
    %116 = arith.maximumf %114, %115 : vector<1x1xf32>
    %117 = math.absf %110 : vector<1x1xf32>
    %118 = math.absf %111 : vector<1x1xf32>
    %119 = arith.addf %117, %118 : vector<1x1xf32>
    %cst_44 = arith.constant 9.99999974E-6 : f32
    %120 = vector.broadcast %cst_44 : f32 to vector<1x1xf32>
    %121 = arith.maximumf %119, %120 : vector<1x1xf32>
    %122 = arith.divf %108, %116 : vector<1x1xf32>
    %123 = arith.divf %111, %121 : vector<1x1xf32>
    %cst_45 = arith.constant 1.000000e+00 : f32
    %124 = vector.broadcast %cst_45 : f32 to vector<1x1xf32>
    %125 = arith.subf %122, %124 : vector<1x1xf32>
    %126 = arith.mulf %125, %125 : vector<1x1xf32>
    %cst_46 = arith.constant 1.000000e+00 : f32
    %127 = vector.broadcast %cst_46 : f32 to vector<1x1xf32>
    %128 = arith.subf %123, %127 : vector<1x1xf32>
    %129 = arith.mulf %128, %128 : vector<1x1xf32>
    %130 = arith.addf %126, %129 : vector<1x1xf32>
    %cst_47 = arith.constant 5.000000e-01 : f32
    %131 = vector.broadcast %cst_47 : f32 to vector<1x1xf32>
    %132 = arith.mulf %131, %130 : vector<1x1xf32>
    %133 = vector.shape_cast %132 : vector<1x1xf32> to vector<1x1xf32>
    %134 = vector.broadcast %133 : vector<1x1xf32> to vector<1x128xf32>
    %135 = tpu.concatenate %93, %134 in 0 : vector<1x128xf32>, vector<1x128xf32> -> vector<2x128xf32>
    %c0_48 = arith.constant 0 : index
    %c0_49 = arith.constant 0 : index
    %c0_50 = arith.constant 0 : index
    %136 = vector.load %arg14[%c0_48, %c0_49, %c0_50] : memref<1x2x128xf32, #tpu.memory_space<vmem>>, vector<1x2x128xf32>
    %137 = vector.shape_cast %136 : vector<1x2x128xf32> to vector<2x128xf32>
    %138 = vector.shape_cast %135 : vector<2x128xf32> to vector<1x2x128xf32>
    tpu.vector_store %arg14[%c0_48, %c0_49, %c0_50], %138 {strides = array<i32>} : memref<1x2x128xf32, #tpu.memory_space<vmem>>, vector<1x2x128xf32>,
    %139 = arith.truncf %42 : vector<2x128xf32> to vector<2x128xbf16>
    %c0_51 = arith.constant 0 : index
    %c0_52 = arith.constant 0 : index
    %140 = vector.load %arg7[%c0_51, %c0_52] : memref<128x128xbf16, #tpu.memory_space<vmem>>, vector<128x128xbf16>
    %cst_53 = arith.constant dense<0.000000e+00> : vector<2x128xf32>
    %141 = tpu.matmul %139, %140, %cst_53 {dimension_numbers = #tpu.dot_dimension_numbers<[1], [0], [0], [1], [0, 0, 1, 1], [], []>} : vector<2x128xbf16>, vector<128x128xbf16>, vector<2x128xf32> -> vector<2x128xf32>
    %c0_54 = arith.constant 0 : index
    %c0_55 = arith.constant 0 : index
    %142 = vector.load %arg8[%c0_54, %c0_55] : memref<1x128xf32, #tpu.memory_space<vmem>>, vector<1x128xf32>
    %143 = vector.broadcast %142 : vector<1x128xf32> to vector<2x128xf32>
    %144 = arith.addf %141, %143 : vector<2x128xf32>
    %cst_56 = arith.constant 0.000000e+00 : f32
    %145 = vector.broadcast %cst_56 : f32 to vector<2x128xf32>
    %146 = arith.maximumf %144, %145 : vector<2x128xf32>
    %147 = arith.truncf %146 : vector<2x128xf32> to vector<2x128xbf16>
    %c0_57 = arith.constant 0 : index
    %c0_58 = arith.constant 0 : index
    %148 = vector.load %arg9[%c0_57, %c0_58] : memref<128x128xbf16, #tpu.memory_space<vmem>>, vector<128x128xbf16>
    %cst_59 = arith.constant dense<0.000000e+00> : vector<2x128xf32>
    %149 = tpu.matmul %147, %148, %cst_59 {dimension_numbers = #tpu.dot_dimension_numbers<[1], [0], [0], [1], [0, 0, 1, 1], [], []>} : vector<2x128xbf16>, vector<128x128xbf16>, vector<2x128xf32> -> vector<2x128xf32>
    %c0_60 = arith.constant 0 : index
    %c0_61 = arith.constant 0 : index
    %150 = vector.load %arg10[%c0_60, %c0_61] : memref<1x128xf32, #tpu.memory_space<vmem>>, vector<1x128xf32>
    %151 = vector.broadcast %150 : vector<1x128xf32> to vector<2x128xf32>
    %152 = arith.addf %149, %151 : vector<2x128xf32>
    %c0_62 = arith.constant 0 : index
    %c0_63 = arith.constant 0 : index
    %c0_64 = arith.constant 0 : index
    %153 = vector.load %arg11[%c0_62, %c0_63, %c0_64] : memref<1x2x128xf32, #tpu.memory_space<vmem>>, vector<1x2x128xf32>
    %154 = vector.shape_cast %153 : vector<1x2x128xf32> to vector<2x128xf32>
    %155 = vector.shape_cast %152 : vector<2x128xf32> to vector<1x2x128xf32>
    tpu.vector_store %arg11[%c0_62, %c0_63, %c0_64], %155 {strides = array<i32>} : memref<1x2x128xf32, #tpu.memory_space<vmem>>, vector<1x2x128xf32>,
    return
  }
  func.func @transform_0(%arg0: i32) -> (i32, i32, i32, i32) {
    %c0_i32 = arith.constant 0 : i32
    %c0_i32_0 = arith.constant 0 : i32
    %c0_i32_1 = arith.constant 0 : i32
    %c0_i32_2 = arith.constant 0 : i32
    return %arg0, %c0_i32, %c0_i32_0, %c0_i32_1 : i32, i32, i32, i32
  }
  func.func @transform_1(%arg0: i32) -> (i32, i32) {
    %c0_i32 = arith.constant 0 : i32
    %c0_i32_0 = arith.constant 0 : i32
    %c0_i32_1 = arith.constant 0 : i32
    return %c0_i32, %c0_i32_0 : i32, i32
  }
  func.func @transform_2(%arg0: i32) -> (i32, i32) {
    %c0_i32 = arith.constant 0 : i32
    %c0_i32_0 = arith.constant 0 : i32
    %c0_i32_1 = arith.constant 0 : i32
    return %c0_i32, %c0_i32_0 : i32, i32
  }
  func.func @transform_3(%arg0: i32) -> (i32, i32) {
    %c0_i32 = arith.constant 0 : i32
    %c0_i32_0 = arith.constant 0 : i32
    %c0_i32_1 = arith.constant 0 : i32
    return %c0_i32, %c0_i32_0 : i32, i32
  }
  func.func @transform_4(%arg0: i32) -> (i32, i32) {
    %c0_i32 = arith.constant 0 : i32
    %c0_i32_0 = arith.constant 0 : i32
    %c0_i32_1 = arith.constant 0 : i32
    return %c0_i32, %c0_i32_0 : i32, i32
  }
  func.func @transform_5(%arg0: i32) -> (i32, i32) {
    %c0_i32 = arith.constant 0 : i32
    %c0_i32_0 = arith.constant 0 : i32
    %c0_i32_1 = arith.constant 0 : i32
    return %c0_i32, %c0_i32_0 : i32, i32
  }
  func.func @transform_6(%arg0: i32) -> (i32, i32) {
    %c0_i32 = arith.constant 0 : i32
    %c0_i32_0 = arith.constant 0 : i32
    %c0_i32_1 = arith.constant 0 : i32
    return %c0_i32, %c0_i32_0 : i32, i32
  }
  func.func @transform_7(%arg0: i32) -> (i32, i32) {
    %c0_i32 = arith.constant 0 : i32
    %c0_i32_0 = arith.constant 0 : i32
    %c0_i32_1 = arith.constant 0 : i32
    return %c0_i32, %c0_i32_0 : i32, i32
  }
  func.func @transform_8(%arg0: i32) -> (i32, i32) {
    %c0_i32 = arith.constant 0 : i32
    %c0_i32_0 = arith.constant 0 : i32
    %c0_i32_1 = arith.constant 0 : i32
    return %c0_i32, %c0_i32_0 : i32, i32
  }
  func.func @transform_9(%arg0: i32) -> (i32, i32) {
    %c0_i32 = arith.constant 0 : i32
    %c0_i32_0 = arith.constant 0 : i32
    %c0_i32_1 = arith.constant 0 : i32
    return %c0_i32, %c0_i32_0 : i32, i32
  }
  func.func @transform_10(%arg0: i32) -> (i32, i32, i32) {
    %c0_i32 = arith.constant 0 : i32
    %c0_i32_0 = arith.constant 0 : i32
    %c0_i32_1 = arith.constant 0 : i32
    return %arg0, %c0_i32, %c0_i32_0 : i32, i32, i32
  }
  func.func @transform_11(%arg0: i32) -> (i32, i32, i32) {
    %c0_i32 = arith.constant 0 : i32
    %c0_i32_0 = arith.constant 0 : i32
    %c0_i32_1 = arith.constant 0 : i32
    return %arg0, %c0_i32, %c0_i32_0 : i32, i32, i32
  }
  func.func @transform_12(%arg0: i32) -> (i32, i32, i32) {
    %c0_i32 = arith.constant 0 : i32
    %c0_i32_0 = arith.constant 0 : i32
    %c0_i32_1 = arith.constant 0 : i32
    return %arg0, %c0_i32, %c0_i32_0 : i32, i32, i32
  }
  func.func @transform_13(%arg0: i32) -> (i32, i32, i32) {
    %c0_i32 = arith.constant 0 : i32
    %c0_i32_0 = arith.constant 0 : i32
    %c0_i32_1 = arith.constant 0 : i32
    return %arg0, %c0_i32, %c0_i32_0 : i32, i32, i32
  }
  func.func @transform_14(%arg0: i32) -> (i32, i32, i32, i32) {
    %c0_i32 = arith.constant 0 : i32
    %c0_i32_0 = arith.constant 0 : i32
    %c0_i32_1 = arith.constant 0 : i32
    %c0_i32_2 = arith.constant 0 : i32
    return %arg0, %c0_i32, %c0_i32_0, %c0_i32_1 : i32, i32, i32, i32
  }
}

</mosaic_0001>

<bundles_post_ra>
// kernel: tpu_custom_call.1
= control target key start
LH: loop header
LB: loop body
LE: loop exit
PB: predicated region body
PF: predicated region fallthrough
CT: control target
= control target key end

     0   :  { %s3077_s0 = inlined_call_operand.hbm [shape: bf16[2,2,16,256], index: 0, kind: input, shape index: {}]   ;;  %s3078_s1 = inlined_call_operand.hbm [shape: bf16[16,16], index: 1, kind: input, shape index: {}]   ;;  %s3079_s2 = inlined_call_operand.hbm [shape: bf16[256,128], index: 2, kind: input, shape index: {}]   ;;  %s3080_s3 = inlined_call_operand.vmem [shape: f32[1,128], index: 3, kind: input, shape index: {}]   ;;  %s3081_s4 = inlined_call_operand.hbm [shape: bf16[128,128], index: 4, kind: input, shape index: {}]   ;;  %s3082_s5 = inlined_call_operand.vmem [shape: f32[1,128], index: 5, kind: input, shape index: {}]   ;;  %s3083_s6 = inlined_call_operand.hbm [shape: bf16[128,128], index: 6, kind: input, shape index: {}]   ;;  %s3084_s7 = inlined_call_operand.vmem [shape: f32[1,128], index: 7, kind: input, shape index: {}]   ;;  %s3085_s8 = inlined_call_operand.hbm [shape: bf16[128,128], index: 8, kind: input, shape index: {}]   ;;  %s3086_s9 = inlined_call_operand.vmem [shape: f32[1,128], index: 9, kind: input, shape index: {}]   ;;  %s3087_s10 = inlined_call_operand.hbm [shape: f32[2,2,128], index: 10, kind: output, shape index: {0}]   ;;  %s3088_s11 = inlined_call_operand.hbm [shape: f32[2,2,128], index: 11, kind: output, shape index: {1}]   ;;  %s3089_s12 = inlined_call_operand.hbm [shape: f32[2,2,128], index: 12, kind: output, shape index: {2}]   ;;  %s3090_s13 = inlined_call_operand.hbm [shape: f32[2,2,128], index: 13, kind: output, shape index: {3}]   ;;  %s3091_s14 = inlined_call_operand.hbm [shape: bf16[2,2,16,128], index: 14, kind: output, shape index: {4}]  }
   0x1   :  { %3099 = sst [smem:[#allocation28_spill]] %s3077_s0 }
   0x2   :  { %3100 = sst [smem:[#allocation29_spill]] %s3078_s1 }
   0x3   :  { %3101 = sst [smem:[#allocation30_spill]] %s3079_s2 }
   0x4   :  { %3102 = sst [smem:[#allocation31_spill]] %s3080_s3 }
   0x5   :  { %3103 = sst [smem:[#allocation32_spill]] %s3081_s4 }
   0x6   :  { %3104 = sst [smem:[#allocation33_spill]] %s3082_s5 }
   0x7   :  { %3105 = sst [smem:[#allocation34_spill]] %s3083_s6 }
   0x8   :  { %3106 = sst [smem:[#allocation35_spill]] %s3085_s8 }
   0x9   :  { %3107 = sst [smem:[#allocation36_spill]] %s3089_s12 }
   0xa   :  { %3108 = sst [smem:[#allocation37_spill]] %s3090_s13 }
   0xb   :  { %3109 = sst [smem:[#allocation38_spill]] %s3091_s14 }
   0xc   :  { %20 = vsyncpa [#allocation3], 0 }
   0xd   :  { %22 = vsyncpa [#allocation3 + $0x1], 0 }
   0xe   :  { %23 = vsyncpa [#allocation6], 0 }
   0xf   :  { %24 = vsyncpa [#allocation9], 0 }
  0x10   :  { %25 = vsyncpa [#allocation12], 0 }
  0x11   :  { %26 = vsyncpa [#allocation4], 0 }
  0x12   :  { %28 = vsyncpa [#allocation4 + $0x1], 0 }
  0x13   :  { %29 = vsyncpa [#allocation15], 0 }
  0x14   :  { %31 = vsyncpa [#allocation15 + $0x1], 0 }
  0x15   :  { %32 = vsyncpa [#allocation18], 0 }
  0x16   :  { %34 = vsyncpa [#allocation18 + $0x1], 0  ;;  %s2715_s29 = smov 0   ;;  %s2717_s30 = smov 0  }
  0x17   :  { %s2719_s15 = smov 0   ;;  %s2721_s16 = smov 0  }
  0x18 LB: > { %s3110_s1 = sld [smem:[#allocation29_spill]]  ;;  %s2739_s20 = sadd.s32 4294967295, %s2623_s16   ;;  %s2623_s16 = sphi %s2721_s16, %s3137_s16   ;;  %s2619_s15 = sphi %s2719_s15, %s3136_s15   ;;  %s2615_s30 = sphi %s2717_s30, %s3135_s30   ;;  %s2611_s29 = sphi %s2715_s29, %s3134_s29  }
  0x19   : > { %p1805_p0 = scmp.ge.s32.totalorder %s2623_s16, 1  ;;  %p61_p1 = scmp.eq.s32.totalorder %s2739_s20, 0 }
  0x1a   : > { %p390_p2 = scmp.lt.s32.totalorder %s2623_s16, 3  ;;  %s2625_s22 = smov [#allocation5]  }
  0x1b   : > { %s403_s23 = sshll.u32 %s2625_s22, 4  ;;  %s3112_s4 = sld [smem:[#allocation32_spill]]  ;;  %s404_s23 = int_to_ptr.vmem [resolvable:$true] %s403_s23 }
  0x1c   : > { %p2744_p3 = pnand %p1805_p0, %p390_p2  ;;  %s3114_s2 = sld [smem:[#allocation30_spill]] }
  0x1d   : > { %s2626_s22 = smov [#allocation8]   ;;  %s2627_s14 = smov 64  }
  0x1e   : > { %s401_s19 = sshll.u32 %s3110_s1, 4  ;;  %p2116_p4 = pneg %p2744_p3  ;;  %s402_s19 = int_to_ptr.hbm [resolvable:$true] %s401_s19 }
  0x1f   : > { %s434_s1 = sshll.u32 %s2626_s22, 4  ;;  %s2628_s13 = smov 4   ;;  %s435_s1 = int_to_ptr.vmem [resolvable:$true] %s434_s1 }
  0x20   : > { %p2756_p6 = pnand %p2116_p4, %p61_p1  ;;  %s3115_s6 = sld [smem:[#allocation34_spill]] }
  0x21   : > { %s432_s26 = sshll.u32 %s3112_s4, 4  ;;  %s2629_s12 = smov [#allocation7]   ;;  %s433_s26 = int_to_ptr.hbm [resolvable:$true] %s432_s26 }
  0x22   : > { %s415_s18 = sshll.u32 %s3114_s2, 4  ;;  %s417_s28 = sshll.u32 %s2629_s12, 4  ;;  %s416_s18 = int_to_ptr.hbm [resolvable:$true] %s415_s18  ;;  %s418_s28 = int_to_ptr.vmem [resolvable:$true] %s417_s28 }
  0x23   : > { %2119 = dma.hbm_to_vmem [thread:$0]  (!%p2756_p6), %s402_s19, 128, %s404_s23, [#allocation6], %s2627_s14, %s2627_s14, %s2628_s13  }
  0x24   : > { %2125 = dma.hbm_to_vmem [thread:$0]  (!%p2756_p6), %s433_s26, 1024, %s435_s1, [#allocation9], %s2627_s14, %s2627_s14, %s2628_s13  }
  0x25   : > { %2122 = dma.hbm_to_vmem [thread:$0]  (!%p2756_p6), %s416_s18, 2048, %s418_s28, [#allocation6], %s2627_s14, %s2627_s14, %s2628_s13  }
  0x26   : > { %s449_s4 = sshll.u32 %s3115_s6, 4  ;;  %s2630_s19 = smov [#allocation10]   ;;  %s450_s4 = int_to_ptr.hbm [resolvable:$true] %s449_s4 }
  0x27   : > { %s451_s1 = sshll.u32 %s2630_s19, 4  ;;  %s3116_s8 = sld [smem:[#allocation35_spill]]  ;;  %s452_s1 = int_to_ptr.vmem [resolvable:$true] %s451_s1 }
  0x28   : > { %2128 = dma.hbm_to_vmem [thread:$0]  (!%p2756_p6), %s450_s4, 1024, %s452_s1, [#allocation9], %s2627_s14, %s2627_s14, %s2628_s13  }
  0x29   : > { %s2631_s12 = smov [#allocation11]   ;;  %s3095_s18 = sadd.s32 4294967294, %s2623_s16  }
  0x2a   : > { %s468_s22 = sshll.u32 %s2631_s12, 4  ;;  %s2781_s24 = sadd.s32 1, %s2623_s16   ;;  %s469_s22 = int_to_ptr.vmem [resolvable:$true] %s468_s22 }
  0x2b   : > { %s47_s25 = sadd.s32 1, %s2619_s15  ;;  %s44_s28 = ssub.s32 %s2623_s16, %s2781_s24 }
  0x2c   : > { %p54_p7 = scmp.ne.s32.totalorder %s2619_s15, %s2615_s30  ;;  %p45_p8 = scmp.eq.s32.totalorder %s44_s28, 0 }
  0x2d   : > { %s466_s17 = sshll.u32 %s3116_s8, 4  ;;  %p55_p9 = scmp.eq.s32.totalorder %s2623_s16, 0  ;;  %s467_s17 = int_to_ptr.hbm [resolvable:$true] %s466_s17 }
  0x2e   : > { %2131 = dma.hbm_to_vmem [thread:$0]  (!%p2756_p6), %s467_s17, 1024, %s469_s22, [#allocation12], %s2627_s14, %s2627_s14, %s2628_s13  }
  0x2f   : > { %p60_p10 = scmp.ne.s32.totalorder %s2615_s30, %s2611_s29  ;;  %p273_p11 = scmp.eq.s32.totalorder %s2739_s20, 1 }
  0x30   : > { %s2793_s4 = scalar_select %p45_p8, %s2619_s15, %s47_s25  }
  0x31   : > { %p2795_p12 = por %p55_p9, %p54_p7  ;;  %p2801_p13 = por %p61_p1, %p60_p10 }
  0x32   : > { %3117 = sst [smem:[#allocation27_spill]] %s2793_s4  ;;  %p2805_p0 = por %p273_p11, %p54_p7 }
  0x33   : > { %p279_p2 = scmp.eq.s32.totalorder %s3095_s18, 1  ;;  %p2157_p4 = scmp.lt.s32.totalorder %s2623_s16, 2 }
  0x34   : > { %s485_s27 = sand.u32 1, %s2619_s15   ;;  %s2026_s26 = sshll.u32 %s2623_s16, 5 }
  0x35   : > { %p2813_p6 = por %p279_p2, %p60_p10  ;;  %s1812_s23 = sshll.u32 %s485_s27, 5 }
  0x36   : > { %s3122_s0 = sld [smem:[#allocation28_spill]]  ;;  %s489_s28 = scalar_lea.vmem [#allocation2], %s1812_s23 }
  0x37   : > { %s497_s2 = sshll.u32 %s489_s28, 4  ;;  %p2823_p7 = pnand %p2157_p4, %p2795_p12  ;;  %s498_s2 = int_to_ptr.vmem [resolvable:$true] %s497_s2 }
  0x38   : > { %s486_s6 = scalar_lea.sflag [#allocation3], %s485_s27 }
  0x39   : > { %p2399_p9 = pneg %p2823_p7 }
  0x3c   : > { %s494_s22 = scalar_lea.hbm %s3122_s0, %s2026_s26  ;;  %s2402_s17 = scalar_lea.hbm %s3122_s0, 64 }
  0x3d   : > { %s495_s25 = sshll.u32 %s494_s22, 4  ;;  %s496_s25 = int_to_ptr.hbm [resolvable:$true] %s495_s25 }
  0x3e   : > { %s2395_s8 = sshra.s32 %s496_s25, 4  ;;  %s2396_s8 = int_to_ptr.hbm [resolvable:$true] %s2395_s8 }
  0x3f   : > { %s2397_s4 = scalar_lea.hbm %s2396_s8, 32  ;;  %p2403_p12 = scmp.lt.s32.totalorder %s2396_s8, %s3122_s0 }
  0x40   : > { %p2398_p8 = scmp.ne.s32.totalorder %s2396_s8, %s2397_s4  ;;  %p2404_p2 = scmp.lt.s32.totalorder %s2402_s17, %s2397_s4 }
  0x42   : > { %p2400_p10 = pnand %p2399_p9, %p2398_p8  ;;  %p2405_p4 = por %p2404_p2, %p2403_p12 }
  0x44   : > { %p2401_p11 = pneg %p2400_p10 }
  0x46   : > { %p2406_p5 = pnand %p2405_p4, %p2401_p11 }
  0x48   : > { %2409 = shalt.err (!%p2406_p5)
}
  0x49   : > { %s2632_s27 = smov 128   ;;  %s2633_s22 = smov 8  }
  0x4a   : > { %2135 = dma.hbm_to_vmem [thread:$0]  (!%p2823_p7), %s496_s25, 512, %s498_s2, %s486_s6, %s2632_s27, %s2632_s27, %s2633_s22  }
  0x4b   : > { %509 = sbr.rel (%p2744_p3) target bundleno = 1355 (0x54b), region = 60  ;;  %s2840_s28 = sand.u32 (!%p2744_p3), 1, %s2615_s30  }
  0x4c   : > { %s1816_s26 = sshll.u32 (!%p2744_p3), %s2840_s28, 5  ;;  %s512_s8 = scalar_lea.sflag (!%p2744_p3), [#allocation3], %s2840_s28 }
  0x4d   : > { %s2844_s4 = scalar_lea.vmem (!%p2744_p3), [#allocation2], %s1816_s26 }
  0x50   : > { %2582 = dma.done.wait (%p2801_p13), %s512_s8, 512  }
  0x51   : > { %2584 = vsyncadd (%p2801_p13), %s512_s8, 4294966784 }
  0x52   : > { %2586 = dma.done.wait (%p61_p1), [#allocation6], 2176  }
  0x53   : > { %2588 = vsyncadd (%p61_p1), [#allocation6], 4294965120 }
  0x54   : > { %2590 = dma.done.wait (%p61_p1), [#allocation9], 2048  }
  0x55   : > { %2592 = vsyncadd (%p61_p1), [#allocation9], 4294965248 }
  0x56   : > { %2594 = dma.done.wait (%p61_p1), [#allocation12], 1024  }
  0x57   : > { %2596 = vsyncadd (%p61_p1), [#allocation12], 4294966272  ;;  %v2038_v0 = vld [vmem:[#allocation7 + $0x38] sm:$0xff]  ;;  %v2037_v2 = vld [vmem:[#allocation7 + $0x30] sm:$0xff]  ;;  %s3124_s3 = sld [smem:[#allocation31_spill]]  ;;  %v894_v59 = vlaneseq  ;;  %s1826_s13 = sshll.u32 %s2840_s28, 4 }
  0x58   : > { %v2046_v1 = vld [vmem:[#allocation7 + $0x78] sm:$0xff]  ;;  %763 = vmatpush.bf16.msra.mxu0 %v2038_v0  ;;  %v2045_v3 = vld [vmem:[#allocation7 + $0x70] sm:$0xff]  ;;  %v2036_v4 = vld [vmem:[#allocation7 + $0x28] sm:$0xff]  ;;  %s3125_s5 = sld [smem:[#allocation33_spill]]  ;;  %s2890_s25 = scalar_lea.vmem [#allocation19], %s1826_s13  ;;  %vm1076_vm11 = vcmask 130048  }
  0x59   : > { %782 = vmatpush.bf16.msra.mxu1 %v2046_v1  ;;  %v2044_v5 = vld [vmem:[#allocation7 + $0x68] sm:$0xff]  ;;  %v2035_v6 = vld [vmem:[#allocation7 + $0x20] sm:$0xff]  ;;  %v2034_v8 = vld [vmem:[#allocation7 + $0x18] sm:$0xff]  ;;  %v895_v60 = vand.u32 127, %v894_v59  ;;  %s2909_s23 = sshll.u32 %s2840_s28, 1  ;;  %s2636_s12 = smov 127  }
  0x5a   : > { %v2043_v7 = vld [vmem:[#allocation7 + $0x60] sm:$0xff]  ;;  %v2042_v9 = vld [vmem:[#allocation7 + $0x58] sm:$0xff]  ;;  %v2033_v11 = vld [vmem:[#allocation7 + $0x10] sm:$0xff]  ;;  %s584_s17 = scalar_lea.vmem [#allocation14], %s2909_s23  ;;  %s2637_s19 = smov 1  }
  0x5b   : > { %v2054_v10 = vld [vmem:[#allocation8 + $0x38] sm:$0xff]  ;;  %v2041_v12 = vld [vmem:[#allocation7 + $0x50] sm:$0xff]  ;;  %v2032_v14 = vld [vmem:[#allocation7 + $0x8] sm:$0xff]  ;;  %vm896_vm0 = vcmp.lt.s32.totalorder %v895_v60, 2  ;;  %s2952_s2 = sshll.u32 %s2739_s20, 1  ;;  %s3097_s6 = sand.u32 1, %s2739_s20  }
  0x5c   : > { %764 = vmatpush.bf16.msra.mxu0 %v2037_v2  ;;  %875 = vmatpush.bf16.msra.mxu2 %v2054_v10  ;;  %v2053_v13 = vld [vmem:[#allocation8 + $0x30] sm:$0xff]  ;;  %v2040_v15 = vld [vmem:[#allocation7 + $0x48] sm:$0xff]  ;;  %v2031_v17 = vld [vmem:[#allocation7] sm:$0xff]  ;;  %s1510_s13 = scalar_lea.hbm %s3088_s11, %s2952_s2  ;;  %s2963_s27 = scalar_lea.sflag [#allocation15], %s3097_s6 }
  0x5d   : > { %783 = vmatpush.bf16.msra.mxu1 %v2045_v3  ;;  %v2052_v16 = vld [vmem:[#allocation8 + $0x28] sm:$0xff]  ;;  %v2039_v18 = vld [vmem:[#allocation7 + $0x40] sm:$0xff]  ;;  %v1829_v19 = vld [vmem:[%s2844_s4] sm:$0xf]  ;;  %s2445_s21 = scalar_lea.hbm %s3088_s11, 4 }
  0x5e   : > { %v2028_v20 = vld [vmem:[%s2844_s4 + $0x4] sm:$0xf0]  ;;  %v2027_v21 = vld [vmem:[%s2844_s4 + $0x4] sm:$0xf]  ;;  %v1831_v22 = vld [vmem:[%s2844_s4 + $0x8] sm:$0xf0] }
  0x5f   : > { %v2051_v23 = vld [vmem:[#allocation8 + $0x20] sm:$0xff]  ;;  %v1830_v24 = vor.u32 %v2028_v20, %v1829_v19  ;;  %v1834_v25 = vor.u32 %v2027_v21, %v1831_v22  ;;  %v1837_v26 = vld [vmem:[%s2844_s4 + $0x10] sm:$0xf]  ;;  %v2030_v27 = vld [vmem:[%s2844_s4 + $0x14] sm:$0xf0] }
  0x60   : > { %765 = vmatpush.bf16.msra.mxu0 %v2036_v4  ;;  %876 = vmatpush.bf16.msra.mxu2 %v2053_v13  ;;  %v2029_v28 = vld [vmem:[%s2844_s4 + $0x14] sm:$0xf]  ;;  %v1839_v29 = vld [vmem:[%s2844_s4 + $0x18] sm:$0xf0]  ;;  %v1838_v30 = vor.u32 %v2030_v27, %v1837_v26  ;;  %v2050_v32 = vld [vmem:[#allocation8 + $0x18] sm:$0xff]  ;;  %v2634_v26 = vmov 0  }
  0x61   : > { %784 = vmatpush.bf16.msra.mxu1 %v2044_v5  ;;  %v1842_v31 = vor.u32 %v2029_v28, %v1839_v29  ;;  %v2049_v33 = vld [vmem:[#allocation8 + $0x10] sm:$0xff]  ;;  %v2048_v34 = vld [vmem:[#allocation8 + $0x8] sm:$0xff]  ;;  %v2047_v35 = vld [vmem:[#allocation8] sm:$0xff]  ;;  %2211 = vset.pattern.permute.xlu2 %v2634_v26 }
  0x62   : > { %v2217_v38 = vld [vmem:[%s3124_s3] ss:$0 sm:$0xff]  ;;  %2212 = vset.pattern.permute.xlu0 %v2634_v26  ;;  %2213 = vset.pattern.permute.xlu1 %v2634_v26 }
  0x63   : > { %v2218_v61 = vld [vmem:[%s3125_s5] ss:$0 sm:$0xff] }
  0x64   : > { %766 = vmatpush.bf16.msra.mxu0 %v2035_v6  ;;  %877 = vmatpush.bf16.msra.mxu2 %v2052_v16  ;;  %v2055_v60 = vld [vmem:[#allocation5] sm:$0xff] }
  0x65   : > { %785 = vmatpush.bf16.msra.mxu1 %v2043_v7 }
  0x68   : > { %767 = vmatpush.bf16.msra.mxu0 %v2034_v8  ;;  %878 = vmatpush.bf16.msra.mxu2 %v2051_v23 }
  0x69   : > { %786 = vmatpush.bf16.msra.mxu1 %v2042_v9 }
  0x6c   : > { %768 = vmatpush.bf16.msra.mxu0 %v2033_v11  ;;  %879 = vmatpush.bf16.msra.mxu2 %v2050_v32 }
  0x6d   : > { %787 = vmatpush.bf16.msra.mxu1 %v2041_v12 }
  0x70   : > { %769 = vmatpush.bf16.msra.mxu0 %v2032_v14  ;;  %880 = vmatpush.bf16.msra.mxu2 %v2049_v33 }
  0x71   : > { %788 = vmatpush.bf16.msra.mxu1 %v2040_v15 }
  0x74   : > { %770 = vmatpush.bf16.msra.mxu0 %v2031_v17  ;;  %881 = vmatpush.bf16.msra.mxu2 %v2048_v34 }
  0x75   : > { %789 = vmatpush.bf16.msra.mxu1 %v2039_v18 }
  0x77   : > { %771 = vmatmul.bf16.vlgmr.msra.gmra.mxu0 %v1830_v24 }
  0x78   : > { %790 = vmatmul.bf16.vlgmr.msra.gmra.mxu1 %v1834_v25  ;;  %882 = vmatpush.bf16.msra.mxu2 %v2047_v35 }
  0x87   : > { %776 = vmatmul.bf16.gmra.mxu0 %v1838_v30 }
  0x88   : > { %795 = vmatmul.bf16.gmra.mxu1 %v1842_v31 }
  0xf4   : > { %v772_v36 = vpop.f32.mrf.mxu0 }
  0xf5   : > { %v791_v37 = vpop.f32.mrf.mxu1  ;;  %v773_v39 = vadd.f32 %v2217_v38, %v772_v36 }
  0xf7   : > { %v792_v42 = vadd.f32 %v791_v37, %v773_v39 }
  0xf9   : > { %v801_v45 = vmax.f32 %v792_v42, 0.0 }
  0xfc   : > { %v774_v40 = vpop.f32.mrf.mxu0 }
  0xfd   : > { %v793_v41 = vpop.f32.mrf.mxu1  ;;  %v775_v43 = vadd.f32 %v2217_v38, %v774_v40 }
  0xff   : > { %v794_v44 = vadd.f32 %v793_v41, %v775_v43 }
 0x101   : > { %v802_v46 = vmax.f32 %v794_v44, 0.0 }
 0x103   : > { %v805_v47 = vpack.c.bf16 %v802_v46, %v801_v45 }
 0x104   : > { %v777_v48 = vpop.f32.mrf.mxu0 }
 0x105   : > { %v796_v49 = vpop.f32.mrf.mxu1  ;;  %883 = vmatmul.bf16.vlgmr.msra.gmra.mxu2 %v805_v47  ;;  %v778_v50 = vadd.f32 %v2217_v38, %v777_v48 }
 0x107   : > { %v797_v52 = vadd.f32 %v796_v49, %v778_v50 }
 0x109   : > { %v803_v56 = vmax.f32 %v797_v52, 0.0 }
 0x10c   : > { %v779_v51 = vpop.f32.mrf.mxu0 }
 0x10d   : > { %v780_v53 = vadd.f32 %v2217_v38, %v779_v51  ;;  %v798_v54 = vpop.f32.mrf.mxu1 }
 0x10f   : > { %v799_v55 = vadd.f32 %v798_v54, %v780_v53 }
 0x111   : > { %v804_v57 = vmax.f32 %v799_v55, 0.0 }
 0x113   : > { %v806_v58 = vpack.c.bf16 %v804_v57, %v803_v56 }
 0x115   : > { %888 = vmatmul.bf16.gmra.mxu2 %v806_v58 }
 0x188   : > { %v884_v62 = vpop.f32.mrf.mxu2 }
 0x189   : > { %v885_v63 = vadd.f32 %v2218_v61, %v884_v62 }
 0x18b   : > { %v897_v0 = vsel %vm896_vm0, %v885_v63, -1e+30 }
 0x18c   : > { %901 = vmax.xlane.f32.xlu0 %v897_v0 }
 0x190   : > { %v886_v1 = vpop.f32.mrf.mxu2 }
 0x191   : > { %v887_v2 = vadd.f32 %v2218_v61, %v886_v1 }
 0x193   : > { %v898_v3 = vsel %vm896_vm0, %v887_v2, -1e+30 }
 0x194   : > { %903 = vmax.xlane.f32.xlu0 %v898_v3 }
 0x198   : > { %v889_v4 = vpop.f32.mrf.mxu2 }
 0x199   : > { %v890_v5 = vadd.f32 %v2218_v61, %v889_v4 }
 0x19b   : > { %v899_v6 = vsel %vm896_vm0, %v890_v5, -1e+30 }
 0x19c   : > { %905 = vmax.xlane.f32.xlu1 %v899_v6 }
 0x1a0   : > { %v891_v7 = vpop.f32.mrf.mxu2 }
 0x1a1   : > { %v892_v8 = vadd.f32 %v2218_v61, %v891_v7 }
 0x1a3   : > { %v900_v9 = vsel %vm896_vm0, %v892_v8, -1e+30 }
 0x1a4   : > { %907 = vmax.xlane.f32.xlu1 %v900_v9 }
 0x1ff   : > { %v902_v10 = vpop.xlane.xlu0 %901 }
 0x200   : > { %v909_v11 = vsub.f32 %v897_v0, %v902_v10 }
 0x202   : > { %v913_v12 = vmul.f32 1.442695, %v909_v11 }
 0x204   : > { %2221 = vpow2.f32 %v913_v12 }
 0x207   : > { %v904_v13 = vpop.xlane.xlu0 %903 }
 0x208   : > { %v910_v14 = vsub.f32 %v898_v3, %v904_v13  ;;  %v2635_v13 = vmov 1  }
 0x20a   : > { %v2222_v15 = vpop.eup %2221  ;;  %v915_v16 = vmul.f32 1.442695, %v910_v14 }
 0x20b   : > { %921 = vadd.xlane.f32.xlu2 %v2222_v15 }
 0x20c   : > { %2223 = vpow2.f32 %v915_v16  ;;  %v2062_v16 = vld [vmem:[#allocation10 + $0x30] sm:$0xff] }
 0x20f   : > { %v906_v17 = vpop.xlane.xlu1 %905 }
 0x210   : > { %v911_v18 = vsub.f32 %v899_v6, %v906_v17  ;;  %v2061_v17 = vld [vmem:[#allocation10 + $0x28] sm:$0xff] }
 0x212   : > { %v2224_v19 = vpop.eup %2223  ;;  %v917_v20 = vmul.f32 1.442695, %v911_v18  ;;  %v607_v18 = vld [vmem:[%s2844_s4] sm:$0xf] }
 0x213   : > { %923 = vadd.xlane.f32.xlu2 %v2224_v19 }
 0x214   : > { %2225 = vpow2.f32 %v917_v20  ;;  %v610_v20 = vld [vmem:[%s2844_s4 + $0x18] sm:$0xf] }
 0x217   : > { %v908_v21 = vpop.xlane.xlu1 %907 }
 0x218   : > { %v912_v22 = vsub.f32 %v900_v9, %v908_v21  ;;  %v609_v21 = vld [vmem:[%s2844_s4 + $0x10] sm:$0xf] }
 0x21a   : > { %v2876_v23 = vpop.eup %2225  ;;  %v919_v24 = vmul.f32 1.442695, %v912_v22  ;;  %v2060_v22 = vld [vmem:[#allocation10 + $0x20] sm:$0xff] }
 0x21b   : > { %925 = vadd.xlane.f32.xlu0 %v2876_v23 }
 0x21c   : > { %2227 = vpow2.f32 %v919_v24 }
 0x222   : > { %v2879_v25 = vpop.eup %2227 }
 0x223   : > { %927 = vadd.xlane.f32.xlu1 %v2879_v25 }
 0x27e   : > { %v922_v27 = vpop.xlane.xlu2 %921 }
 0x27f   : > { %2229 = vrcp.f32 %v922_v27  ;;  %v940_v32 = vand.u32 2147483648, %v922_v27  ;;  %v938_v34 = vand.u32 2147483647, %v922_v27  ;;  %vm934_vm2 = vweird.f32 %v922_v27 }
 0x281   : > { %v941_v37 = vor.u32 1.1754944e-38, %v940_v32  ;;  %vm939_vm4 = vcmp.eq.f32.partialorder %v938_v34, 8.507059e+37 }
 0x285   : > { %v2230_v28 = vpop.eup %2229 }
 0x286   : > { %v930_v29 = vmul.f32 %v2230_v28, %v922_v27  ;;  %v924_v30 = vpop.xlane.xlu2 %923  ;;  %vm935_vm1 = vweird.f32 %v2230_v28 }
 0x287   : > { %2231 = vrcp.f32 %v924_v30  ;;  %vm936_vm3 = vmor %vm934_vm2, %vm935_vm1  ;;  %v955_v44 = vand.u32 2147483648, %v924_v30  ;;  %v953_v46 = vand.u32 2147483647, %v924_v30  ;;  %vm949_vm6 = vweird.f32 %v924_v30 }
 0x288   : > { %v931_v31 = vsub.f32 1.0, %v930_v29  ;;  %v2059_v29 = vld [vmem:[#allocation10 + $0x18] sm:$0xff]  ;;  %vm1059_vm2 = vcmask 1041409  }
 0x289   : > { %v956_v49 = vor.u32 1.1754944e-38, %v955_v44  ;;  %vm954_vm8 = vcmp.eq.f32.partialorder %v953_v46, 8.507059e+37 }
 0x28a   : > { %v932_v33 = vmul.f32 %v2230_v28, %v931_v31  ;;  %v2057_v31 = vld [vmem:[#allocation10 + $0x8] sm:$0xff] }
 0x28c   : > { %v933_v35 = vadd.f32 %v2230_v28, %v932_v33  ;;  %v2056_v33 = vld [vmem:[#allocation10] sm:$0xff] }
 0x28d   : > { %v2232_v36 = vpop.eup %2231 }
 0x28e   : > { %v945_v38 = vmul.f32 %v2232_v36, %v924_v30  ;;  %v926_v39 = vpop.xlane.xlu0 %925  ;;  %v937_v40 = vsel %vm936_vm3, %v2230_v28, %v933_v35  ;;  %vm950_vm5 = vweird.f32 %v2232_v36  ;;  %v999_v28 = vunpack.c.l.bf16 %v609_v21  ;;  %v2058_v30 = vld [vmem:[#allocation10 + $0x10] sm:$0xff] }
 0x28f   : > { %2233 = vrcp.f32 %v926_v39  ;;  %v942_v41 = vsel %vm939_vm4, %v941_v37, %v937_v40  ;;  %vm951_vm7 = vmor %vm949_vm6, %vm950_vm5  ;;  %v970_v56 = vand.u32 2147483648, %v926_v39  ;;  %v968_v59 = vand.u32 2147483647, %v926_v39 }
 0x290   : > { %v946_v42 = vsub.f32 1.0, %v945_v38  ;;  %v2885_v43 = vmul.f32 %v2222_v15, %v942_v41  ;;  %vm964_vm10 = vweird.f32 %v926_v39  ;;  %v2063_v15 = vld [vmem:[#allocation10 + $0x38] sm:$0xff] }
 0x291   : > { %v971_v63 = vor.u32 1.1754944e-38, %v970_v56  ;;  %vm969_vm13 = vcmp.eq.f32.partialorder %v968_v59, 8.507059e+37 }
 0x292   : > { %v947_v45 = vmul.f32 %v2232_v36, %v946_v42  ;;  %1003 = vperm.xlu2 %2211, %v2885_v43  }
 0x294   : > { %v948_v47 = vadd.f32 %v2232_v36, %v947_v45 }
 0x295   : > { %v2234_v48 = vpop.eup %2233 }
 0x296   : > { %v960_v50 = vmul.f32 %v2234_v48, %v926_v39  ;;  %v928_v51 = vpop.xlane.xlu1 %927  ;;  %v952_v52 = vsel %vm951_vm7, %v2232_v36, %v948_v47  ;;  %vm965_vm9 = vweird.f32 %v2234_v48 }
 0x297   : > { %2235 = vrcp.f32 %v928_v51  ;;  %v957_v53 = vsel %vm954_vm8, %v956_v49, %v952_v52  ;;  %vm966_vm12 = vmor %vm964_vm10, %vm965_vm9  ;;  %v985_v5 = vand.u32 2147483648, %v928_v51  ;;  %v983_v7 = vand.u32 2147483647, %v928_v51 }
 0x298   : > { %v961_v54 = vsub.f32 1.0, %v960_v50  ;;  %v958_v55 = vmul.f32 %v2224_v19, %v957_v53  ;;  %vm979_vm15 = vweird.f32 %v928_v51  ;;  %v608_v19 = vld [vmem:[%s2844_s4 + $0x8] sm:$0xf]  ;;  %s3096_s4 = scalar_lea.vmem [#allocation13], %s2909_s23 }
 0x299   : > { %v986_v9 = vor.u32 1.1754944e-38, %v985_v5  ;;  %vm984_vm1 = vcmp.eq.f32.partialorder %v983_v7, 8.507059e+37  ;;  %v998_v24 = vunpack.c.l.bf16 %v608_v19 }
 0x29a   : > { %v962_v57 = vmul.f32 %v2234_v48, %v961_v54  ;;  %1008 = vperm.xlu0 %2212, %v958_v55   ;;  %v2076_v58 = vpack.c.bf16 %v958_v55, %v2885_v43 }
 0x29c   : > { %2077 = vst [vmem:[%s2890_s25] sm:$0xff] %v2076_v58   ;;  %1087 = vmatpush.bf16.msra.mxu3 %v2076_v58  ;;  %v963_v61 = vadd.f32 %v2234_v48, %v962_v57 }
 0x29d   : > { %v2236_v62 = vpop.eup %2235 }
 0x29e   : > { %v975_v0 = vmul.f32 %v2236_v62, %v928_v51  ;;  %v967_v1 = vsel %vm966_vm12, %v2234_v48, %v963_v61  ;;  %vm980_vm14 = vweird.f32 %v2236_v62 }
 0x29f   : > { %1943 = vmatmul.msk.bf16.vlgmr.msra.gmra.mxu3 %vm1076_vm11, %v2055_v60  ;;  %v972_v2 = vsel %vm969_vm13, %v971_v63, %v967_v1  ;;  %vm981_vm0 = vmor %vm979_vm15, %vm980_vm14 }
 0x2a0   : > { %v976_v3 = vsub.f32 1.0, %v975_v0  ;;  %v973_v4 = vmul.f32 %v2876_v23, %v972_v2  ;;  %v997_v23 = vunpack.c.l.bf16 %v607_v18 }
 0x2a2   : > { %v977_v6 = vmul.f32 %v2236_v62, %v976_v3  ;;  %1013 = vperm.xlu1 %2213, %v973_v4   ;;  %v2904_v27 = vadd.f32 %v998_v24, %v997_v23 }
 0x2a4   : > { %v978_v8 = vadd.f32 %v2236_v62, %v977_v6 }
 0x2a6   : > { %v982_v10 = vsel %vm981_vm0, %v2236_v62, %v978_v8 }
 0x2a7   : > { %v987_v11 = vsel %vm984_vm1, %v986_v9, %v982_v10 }
 0x2a8   : > { %v988_v12 = vmul.f32 %v2879_v25, %v987_v11  ;;  %v1000_v25 = vunpack.c.l.bf16 %v610_v20 }
 0x2aa   : > { %1018 = vperm.xlu2 %2211, %v988_v12   ;;  %2215 = vset.pattern.permute.xlu1 %v2635_v13  ;;  %v2081_v14 = vpack.c.bf16 %v988_v12, %v973_v4 }
 0x2ab   : > { %1212 = vperm.xlu1 %2215, %v988_v12  }
 0x2ac   : > { %2083 = vst [vmem:[%s2890_s25 + $0x8] sm:$0xff] %v2081_v14   ;;  %1191 = vmatpush.bf16.msrb.mxu3 %v2081_v14 }
 0x2af   : > { %1946 = vmatmul.msk.bf16.vlgmr.msrb.gmra.mxu3 %vm1076_vm11, %v2055_v60 }
 0x2b0   : > { %1368 = vmatpush.bf16.msra.mxu3 %v2063_v15 }
 0x2b2   : > { %2214 = vset.pattern.permute.xlu2 %v2635_v13 }
 0x2b3   : > { %1208 = vperm.xlu2 %2214, %v973_v4   ;;  %1108 = vperm.xlu1 %2215, %v958_v55  }
 0x2b4   : > { %1369 = vmatpush.bf16.msra.mxu3 %v2062_v16 }
 0x2b8   : > { %1370 = vmatpush.bf16.msra.mxu3 %v2061_v17 }
 0x2bb   : > { %1104 = vperm.xlu2 %2214, %v2885_v43   ;;  %2216 = vset.pattern.permute.xlu1 %v2634_v26  ;;  %v2906_v26 = vadd.f32 %v1000_v25, %v999_v28 }
 0x2bc   : > { %1371 = vmatpush.bf16.msra.mxu3 %v2060_v22 }
 0x2c0   : > { %1372 = vmatpush.bf16.msra.mxu3 %v2059_v29 }
 0x2c4   : > { %1373 = vmatpush.bf16.msra.mxu3 %v2058_v30 }
 0x2c8   : > { %1374 = vmatpush.bf16.msra.mxu3 %v2057_v31 }
 0x2cc   : > { %1375 = vmatpush.bf16.msra.mxu3 %v2056_v33 }
 0x2ec   : > { %v1004_v32 = vpop.permute.xlu2 %1003 }
 0x2ed   : > { %v1021_v35 = vmul.f32 %v1004_v32, %v997_v23 }
 0x304   : > { %v1019_v39 = vpop.permute.xlu2 %1018 }
 0x305   : > { %v1024_v42 = vmul.f32 %v1019_v39, %v1000_v25 }
 0x30c   : > { %v1009_v34 = vpop.permute.xlu0 %1008 }
 0x30d   : > { %v1022_v36 = vmul.f32 %v1009_v34, %v998_v24  ;;  %v1209_v52 = vpop.permute.xlu2 %1208 }
 0x30f   : > { %v1025_v37 = vadd.f32 %v1022_v36, %v1021_v35 }
 0x311   : > { %v1026_v38 = vrot.slane %v1025_v37, 4 }
 0x313   : > { %v1027_v40 = vadd.f32 %v1026_v38, %v1025_v37 }
 0x314   : > { %v1014_v41 = vpop.permute.xlu1 %1013 }
 0x315   : > { %v1028_v43 = vrot.slane %v1027_v40, 2  ;;  %v1023_v44 = vmul.f32 %v1014_v41, %v999_v28  ;;  %v1105_v0 = vpop.permute.xlu2 %1104 }
 0x317   : > { %v1029_v45 = vadd.f32 %v1028_v43, %v1027_v40  ;;  %v1032_v46 = vadd.f32 %v1024_v42, %v1023_v44  ;;  %v2071_v43 = vld [vmem:[#allocation11 + $0x38] sm:$0xff]  ;;  %v2070_v44 = vld [vmem:[#allocation11 + $0x30] sm:$0xff] }
 0x318   : > { %1451 = vmatpush.bf16.msrb.mxu0 %v2071_v43 }
 0x319   : > { %v1030_v47 = vrot.slane %v1029_v45, 1  ;;  %v1033_v48 = vrot.slane %v1032_v46, 4 }
 0x31b   : > { %v1034_v49 = vadd.f32 %v1033_v48, %v1032_v46  ;;  %v1031_v50 = vadd.f32 %v1030_v47, %v1029_v45  ;;  %v2069_v45 = vld [vmem:[#allocation11 + $0x28] sm:$0xff]  ;;  %v2068_v46 = vld [vmem:[#allocation11 + $0x20] sm:$0xff]  ;;  %v2067_v47 = vld [vmem:[#allocation11 + $0x18] sm:$0xff] }
 0x31c   : > { %1452 = vmatpush.bf16.msrb.mxu0 %v2070_v44  ;;  %v2066_v48 = vld [vmem:[#allocation11 + $0x10] sm:$0xff] }
 0x31d   : > { %v1035_v51 = vrot.slane %v1034_v49, 2  ;;  %v1213_v54 = vpop.permute.xlu1 %1212  ;;  %v1039_v55 = vmul.f32 0.0625, %v1031_v50  ;;  %v2064_v50 = vld [vmem:[#allocation11] sm:$0xff] }
 0x31f   : > { %v1036_v53 = vadd.f32 %v1035_v51, %v1034_v49  ;;  %v1291_v60 = vpack.c.bf16 %v1039_v55, %v1039_v55  ;;  %v2065_v49 = vld [vmem:[#allocation11 + $0x8] sm:$0xff] }
 0x320   : > { %1453 = vmatpush.bf16.msrb.mxu0 %v2069_v45 }
 0x321   : > { %v1037_v56 = vrot.slane %v1036_v53, 1  ;;  %v1315_v1 = vunpack.c.l.b16 %v1291_v60 }
 0x322   : > { %v1089_v57 = vpop.f32.mrf.mxu3 }
 0x323   : > { %v1038_v58 = vadd.f32 %v1037_v56, %v1036_v53  ;;  %v1094_v59 = vmul.f32 %v1089_v57, %v1004_v32  ;;  %v1111_v5 = vmul.f32 %v1105_v0, %v1089_v57 }
 0x324   : > { %1454 = vmatpush.bf16.msrb.mxu0 %v2068_v46 }
 0x325   : > { %v1040_v61 = vmul.f32 0.0625, %v1038_v58  ;;  %v1109_v3 = vpop.permute.xlu1 %1108 }
 0x327   : > { %v1292_v62 = vpack.c.bf16 %v1040_v61, %v1040_v61  ;;  %v1060_v63 = vsel %vm1059_vm2, %v1040_v61, %v1039_v55 }
 0x328   : > { %1062 = vst [vmem:[%s584_s17] sm:$0x3] %v1060_v63  ;;  %1455 = vmatpush.bf16.msrb.mxu0 %v2067_v47 }
 0x329   : > { %v1316_v2 = vunpack.c.l.b16 %v1292_v62 }
 0x32a   : > { %v1091_v4 = vpop.f32.mrf.mxu3 }
 0x32b   : > { %v1095_v6 = vmul.f32 %v1091_v4, %v1009_v34  ;;  %v1112_v7 = vmul.f32 %v1109_v3, %v1091_v4  ;;  %v1317_v8 = vsel %vm1059_vm2, %v1316_v2, %v1315_v1 }
 0x32c   : > { %v1318_v9 = vpack.c.b16 %v1317_v8, %v1317_v8  ;;  %1456 = vmatpush.bf16.msrb.mxu0 %v2066_v48 }
 0x32d   : > { %v1096_v10 = vadd.f32 %v1095_v6, %v1094_v59  ;;  %v1113_v11 = vadd.f32 %v1112_v7, %v1111_v5 }
 0x32e   : > { %1376 = vmatmul.bf16.vlgmr.msra.gmra.mxu3 %v1318_v9 }
 0x32f   : > { %v1114_v12 = vrot.slane %v1113_v11, 4  ;;  %v1097_v56 = vrot.slane %v1096_v10, 4 }
 0x330   : > { %1457 = vmatpush.bf16.msrb.mxu0 %v2065_v49 }
 0x331   : > { %v1115_v13 = vadd.f32 %v1114_v12, %v1113_v11  ;;  %v1098_v59 = vadd.f32 %v1097_v56, %v1096_v10 }
 0x332   : > { %v1193_v14 = vpop.f32.mrf.mxu3 }
 0x333   : > { %v1116_v15 = vrot.slane %v1115_v13, 2  ;;  %v1198_v19 = vmul.f32 %v1193_v14, %v1014_v41  ;;  %v1215_v21 = vmul.f32 %v1209_v52, %v1193_v14  ;;  %v1099_v62 = vrot.slane %v1098_v59, 2 }
 0x334   : > { %1458 = vmatpush.bf16.msrb.mxu0 %v2064_v50 }
 0x335   : > { %v1117_v16 = vadd.f32 %v1116_v15, %v1115_v13  ;;  %v1100_v63 = vadd.f32 %v1099_v62, %v1098_v59 }
 0x337   : > { %v1118_v17 = vrot.slane %v1117_v16, 1  ;;  %v1101_v3 = vrot.slane %v1100_v63, 1 }
 0x339   : > { %v2916_v18 = vadd.f32 %v1118_v17, %v1117_v16  ;;  %v2933_v4 = vadd.f32 %v1101_v3, %v1100_v63 }
 0x33a   : > { %v1195_v20 = vpop.f32.mrf.mxu3 }
 0x33b   : > { %v1199_v22 = vmul.f32 %v1195_v20, %v1019_v39  ;;  %v1216_v23 = vmul.f32 %v1213_v54, %v1195_v20  ;;  %v1127_v24 = vand.u32 2147483647, %v2916_v18  ;;  %v2219_v54 = vld [vmem:[%s3084_s7] ss:$0 sm:$0xff]  ;;  %v1120_v5 = vand.u32 2147483647, %v2933_v4 }
 0x33d   : > { %v1200_v25 = vadd.f32 %v1199_v22, %v1198_v19  ;;  %v1217_v28 = vadd.f32 %v1216_v23, %v1215_v21  ;;  %1129 = vrot.lane.b32.xlu2 %v1127_v24, %s2636_s12  ;;  %v2220_v21 = vld [vmem:[%s3086_s9] ss:$0 sm:$0xff] }
 0x33f   : > { %v1201_v29 = vrot.slane %v1200_v25, 4  ;;  %v1218_v30 = vrot.slane %v1217_v28, 4 }
 0x341   : > { %v1202_v31 = vadd.f32 %v1201_v29, %v1200_v25  ;;  %v1219_v32 = vadd.f32 %v1218_v30, %v1217_v28 }
 0x343   : > { %v1203_v33 = vrot.slane %v1202_v31, 2  ;;  %v1220_v34 = vrot.slane %v1219_v32, 2 }
 0x345   : > { %v1204_v35 = vadd.f32 %v1203_v33, %v1202_v31  ;;  %v1221_v36 = vadd.f32 %v1220_v34, %v1219_v32 }
 0x347   : > { %v1222_v37 = vrot.slane %v1221_v36, 1  ;;  %v1205_v38 = vrot.slane %v1204_v35, 1 }
 0x349   : > { %v2920_v40 = vadd.f32 %v1222_v37, %v1221_v36  ;;  %v2922_v39 = vadd.f32 %v1205_v38, %v1204_v35 }
 0x34b   : > { %v1231_v41 = vand.u32 2147483647, %v2920_v40  ;;  %v1224_v42 = vand.u32 2147483647, %v2922_v39 }
 0x34d   : > { %1233 = vrot.lane.b32.xlu0 %v1231_v41, %s2636_s12  ;;  %1226 = vrot.lane.b32.xlu2 %v1224_v42, %s2636_s12 }
 0x397   : > { %v1130_v51 = vpop.permute.xlu2 %1129 }
 0x398   : > { %v1132_v52 = vadd.f32 %v1130_v51, %v1127_v24 }
 0x39a   : > { %v1133_v53 = vmax.f32 %v1132_v52, 1e-05 }
 0x39c   : > { %1150 = vrot.lane.b32.xlu0 %v1133_v53, %s2637_s19 }
 0x3a7   : > { %v1227_v56 = vpop.permute.xlu2 %1226 }
 0x3a8   : > { %v1229_v62 = vadd.f32 %v1227_v56, %v1224_v42 }
 0x3aa   : > { %v1230_v63 = vmax.f32 %v1229_v62, 1e-05 }
 0x3ac   : > { %vm1243_vm0 = vweird.f32 %v1230_v63 }
 0x3b1   : > { %v1377_v55 = vpop.f32.mrf.mxu3 }
 0x3b2   : > { %v1378_v57 = vadd.f32 %v2219_v54, %v1377_v55 }
 0x3b4   : > { %v1381_v58 = vmax.f32 %v1378_v57, 0.0 }
 0x3b6   : > { %v1382_v60 = vpack.c.bf16 %v1381_v58, %v1381_v58 }
 0x3b8   : > { %1459 = vmatmul.bf16.vlgmr.msrb.gmra.mxu0 %v1382_v60 }
 0x3b9   : > { %v1379_v61 = vpop.f32.mrf.mxu3 }
 0x3bf   : > { %v1234_v0 = vpop.permute.xlu0 %1233 }
 0x3c0   : > { %v1236_v1 = vadd.f32 %v1234_v0, %v1231_v41 }
 0x3c2   : > { %v1237_v2 = vmax.f32 %v1236_v1, 1e-05 }
 0x3c4   : > { %1254 = vrot.lane.b32.xlu1 %v1237_v2, %s2637_s19  ;;  %s1514_s19 = sshll.u32 %s1510_s13, 4  ;;  %s1515_s19 = int_to_ptr.hbm [resolvable:$true] %s1514_s19 }
 0x3c5   : > { %s2439_s22 = sshra.s32 %s1515_s19, 4  ;;  %s2440_s22 = int_to_ptr.hbm [resolvable:$true] %s2439_s22 }
 0x3c6   : > { %s2441_s26 = scalar_lea.hbm %s2440_s22, 2  ;;  %p2446_p13 = scmp.lt.s32.totalorder %s2440_s22, %s3088_s11 }
 0x3c7   : > { %p2442_p1 = scmp.ne.s32.totalorder %s2440_s22, %s2441_s26  ;;  %p2447_p7 = scmp.lt.s32.totalorder %s2445_s21, %s2441_s26 }
 0x3c9   : > { %p2443_p3 = pnand %p2442_p1, %p2805_p0  ;;  %p2448_p8 = por %p2447_p7, %p2446_p13 }
 0x3cb   : > { %p2444_p5 = pneg %p2443_p3 }
 0x3cc   : > { %1122 = vrot.lane.b32.xlu1 %v1120_v5, %s2636_s12 }
 0x3cd   : > { %p2449_p9 = pnand %p2448_p8, %p2444_p5 }
 0x40e   : > { %v1151_v6 = vpop.permute.xlu0 %1150 }
 0x40f   : > { %2237 = vrcp.f32 %v1151_v6  ;;  %v1164_v10 = vand.u32 2147483648, %v1151_v6  ;;  %v1162_v12 = vand.u32 2147483647, %v1151_v6  ;;  %vm1158_vm4 = vweird.f32 %v1151_v6 }
 0x411   : > { %v1165_v14 = vor.u32 1.1754944e-38, %v1164_v10  ;;  %vm1163_vm6 = vcmp.eq.f32.partialorder %v1162_v12, 8.507059e+37 }
 0x415   : > { %v2238_v7 = vpop.eup %2237 }
 0x416   : > { %v1154_v8 = vmul.f32 %v2238_v7, %v1151_v6  ;;  %vm1159_vm3 = vweird.f32 %v2238_v7  ;;  %v1247_v6 = vand.u32 2147483647, %v1230_v63 }
 0x417   : > { %vm1160_vm5 = vmor %vm1158_vm4, %vm1159_vm3 }
 0x418   : > { %v1155_v9 = vsub.f32 1.0, %v1154_v8  ;;  %vm1248_vm3 = vcmp.eq.f32.partialorder %v1247_v6, 8.507059e+37 }
 0x41a   : > { %v1156_v11 = vmul.f32 %v2238_v7, %v1155_v9 }
 0x41c   : > { %v1157_v13 = vadd.f32 %v2238_v7, %v1156_v11 }
 0x41e   : > { %v1161_v15 = vsel %vm1160_vm5, %v2238_v7, %v1157_v13 }
 0x41f   : > { %v1166_v16 = vsel %vm1163_vm6, %v1165_v14, %v1161_v15 }
 0x420   : > { %v1167_v17 = vmul.f32 %v1166_v16, %v2916_v18 }
 0x422   : > { %v1945_v19 = vadd.f32 -1.0, %v1167_v17 }
 0x424   : > { %v1171_v20 = vmul.f32 %v1945_v19, %v1945_v19 }
 0x426   : > { %1173 = vrot.lane.b32.xlu2 %v1171_v20, %s2636_s12 }
 0x435   : > { %v1460_v22 = vpop.f32.mrf.mxu0 }
 0x436   : > { %v1461_v23 = vadd.f32 %v2220_v21, %v1460_v22  ;;  %v1255_v24 = vpop.permute.xlu1 %1254 }
 0x437   : > { %2239 = vrcp.f32 %v1255_v24  ;;  %v1268_v18 = vand.u32 2147483648, %v1255_v24  ;;  %v1266_v32 = vand.u32 2147483647, %v1255_v24  ;;  %vm1262_vm8 = vweird.f32 %v1255_v24 }
 0x438   : > { %1464 = vst [vmem:[%s3096_s4] sm:$0x3] %v1461_v23 }
 0x439   : > { %v1269_v34 = vor.u32 1.1754944e-38, %v1268_v18  ;;  %vm1267_vm10 = vcmp.eq.f32.partialorder %v1266_v32, 8.507059e+37 }
 0x43d   : > { %v2240_v25 = vpop.eup %2239  ;;  %v1462_v28 = vpop.f32.mrf.mxu0 }
 0x43e   : > { %v1258_v29 = vmul.f32 %v2240_v25, %v1255_v24  ;;  %vm1263_vm7 = vweird.f32 %v2240_v25  ;;  %v1123_v43 = vpop.permute.xlu1 %1122 }
 0x43f   : > { %vm1264_vm9 = vmor %vm1262_vm8, %vm1263_vm7  ;;  %v1125_v44 = vadd.f32 %v1123_v43, %v1120_v5  ;;  %v1249_v5 = vand.u32 2147483648, %v1230_v63 }
 0x440   : > { %v1259_v30 = vsub.f32 1.0, %v1258_v29 }
 0x441   : > { %v1126_v45 = vmax.f32 %v1125_v44, 1e-05  ;;  %v1250_v8 = vor.u32 1.1754944e-38, %v1249_v5 }
 0x442   : > { %v1260_v31 = vmul.f32 %v2240_v25, %v1259_v30 }
 0x443   : > { %2241 = vrcp.f32 %v1126_v45  ;;  %v1145_v51 = vand.u32 2147483648, %v1126_v45  ;;  %vm1139_vm12 = vweird.f32 %v1126_v45  ;;  %v1143_v52 = vand.u32 2147483647, %v1126_v45 }
 0x444   : > { %v1261_v33 = vadd.f32 %v2240_v25, %v1260_v31  ;;  %2243 = vrcp.f32 %v1230_v63 }
 0x445   : > { %vm1144_vm14 = vcmp.eq.f32.partialorder %v1143_v52, 8.507059e+37 }
 0x446   : > { %v1265_v35 = vsel %vm1264_vm9, %v2240_v25, %v1261_v33 }
 0x447   : > { %v1270_v36 = vsel %vm1267_vm10, %v1269_v34, %v1265_v35 }
 0x448   : > { %v1271_v37 = vmul.f32 %v1270_v36, %v2920_v40  ;;  %v1146_v40 = vor.u32 1.1754944e-38, %v1145_v51 }
 0x449   : > { %v2242_v46 = vpop.eup %2241 }
 0x44a   : > { %v1948_v38 = vadd.f32 -1.0, %v1271_v37  ;;  %v1135_v47 = vmul.f32 %v2242_v46, %v1126_v45  ;;  %vm1140_vm11 = vweird.f32 %v2242_v46  ;;  %v2244_v0 = vpop.eup %2243 }
 0x44b   : > { %vm1141_vm13 = vmor %vm1139_vm12, %vm1140_vm11  ;;  %v1239_v1 = vmul.f32 %v2244_v0, %v1230_v63  ;;  %vm1244_vm15 = vweird.f32 %v2244_v0 }
 0x44c   : > { %v1275_v41 = vmul.f32 %v1948_v38, %v1948_v38  ;;  %v1136_v48 = vsub.f32 1.0, %v1135_v47  ;;  %vm1245_vm1 = vmor %vm1243_vm0, %vm1244_vm15 }
 0x44d   : > { %v1240_v2 = vsub.f32 1.0, %v1239_v1 }
 0x44e   : > { %1277 = vrot.lane.b32.xlu0 %v1275_v41, %s2636_s12  ;;  %v1137_v49 = vmul.f32 %v2242_v46, %v1136_v48  ;;  %s1512_s12 = sshll.u32 %s584_s17, 4  ;;  %s1513_s12 = int_to_ptr.vmem [resolvable:$true] %s1512_s12 }
 0x44f   : > { %v1241_v3 = vmul.f32 %v2244_v0, %v1240_v2 }
 0x450   : > { %v1138_v50 = vadd.f32 %v2242_v46, %v1137_v49 }
 0x452   : > { %v1142_v53 = vsel %vm1141_vm13, %v2242_v46, %v1138_v50 }
 0x453   : > { %v1147_v54 = vsel %vm1144_vm14, %v1146_v40, %v1142_v53 }
 0x454   : > { %v1148_v55 = vmul.f32 %v1147_v54, %v2933_v4  ;;  %v1242_v4 = vadd.f32 %v2244_v0, %v1241_v3 }
 0x456   : > { %v1944_v57 = vadd.f32 -1.0, %v1148_v55  ;;  %v1246_v7 = vsel %vm1245_vm1, %v2244_v0, %v1242_v4 }
 0x457   : > { %v1251_v42 = vsel %vm1248_vm3, %v1250_v8, %v1246_v7 }
 0x458   : > { %v1169_v58 = vmul.f32 %v1944_v57, %v1944_v57  ;;  %v1252_v9 = vmul.f32 %v1251_v42, %v2922_v39 }
 0x45a   : > { %v1947_v10 = vadd.f32 -1.0, %v1252_v9 }
 0x480   : > { %v1174_v59 = vpop.permute.xlu2 %1173 }
 0x481   : > { %v1176_v60 = vadd.f32 %v1174_v59, %v1169_v58 }
 0x483   : > { %v1177_v61 = vmul.f32 0.5, %v1176_v60 }
 0x485   : > { %1180 = vperm.xlu0 %2212, %v1177_v61  }
 0x486   : > { %2452 = shalt.err (!%p2449_p9)
}
 0x487   : > { %2107 = dma.vmem_to_hbm [thread:$0]  (%p2805_p0), %s1513_s12, 32, %s1515_s19, %s2963_s27   ;;  %v1273_v39 = vmul.f32 %v1947_v10, %v1947_v10 }
 0x488   : > { %s1496_s0 = scalar_lea.hbm %s3087_s10, %s2952_s2  ;;  %s3126_s13 = scalar_lea.vmem [#allocation13], %s2909_s23 }
 0x489   : > { %s1498_s22 = sshll.u32 %s3126_s13, 4  ;;  %s1500_s26 = sshll.u32 %s1496_s0, 4  ;;  %s1499_s22 = int_to_ptr.vmem [resolvable:$true] %s1498_s22  ;;  %s1501_s26 = int_to_ptr.hbm [resolvable:$true] %s1500_s26 }
 0x48a   : > { %s1466_s8 = scalar_lea.sflag [#allocation4], %s2840_s28  ;;  %s2467_s21 = sshra.s32 %s1501_s26, 4  ;;  %s2468_s21 = int_to_ptr.hbm [resolvable:$true] %s2467_s21 }
 0x48b   : > { %s2469_s18 = scalar_lea.hbm %s2468_s21, 2  ;;  %s2473_s17 = scalar_lea.hbm %s3087_s10, 4 }
 0x48c   : > { %p2470_p10 = scmp.ne.s32.totalorder %s2468_s21, %s2469_s18  ;;  %p2474_p2 = scmp.lt.s32.totalorder %s2468_s21, %s3087_s10 }
 0x48d   : > { %p2475_p4 = scmp.lt.s32.totalorder %s2473_s17, %s2469_s18 }
 0x48e   : > { %p2471_p11 = pnand %p2470_p10, %p2805_p0 }
 0x48f   : > { %p2476_p1 = por %p2475_p4, %p2474_p2 }
 0x490   : > { %p2472_p12 = pneg %p2471_p11 }
 0x492   : > { %p2477_p3 = pnand %p2476_p1, %p2472_p12 }
 0x4c0   : > { %v1278_v11 = vpop.permute.xlu0 %1277 }
 0x4c1   : > { %v1280_v12 = vadd.f32 %v1278_v11, %v1273_v39 }
 0x4c3   : > { %v1281_v13 = vmul.f32 0.5, %v1280_v12 }
 0x4c5   : > { %1284 = vperm.xlu1 %2216, %v1281_v13  }
 0x4c6   : > { %2480 = shalt.err (!%p2477_p3)
}
 0x4c7   : > { %2106 = dma.vmem_to_hbm [thread:$0]  (%p2805_p0), %s1499_s22, 32, %s1501_s26, %s1466_s8   ;;  %v1042_v14 = vrot.slane %v2904_v27, 4  ;;  %v1049_v15 = vrot.slane %v2906_v26, 4 }
 0x4c8   : > { %s3127_s0 = sld [smem:[#allocation36_spill]]  ;;  %s591_s22 = scalar_lea.vmem [#allocation16], %s2909_s23 }
 0x4c9   : > { %v1043_v16 = vadd.f32 %v1042_v14, %v2904_v27  ;;  %v1050_v17 = vadd.f32 %v1049_v15, %v2906_v26  ;;  %s1526_s26 = sshll.u32 %s591_s22, 4  ;;  %s1527_s26 = int_to_ptr.vmem [resolvable:$true] %s1526_s26 }
 0x4cb   : > { %v1044_v19 = vrot.slane %v1043_v16, 2  ;;  %v1051_v20 = vrot.slane %v1050_v17, 2 }
 0x4cd   : > { %v1045_v21 = vadd.f32 %v1044_v19, %v1043_v16  ;;  %v1052_v22 = vadd.f32 %v1051_v20, %v1050_v17 }
 0x4ce   : > { %s1524_s13 = scalar_lea.hbm %s3127_s0, %s2952_s2  ;;  %s2501_s17 = scalar_lea.hbm %s3127_s0, 4 }
 0x4cf   : > { %v1046_v23 = vrot.slane %v1045_v21, 1  ;;  %v1053_v24 = vrot.slane %v1052_v22, 1  ;;  %s1528_s8 = sshll.u32 %s1524_s13, 4  ;;  %s1529_s8 = int_to_ptr.hbm [resolvable:$true] %s1528_s8 }
 0x4d0   : > { %s2495_s21 = sshra.s32 %s1529_s8, 4  ;;  %s2496_s21 = int_to_ptr.hbm [resolvable:$true] %s2495_s21 }
 0x4d1   : > { %v1047_v25 = vadd.f32 %v1046_v23, %v1045_v21  ;;  %v1054_v28 = vadd.f32 %v1053_v24, %v1052_v22  ;;  %s2497_s18 = scalar_lea.hbm %s2496_s21, 2  ;;  %p2502_p8 = scmp.lt.s32.totalorder %s2496_s21, %s3127_s0 }
 0x4d2   : > { %p2498_p5 = scmp.ne.s32.totalorder %s2496_s21, %s2497_s18  ;;  %p2503_p9 = scmp.lt.s32.totalorder %s2501_s17, %s2497_s18 }
 0x4d3   : > { %v1055_v29 = vmul.f32 0.0625, %v1047_v25  ;;  %v1056_v30 = vmul.f32 0.0625, %v1054_v28 }
 0x4d4   : > { %p2499_p13 = pnand %p2498_p5, %p2805_p0  ;;  %p2504_p10 = por %p2503_p9, %p2502_p8 }
 0x4d5   : > { %v1065_v27 = vsel %vm1059_vm2, %v1056_v30, %v1055_v29 }
 0x4d6   : > { %1067 = vst [vmem:[%s591_s22] sm:$0x3] %v1065_v27  ;;  %p2500_p7 = pneg %p2499_p13 }
 0x4d8   : > { %p2505_p11 = pnand %p2504_p10, %p2500_p7 }
 0x4da   : > { %2508 = shalt.err (!%p2505_p11)
}
 0x4db   : > { %2108 = dma.vmem_to_hbm [thread:$0]  (%p2805_p0), %s1527_s26, 32, %s1529_s8, %s2963_s27   ;;  %vm1288_vm2 = vcmask 1040384  }
 0x4dc   : > { %s2072_s6 = sshll.u32 %s2739_s20, 4  ;;  %s3128_s12 = sld [smem:[#allocation37_spill]] }
 0x4dd   : > { %s1554_s3 = sshll.u32 %s2890_s25, 4  ;;  %s3129_s18 = sld [smem:[#allocation38_spill]]  ;;  %s3024_s3 = int_to_ptr.vmem [resolvable:$true] %s1554_s3 }
 0x4de   : > { %s598_s28 = scalar_lea.vmem [#allocation17], %s2909_s23  ;;  %s3130_s25 = sand.u32 1, %s2739_s20  }
 0x4df   : > { %s1540_s0 = sshll.u32 %s598_s28, 4  ;;  %s1541_s0 = int_to_ptr.vmem [resolvable:$true] %s1540_s0 }
 0x4e2   : > { %s1538_s19 = scalar_lea.hbm %s3128_s12, %s2952_s2  ;;  %s3030_s2 = scalar_lea.sflag [#allocation18], %s3130_s25 }
 0x4e3   : > { %s1553_s17 = scalar_lea.hbm %s3129_s18, %s2072_s6  ;;  %s1542_s5 = sshll.u32 %s1538_s19, 4  ;;  %s1543_s5 = int_to_ptr.hbm [resolvable:$true] %s1542_s5 }
 0x4e4   : > { %s1556_s27 = sshll.u32 %s1553_s17, 4  ;;  %s2523_s23 = sshra.s32 %s1543_s5, 4  ;;  %s3026_s27 = int_to_ptr.hbm [resolvable:$true] %s1556_s27  ;;  %s2524_s23 = int_to_ptr.hbm [resolvable:$true] %s2523_s23 }
 0x4e5   : > { %s2525_s26 = scalar_lea.hbm %s2524_s23, 2  ;;  %s2529_s13 = scalar_lea.hbm %s3128_s12, 4 }
 0x4e6   : > { %p2526_p12 = scmp.ne.s32.totalorder %s2524_s23, %s2525_s26  ;;  %p2530_p1 = scmp.lt.s32.totalorder %s2524_s23, %s3128_s12 }
 0x4e7   : > { %p2531_p3 = scmp.lt.s32.totalorder %s2529_s13, %s2525_s26 }
 0x4e8   : > { %p2527_p2 = pnand %p2526_p12, %p2805_p0 }
 0x4e9   : > { %p2532_p5 = por %p2531_p3, %p2530_p1 }
 0x4ea   : > { %p2528_p4 = pneg %p2527_p2 }
 0x4ec   : > { %p2533_p13 = pnand %p2532_p5, %p2528_p4 }
 0x4f7   : > { %v1181_v31 = vpop.permute.xlu0 %1180 }
 0x537   : > { %v1285_v26 = vpop.permute.xlu1 %1284 }
 0x538   : > { %v1286_v18 = vrot.slane %v1285_v26, 7 }
 0x53a   : > { %v1289_v32 = vsel %vm1288_vm2, %v1181_v31, %v1286_v18 }
 0x53b   : > { %1290 = vst [vmem:[%s598_s28] sm:$0x3] %v1289_v32 }
 0x53c   : > { %2536 = shalt.err (!%p2533_p13)
}
 0x53d   : > { %2109 = dma.vmem_to_hbm [thread:$0]  (%p2805_p0), %s1541_s0, 32, %s1543_s5, %s3030_s2  }
 0x53e   : > { %s2551_s20 = sshra.s32 %s3026_s27, 4  ;;  %s2557_s28 = scalar_lea.hbm %s3129_s18, 32  ;;  %s2552_s20 = int_to_ptr.hbm [resolvable:$true] %s2551_s20 }
 0x53f   : > { %s2553_s4 = scalar_lea.hbm %s2552_s20, 16  ;;  %p2558_p10 = scmp.lt.s32.totalorder %s2552_s20, %s3129_s18 }
 0x540   : > { %p2554_p7 = scmp.ne.s32.totalorder %s2552_s20, %s2553_s4  ;;  %p2559_p11 = scmp.lt.s32.totalorder %s2557_s28, %s2553_s4 }
 0x542   : > { %p2555_p8 = pnand %p2554_p7, %p2805_p0  ;;  %p2560_p12 = por %p2559_p11, %p2558_p10 }
 0x544   : > { %p2556_p9 = pneg %p2555_p8 }
 0x546   : > { %p2561_p2 = pnand %p2560_p12, %p2556_p9 }
 0x548   : > { %2564 = shalt.err (!%p2561_p2)
}
 0x549   : > { %s2638_s5 = smov 64   ;;  %s2639_s0 = smov 4  }
 0x54a   : > { %2110 = dma.vmem_to_hbm [thread:$0]  (%p2805_p0), %s3024_s3, 256, %s3026_s27, %s3030_s2, %s2638_s5, %s2638_s5, %s2639_s0  }
 0x54b PF: > { %s1571_s26 = sand.u32 1, %s2611_s29   ;;  %p3131_p4 = scmp.ge.s32.totalorder %s2623_s16, 2 }
 0x54c   : > { %s1572_s8 = scalar_lea.sflag [#allocation4], %s1571_s26 }
 0x54d   : > { %p2137_p1 = pnand %p3131_p4, %p2813_p6 }
 0x54f   : > { %p2138_p3 = pneg %p2137_p1 }
 0x551   : > { %2598 = dma.done.wait (%p2138_p3), %s1572_s8, 32  }
 0x552   : > { %2600 = vsyncadd (%p2138_p3), %s1572_s8, 4294967264  ;;  %s3132_s6 = sadd.s32 4294967294, %s2623_s16  }
 0x553   : > { %s1581_s13 = sand.u32 1, %s3132_s6  }
 0x554   : > { %s1582_s22 = scalar_lea.sflag [#allocation15], %s1581_s13 }
 0x555   : > { %2602 = dma.done.wait (%p2138_p3), %s1582_s22, 64  }
 0x556   : > { %2604 = vsyncadd (%p2138_p3), %s1582_s22, 4294967232  ;;  %s1602_s14 = scalar_lea.sflag [#allocation18], %s1581_s13 }
 0x557   : > { %2606 = dma.done.wait (%p2138_p3), %s1602_s14, 288  }
 0x558   : > { %2608 = vsyncadd (%p2138_p3), %s1602_s14, 4294967008  ;;  %s3133_s3 = sld [smem:[#allocation27_spill]]  ;;  %p37_p0 = scmp.ge.s32.totalorder %s2781_s24, 4  }
 0x559   : > { %s3134_s29 = smov %s2615_s30  ;;  %s3135_s30 = smov %s2619_s15 }
 0x55a   : > { %s3137_s16 = smov %s2781_s24  ;;  %39 = sbr.rel (!%p37_p0) target bundleno = 24 (0x18), region = 189 }
 0x55e   : > { %s3136_s15 = smov %s3133_s3 }
 0x55f   :  { %1618 = vsyncpa [#allocation3], 1 }
 0x560   :  { %1620 = vsyncpa [#allocation3 + $0x1], 1 }
 0x561   :  { %1621 = vsyncpa [#allocation6], 1 }
 0x562   :  { %1622 = vsyncpa [#allocation9], 1 }
 0x563   :  { %1623 = vsyncpa [#allocation12], 1 }
 0x564   :  { %1624 = vsyncpa [#allocation4], 1 }
 0x565   :  { %1626 = vsyncpa [#allocation4 + $0x1], 1 }
 0x566   :  { %1627 = vsyncpa [#allocation15], 1 }
 0x567   :  { %1629 = vsyncpa [#allocation15 + $0x1], 1 }
 0x568   :  { %1630 = vsyncpa [#allocation18], 1 }
 0x569   :  { %1632 = vsyncpa [#allocation18 + $0x1], 1 }

// kernel: tpu_custom_call.1
= control target key start
LH: loop header
LB: loop body
LE: loop exit
PB: predicated region body
PF: predicated region fallthrough
CT: control target
= control target key end

     0   :  { %s3077_s0 = inlined_call_operand.hbm [shape: bf16[2,2,16,256], index: 0, kind: input, shape index: {}]   ;;  %s3078_s1 = inlined_call_operand.hbm [shape: bf16[16,16], index: 1, kind: input, shape index: {}]   ;;  %s3079_s2 = inlined_call_operand.hbm [shape: bf16[256,128], index: 2, kind: input, shape index: {}]   ;;  %s3080_s3 = inlined_call_operand.vmem [shape: f32[1,128], index: 3, kind: input, shape index: {}]   ;;  %s3081_s4 = inlined_call_operand.hbm [shape: bf16[128,128], index: 4, kind: input, shape index: {}]   ;;  %s3082_s5 = inlined_call_operand.vmem [shape: f32[1,128], index: 5, kind: input, shape index: {}]   ;;  %s3083_s6 = inlined_call_operand.hbm [shape: bf16[128,128], index: 6, kind: input, shape index: {}]   ;;  %s3084_s7 = inlined_call_operand.vmem [shape: f32[1,128], index: 7, kind: input, shape index: {}]   ;;  %s3085_s8 = inlined_call_operand.hbm [shape: bf16[128,128], index: 8, kind: input, shape index: {}]   ;;  %s3086_s9 = inlined_call_operand.vmem [shape: f32[1,128], index: 9, kind: input, shape index: {}]   ;;  %s3087_s10 = inlined_call_operand.hbm [shape: f32[2,2,128], index: 10, kind: output, shape index: {0}]   ;;  %s3088_s11 = inlined_call_operand.hbm [shape: f32[2,2,128], index: 11, kind: output, shape index: {1}]   ;;  %s3089_s12 = inlined_call_operand.hbm [shape: f32[2,2,128], index: 12, kind: output, shape index: {2}]   ;;  %s3090_s13 = inlined_call_operand.hbm [shape: f32[2,2,128], index: 13, kind: output, shape index: {3}]   ;;  %s3091_s14 = inlined_call_operand.hbm [shape: bf16[2,2,16,128], index: 14, kind: output, shape index: {4}]  }
   0x1   :  { %3099 = sst [smem:[#allocation28_spill]] %s3077_s0 }
   0x2   :  { %3100 = sst [smem:[#allocation29_spill]] %s3078_s1 }
   0x3   :  { %3101 = sst [smem:[#allocation30_spill]] %s3079_s2 }
   0x4   :  { %3102 = sst [smem:[#allocation31_spill]] %s3080_s3 }
   0x5   :  { %3103 = sst [smem:[#allocation32_spill]] %s3081_s4 }
   0x6   :  { %3104 = sst [smem:[#allocation33_spill]] %s3082_s5 }
   0x7   :  { %3105 = sst [smem:[#allocation34_spill]] %s3083_s6 }
   0x8   :  { %3106 = sst [smem:[#allocation35_spill]] %s3085_s8 }
   0x9   :  { %3107 = sst [smem:[#allocation36_spill]] %s3089_s12 }
   0xa   :  { %3108 = sst [smem:[#allocation37_spill]] %s3090_s13 }
   0xb   :  { %3109 = sst [smem:[#allocation38_spill]] %s3091_s14 }
   0xc   :  { %20 = vsyncpa [#allocation3], 0 }
   0xd   :  { %22 = vsyncpa [#allocation3 + $0x1], 0 }
   0xe   :  { %23 = vsyncpa [#allocation6], 0 }
   0xf   :  { %24 = vsyncpa [#allocation9], 0 }
  0x10   :  { %25 = vsyncpa [#allocation12], 0 }
  0x11   :  { %26 = vsyncpa [#allocation4], 0 }
  0x12   :  { %28 = vsyncpa [#allocation4 + $0x1], 0 }
  0x13   :  { %29 = vsyncpa [#allocation15], 0 }
  0x14   :  { %31 = vsyncpa [#allocation15 + $0x1], 0 }
  0x15   :  { %32 = vsyncpa [#allocation18], 0 }
  0x16   :  { %34 = vsyncpa [#allocation18 + $0x1], 0  ;;  %s2715_s29 = smov 0   ;;  %s2717_s30 = smov 0  }
  0x17   :  { %s2719_s15 = smov 0   ;;  %s2721_s16 = smov 0  }
  0x18 LB: > { %s3110_s1 = sld [smem:[#allocation29_spill]]  ;;  %s2739_s20 = sadd.s32 4294967295, %s2623_s16   ;;  %s2623_s16 = sphi %s2721_s16, %s3137_s16   ;;  %s2619_s15 = sphi %s2719_s15, %s3136_s15   ;;  %s2615_s30 = sphi %s2717_s30, %s3135_s30   ;;  %s2611_s29 = sphi %s2715_s29, %s3134_s29  }
  0x19   : > { %p1805_p0 = scmp.ge.s32.totalorder %s2623_s16, 1  ;;  %p61_p1 = scmp.eq.s32.totalorder %s2739_s20, 0 }
  0x1a   : > { %p390_p2 = scmp.lt.s32.totalorder %s2623_s16, 3  ;;  %s2625_s22 = smov [#allocation5]  }
  0x1b   : > { %s403_s23 = sshll.u32 %s2625_s22, 4  ;;  %s3112_s4 = sld [smem:[#allocation32_spill]]  ;;  %s404_s23 = int_to_ptr.vmem [resolvable:$true] %s403_s23 }
  0x1c   : > { %p2744_p3 = pnand %p1805_p0, %p390_p2  ;;  %s3114_s2 = sld [smem:[#allocation30_spill]] }
  0x1d   : > { %s2626_s22 = smov [#allocation8]   ;;  %s2627_s14 = smov 64  }
  0x1e   : > { %s401_s19 = sshll.u32 %s3110_s1, 4  ;;  %p2116_p4 = pneg %p2744_p3  ;;  %s402_s19 = int_to_ptr.hbm [resolvable:$true] %s401_s19 }
  0x1f   : > { %s434_s1 = sshll.u32 %s2626_s22, 4  ;;  %s2628_s13 = smov 4   ;;  %s435_s1 = int_to_ptr.vmem [resolvable:$true] %s434_s1 }
  0x20   : > { %p2756_p6 = pnand %p2116_p4, %p61_p1  ;;  %s3115_s6 = sld [smem:[#allocation34_spill]] }
  0x21   : > { %s432_s26 = sshll.u32 %s3112_s4, 4  ;;  %s2629_s12 = smov [#allocation7]   ;;  %s433_s26 = int_to_ptr.hbm [resolvable:$true] %s432_s26 }
  0x22   : > { %s415_s18 = sshll.u32 %s3114_s2, 4  ;;  %s417_s28 = sshll.u32 %s2629_s12, 4  ;;  %s416_s18 = int_to_ptr.hbm [resolvable:$true] %s415_s18  ;;  %s418_s28 = int_to_ptr.vmem [resolvable:$true] %s417_s28 }
  0x23   : > { %2119 = dma.hbm_to_vmem [thread:$0]  (!%p2756_p6), %s402_s19, 128, %s404_s23, [#allocation6], %s2627_s14, %s2627_s14, %s2628_s13  }
  0x24   : > { %2125 = dma.hbm_to_vmem [thread:$0]  (!%p2756_p6), %s433_s26, 1024, %s435_s1, [#allocation9], %s2627_s14, %s2627_s14, %s2628_s13  }
  0x25   : > { %2122 = dma.hbm_to_vmem [thread:$0]  (!%p2756_p6), %s416_s18, 2048, %s418_s28, [#allocation6], %s2627_s14, %s2627_s14, %s2628_s13  }
  0x26   : > { %s449_s4 = sshll.u32 %s3115_s6, 4  ;;  %s2630_s19 = smov [#allocation10]   ;;  %s450_s4 = int_to_ptr.hbm [resolvable:$true] %s449_s4 }
  0x27   : > { %s451_s1 = sshll.u32 %s2630_s19, 4  ;;  %s3116_s8 = sld [smem:[#allocation35_spill]]  ;;  %s452_s1 = int_to_ptr.vmem [resolvable:$true] %s451_s1 }
  0x28   : > { %2128 = dma.hbm_to_vmem [thread:$0]  (!%p2756_p6), %s450_s4, 1024, %s452_s1, [#allocation9], %s2627_s14, %s2627_s14, %s2628_s13  }
  0x29   : > { %s2631_s12 = smov [#allocation11]   ;;  %s3095_s18 = sadd.s32 4294967294, %s2623_s16  }
  0x2a   : > { %s468_s22 = sshll.u32 %s2631_s12, 4  ;;  %s2781_s24 = sadd.s32 1, %s2623_s16   ;;  %s469_s22 = int_to_ptr.vmem [resolvable:$true] %s468_s22 }
  0x2b   : > { %s47_s25 = sadd.s32 1, %s2619_s15  ;;  %s44_s28 = ssub.s32 %s2623_s16, %s2781_s24 }
  0x2c   : > { %p54_p7 = scmp.ne.s32.totalorder %s2619_s15, %s2615_s30  ;;  %p45_p8 = scmp.eq.s32.totalorder %s44_s28, 0 }
  0x2d   : > { %s466_s17 = sshll.u32 %s3116_s8, 4  ;;  %p55_p9 = scmp.eq.s32.totalorder %s2623_s16, 0  ;;  %s467_s17 = int_to_ptr.hbm [resolvable:$true] %s466_s17 }
  0x2e   : > { %2131 = dma.hbm_to_vmem [thread:$0]  (!%p2756_p6), %s467_s17, 1024, %s469_s22, [#allocation12], %s2627_s14, %s2627_s14, %s2628_s13  }
  0x2f   : > { %p60_p10 = scmp.ne.s32.totalorder %s2615_s30, %s2611_s29  ;;  %p273_p11 = scmp.eq.s32.totalorder %s2739_s20, 1 }
  0x30   : > { %s2793_s4 = scalar_select %p45_p8, %s2619_s15, %s47_s25  }
  0x31   : > { %p2795_p12 = por %p55_p9, %p54_p7  ;;  %p2801_p13 = por %p61_p1, %p60_p10 }
  0x32   : > { %3117 = sst [smem:[#allocation27_spill]] %s2793_s4  ;;  %p2805_p0 = por %p273_p11, %p54_p7 }
  0x33   : > { %p279_p2 = scmp.eq.s32.totalorder %s3095_s18, 1  ;;  %p2157_p4 = scmp.lt.s32.totalorder %s2623_s16, 2 }
  0x34   : > { %s485_s27 = sand.u32 1, %s2619_s15   ;;  %s2026_s26 = sshll.u32 %s2623_s16, 5 }
  0x35   : > { %p2813_p6 = por %p279_p2, %p60_p10  ;;  %s1812_s23 = sshll.u32 %s485_s27, 5 }
  0x36   : > { %s3122_s0 = sld [smem:[#allocation28_spill]]  ;;  %s489_s28 = scalar_lea.vmem [#allocation2], %s1812_s23 }
  0x37   : > { %s497_s2 = sshll.u32 %s489_s28, 4  ;;  %p2823_p7 = pnand %p2157_p4, %p2795_p12  ;;  %s498_s2 = int_to_ptr.vmem [resolvable:$true] %s497_s2 }
  0x38   : > { %s486_s6 = scalar_lea.sflag [#allocation3], %s485_s27 }
  0x39   : > { %p2399_p9 = pneg %p2823_p7 }
  0x3c   : > { %s494_s22 = scalar_lea.hbm %s3122_s0, %s2026_s26  ;;  %s2402_s17 = scalar_lea.hbm %s3122_s0, 64 }
  0x3d   : > { %s495_s25 = sshll.u32 %s494_s22, 4  ;;  %s496_s25 = int_to_ptr.hbm [resolvable:$true] %s495_s25 }
  0x3e   : > { %s2395_s8 = sshra.s32 %s496_s25, 4  ;;  %s2396_s8 = int_to_ptr.hbm [resolvable:$true] %s2395_s8 }
  0x3f   : > { %s2397_s4 = scalar_lea.hbm %s2396_s8, 32  ;;  %p2403_p12 = scmp.lt.s32.totalorder %s2396_s8, %s3122_s0 }
  0x40   : > { %p2398_p8 = scmp.ne.s32.totalorder %s2396_s8, %s2397_s4  ;;  %p2404_p2 = scmp.lt.s32.totalorder %s2402_s17, %s2397_s4 }
  0x42   : > { %p2400_p10 = pnand %p2399_p9, %p2398_p8  ;;  %p2405_p4 = por %p2404_p2, %p2403_p12 }
  0x44   : > { %p2401_p11 = pneg %p2400_p10 }
  0x46   : > { %p2406_p5 = pnand %p2405_p4, %p2401_p11 }
  0x48   : > { %2409 = shalt.err (!%p2406_p5)
}
  0x49   : > { %s2632_s27 = smov 128   ;;  %s2633_s22 = smov 8  }
  0x4a   : > { %2135 = dma.hbm_to_vmem [thread:$0]  (!%p2823_p7), %s496_s25, 512, %s498_s2, %s486_s6, %s2632_s27, %s2632_s27, %s2633_s22  }
  0x4b   : > { %509 = sbr.rel (%p2744_p3) target bundleno = 1355 (0x54b), region = 60  ;;  %s2840_s28 = sand.u32 (!%p2744_p3), 1, %s2615_s30  }
  0x4c   : > { %s1816_s26 = sshll.u32 (!%p2744_p3), %s2840_s28, 5  ;;  %s512_s8 = scalar_lea.sflag (!%p2744_p3), [#allocation3], %s2840_s28 }
  0x4d   : > { %s2844_s4 = scalar_lea.vmem (!%p2744_p3), [#allocation2], %s1816_s26 }
  0x50   : > { %2582 = dma.done.wait (%p2801_p13), %s512_s8, 512  }
  0x51   : > { %2584 = vsyncadd (%p2801_p13), %s512_s8, 4294966784 }
  0x52   : > { %2586 = dma.done.wait (%p61_p1), [#allocation6], 2176  }
  0x53   : > { %2588 = vsyncadd (%p61_p1), [#allocation6], 4294965120 }
  0x54   : > { %2590 = dma.done.wait (%p61_p1), [#allocation9], 2048  }
  0x55   : > { %2592 = vsyncadd (%p61_p1), [#allocation9], 4294965248 }
  0x56   : > { %2594 = dma.done.wait (%p61_p1), [#allocation12], 1024  }
  0x57   : > { %2596 = vsyncadd (%p61_p1), [#allocation12], 4294966272  ;;  %v2038_v0 = vld [vmem:[#allocation7 + $0x38] sm:$0xff]  ;;  %v2037_v2 = vld [vmem:[#allocation7 + $0x30] sm:$0xff]  ;;  %s3124_s3 = sld [smem:[#allocation31_spill]]  ;;  %v894_v59 = vlaneseq  ;;  %s1826_s13 = sshll.u32 %s2840_s28, 4 }
  0x58   : > { %v2046_v1 = vld [vmem:[#allocation7 + $0x78] sm:$0xff]  ;;  %763 = vmatpush.bf16.msra.mxu0 %v2038_v0  ;;  %v2045_v3 = vld [vmem:[#allocation7 + $0x70] sm:$0xff]  ;;  %v2036_v4 = vld [vmem:[#allocation7 + $0x28] sm:$0xff]  ;;  %s3125_s5 = sld [smem:[#allocation33_spill]]  ;;  %s2890_s25 = scalar_lea.vmem [#allocation19], %s1826_s13  ;;  %vm1076_vm11 = vcmask 130048  }
  0x59   : > { %782 = vmatpush.bf16.msra.mxu1 %v2046_v1  ;;  %v2044_v5 = vld [vmem:[#allocation7 + $0x68] sm:$0xff]  ;;  %v2035_v6 = vld [vmem:[#allocation7 + $0x20] sm:$0xff]  ;;  %v2034_v8 = vld [vmem:[#allocation7 + $0x18] sm:$0xff]  ;;  %v895_v60 = vand.u32 127, %v894_v59  ;;  %s2909_s23 = sshll.u32 %s2840_s28, 1  ;;  %s2636_s12 = smov 127  }
  0x5a   : > { %v2043_v7 = vld [vmem:[#allocation7 + $0x60] sm:$0xff]  ;;  %v2042_v9 = vld [vmem:[#allocation7 + $0x58] sm:$0xff]  ;;  %v2033_v11 = vld [vmem:[#allocation7 + $0x10] sm:$0xff]  ;;  %s584_s17 = scalar_lea.vmem [#allocation14], %s2909_s23  ;;  %s2637_s19 = smov 1  }
  0x5b   : > { %v2054_v10 = vld [vmem:[#allocation8 + $0x38] sm:$0xff]  ;;  %v2041_v12 = vld [vmem:[#allocation7 + $0x50] sm:$0xff]  ;;  %v2032_v14 = vld [vmem:[#allocation7 + $0x8] sm:$0xff]  ;;  %vm896_vm0 = vcmp.lt.s32.totalorder %v895_v60, 2  ;;  %s2952_s2 = sshll.u32 %s2739_s20, 1  ;;  %s3097_s6 = sand.u32 1, %s2739_s20  }
  0x5c   : > { %764 = vmatpush.bf16.msra.mxu0 %v2037_v2  ;;  %875 = vmatpush.bf16.msra.mxu2 %v2054_v10  ;;  %v2053_v13 = vld [vmem:[#allocation8 + $0x30] sm:$0xff]  ;;  %v2040_v15 = vld [vmem:[#allocation7 + $0x48] sm:$0xff]  ;;  %v2031_v17 = vld [vmem:[#allocation7] sm:$0xff]  ;;  %s1510_s13 = scalar_lea.hbm %s3088_s11, %s2952_s2  ;;  %s2963_s27 = scalar_lea.sflag [#allocation15], %s3097_s6 }
  0x5d   : > { %783 = vmatpush.bf16.msra.mxu1 %v2045_v3  ;;  %v2052_v16 = vld [vmem:[#allocation8 + $0x28] sm:$0xff]  ;;  %v2039_v18 = vld [vmem:[#allocation7 + $0x40] sm:$0xff]  ;;  %v1829_v19 = vld [vmem:[%s2844_s4] sm:$0xf]  ;;  %s2445_s21 = scalar_lea.hbm %s3088_s11, 4 }
  0x5e   : > { %v2028_v20 = vld [vmem:[%s2844_s4 + $0x4] sm:$0xf0]  ;;  %v2027_v21 = vld [vmem:[%s2844_s4 + $0x4] sm:$0xf]  ;;  %v1831_v22 = vld [vmem:[%s2844_s4 + $0x8] sm:$0xf0] }
  0x5f   : > { %v2051_v23 = vld [vmem:[#allocation8 + $0x20] sm:$0xff]  ;;  %v1830_v24 = vor.u32 %v2028_v20, %v1829_v19  ;;  %v1834_v25 = vor.u32 %v2027_v21, %v1831_v22  ;;  %v1837_v26 = vld [vmem:[%s2844_s4 + $0x10] sm:$0xf]  ;;  %v2030_v27 = vld [vmem:[%s2844_s4 + $0x14] sm:$0xf0] }
  0x60   : > { %765 = vmatpush.bf16.msra.mxu0 %v2036_v4  ;;  %876 = vmatpush.bf16.msra.mxu2 %v2053_v13  ;;  %v2029_v28 = vld [vmem:[%s2844_s4 + $0x14] sm:$0xf]  ;;  %v1839_v29 = vld [vmem:[%s2844_s4 + $0x18] sm:$0xf0]  ;;  %v1838_v30 = vor.u32 %v2030_v27, %v1837_v26  ;;  %v2050_v32 = vld [vmem:[#allocation8 + $0x18] sm:$0xff]  ;;  %v2634_v26 = vmov 0  }
  0x61   : > { %784 = vmatpush.bf16.msra.mxu1 %v2044_v5  ;;  %v1842_v31 = vor.u32 %v2029_v28, %v1839_v29  ;;  %v2049_v33 = vld [vmem:[#allocation8 + $0x10] sm:$0xff]  ;;  %v2048_v34 = vld [vmem:[#allocation8 + $0x8] sm:$0xff]  ;;  %v2047_v35 = vld [vmem:[#allocation8] sm:$0xff]  ;;  %2211 = vset.pattern.permute.xlu2 %v2634_v26 }
  0x62   : > { %v2217_v38 = vld [vmem:[%s3124_s3] ss:$0 sm:$0xff]  ;;  %2212 = vset.pattern.permute.xlu0 %v2634_v26  ;;  %2213 = vset.pattern.permute.xlu1 %v2634_v26 }
  0x63   : > { %v2218_v61 = vld [vmem:[%s3125_s5] ss:$0 sm:$0xff] }
  0x64   : > { %766 = vmatpush.bf16.msra.mxu0 %v2035_v6  ;;  %877 = vmatpush.bf16.msra.mxu2 %v2052_v16  ;;  %v2055_v60 = vld [vmem:[#allocation5] sm:$0xff] }
  0x65   : > { %785 = vmatpush.bf16.msra.mxu1 %v2043_v7 }
  0x68   : > { %767 = vmatpush.bf16.msra.mxu0 %v2034_v8  ;;  %878 = vmatpush.bf16.msra.mxu2 %v2051_v23 }
  0x69   : > { %786 = vmatpush.bf16.msra.mxu1 %v2042_v9 }
  0x6c   : > { %768 = vmatpush.bf16.msra.mxu0 %v2033_v11  ;;  %879 = vmatpush.bf16.msra.mxu2 %v2050_v32 }
  0x6d   : > { %787 = vmatpush.bf16.msra.mxu1 %v2041_v12 }
  0x70   : > { %769 = vmatpush.bf16.msra.mxu0 %v2032_v14  ;;  %880 = vmatpush.bf16.msra.mxu2 %v2049_v33 }
  0x71   : > { %788 = vmatpush.bf16.msra.mxu1 %v2040_v15 }
  0x74   : > { %770 = vmatpush.bf16.msra.mxu0 %v2031_v17  ;;  %881 = vmatpush.bf16.msra.mxu2 %v2048_v34 }
  0x75   : > { %789 = vmatpush.bf16.msra.mxu1 %v2039_v18 }
  0x77   : > { %771 = vmatmul.bf16.vlgmr.msra.gmra.mxu0 %v1830_v24 }
  0x78   : > { %790 = vmatmul.bf16.vlgmr.msra.gmra.mxu1 %v1834_v25  ;;  %882 = vmatpush.bf16.msra.mxu2 %v2047_v35 }
  0x87   : > { %776 = vmatmul.bf16.gmra.mxu0 %v1838_v30 }
  0x88   : > { %795 = vmatmul.bf16.gmra.mxu1 %v1842_v31 }
  0xf4   : > { %v772_v36 = vpop.f32.mrf.mxu0 }
  0xf5   : > { %v791_v37 = vpop.f32.mrf.mxu1  ;;  %v773_v39 = vadd.f32 %v2217_v38, %v772_v36 }
  0xf7   : > { %v792_v42 = vadd.f32 %v791_v37, %v773_v39 }
  0xf9   : > { %v801_v45 = vmax.f32 %v792_v42, 0.0 }
  0xfc   : > { %v774_v40 = vpop.f32.mrf.mxu0 }
  0xfd   : > { %v793_v41 = vpop.f32.mrf.mxu1  ;;  %v775_v43 = vadd.f32 %v2217_v38, %v774_v40 }
  0xff   : > { %v794_v44 = vadd.f32 %v793_v41, %v775_v43 }
 0x101   : > { %v802_v46 = vmax.f32 %v794_v44, 0.0 }
 0x103   : > { %v805_v47 = vpack.c.bf16 %v802_v46, %v801_v45 }
 0x104   : > { %v777_v48 = vpop.f32.mrf.mxu0 }
 0x105   : > { %v796_v49 = vpop.f32.mrf.mxu1  ;;  %883 = vmatmul.bf16.vlgmr.msra.gmra.mxu2 %v805_v47  ;;  %v778_v50 = vadd.f32 %v2217_v38, %v777_v48 }
 0x107   : > { %v797_v52 = vadd.f32 %v796_v49, %v778_v50 }
 0x109   : > { %v803_v56 = vmax.f32 %v797_v52, 0.0 }
 0x10c   : > { %v779_v51 = vpop.f32.mrf.mxu0 }
 0x10d   : > { %v780_v53 = vadd.f32 %v2217_v38, %v779_v51  ;;  %v798_v54 = vpop.f32.mrf.mxu1 }
 0x10f   : > { %v799_v55 = vadd.f32 %v798_v54, %v780_v53 }
 0x111   : > { %v804_v57 = vmax.f32 %v799_v55, 0.0 }
 0x113   : > { %v806_v58 = vpack.c.bf16 %v804_v57, %v803_v56 }
 0x115   : > { %888 = vmatmul.bf16.gmra.mxu2 %v806_v58 }
 0x188   : > { %v884_v62 = vpop.f32.mrf.mxu2 }
 0x189   : > { %v885_v63 = vadd.f32 %v2218_v61, %v884_v62 }
 0x18b   : > { %v897_v0 = vsel %vm896_vm0, %v885_v63, -1e+30 }
 0x18c   : > { %901 = vmax.xlane.f32.xlu0 %v897_v0 }
 0x190   : > { %v886_v1 = vpop.f32.mrf.mxu2 }
 0x191   : > { %v887_v2 = vadd.f32 %v2218_v61, %v886_v1 }
 0x193   : > { %v898_v3 = vsel %vm896_vm0, %v887_v2, -1e+30 }
 0x194   : > { %903 = vmax.xlane.f32.xlu0 %v898_v3 }
 0x198   : > { %v889_v4 = vpop.f32.mrf.mxu2 }
 0x199   : > { %v890_v5 = vadd.f32 %v2218_v61, %v889_v4 }
 0x19b   : > { %v899_v6 = vsel %vm896_vm0, %v890_v5, -1e+30 }
 0x19c   : > { %905 = vmax.xlane.f32.xlu1 %v899_v6 }
 0x1a0   : > { %v891_v7 = vpop.f32.mrf.mxu2 }
 0x1a1   : > { %v892_v8 = vadd.f32 %v2218_v61, %v891_v7 }
 0x1a3   : > { %v900_v9 = vsel %vm896_vm0, %v892_v8, -1e+30 }
 0x1a4   : > { %907 = vmax.xlane.f32.xlu1 %v900_v9 }
 0x1ff   : > { %v902_v10 = vpop.xlane.xlu0 %901 }
 0x200   : > { %v909_v11 = vsub.f32 %v897_v0, %v902_v10 }
 0x202   : > { %v913_v12 = vmul.f32 1.442695, %v909_v11 }
 0x204   : > { %2221 = vpow2.f32 %v913_v12 }
 0x207   : > { %v904_v13 = vpop.xlane.xlu0 %903 }
 0x208   : > { %v910_v14 = vsub.f32 %v898_v3, %v904_v13  ;;  %v2635_v13 = vmov 1  }
 0x20a   : > { %v2222_v15 = vpop.eup %2221  ;;  %v915_v16 = vmul.f32 1.442695, %v910_v14 }
 0x20b   : > { %921 = vadd.xlane.f32.xlu2 %v2222_v15 }
 0x20c   : > { %2223 = vpow2.f32 %v915_v16  ;;  %v2062_v16 = vld [vmem:[#allocation10 + $0x30] sm:$0xff] }
 0x20f   : > { %v906_v17 = vpop.xlane.xlu1 %905 }
 0x210   : > { %v911_v18 = vsub.f32 %v899_v6, %v906_v17  ;;  %v2061_v17 = vld [vmem:[#allocation10 + $0x28] sm:$0xff] }
 0x212   : > { %v2224_v19 = vpop.eup %2223  ;;  %v917_v20 = vmul.f32 1.442695, %v911_v18  ;;  %v607_v18 = vld [vmem:[%s2844_s4] sm:$0xf] }
 0x213   : > { %923 = vadd.xlane.f32.xlu2 %v2224_v19 }
 0x214   : > { %2225 = vpow2.f32 %v917_v20  ;;  %v610_v20 = vld [vmem:[%s2844_s4 + $0x18] sm:$0xf] }
 0x217   : > { %v908_v21 = vpop.xlane.xlu1 %907 }
 0x218   : > { %v912_v22 = vsub.f32 %v900_v9, %v908_v21  ;;  %v609_v21 = vld [vmem:[%s2844_s4 + $0x10] sm:$0xf] }
 0x21a   : > { %v2876_v23 = vpop.eup %2225  ;;  %v919_v24 = vmul.f32 1.442695, %v912_v22  ;;  %v2060_v22 = vld [vmem:[#allocation10 + $0x20] sm:$0xff] }
 0x21b   : > { %925 = vadd.xlane.f32.xlu0 %v2876_v23 }
 0x21c   : > { %2227 = vpow2.f32 %v919_v24 }
 0x222   : > { %v2879_v25 = vpop.eup %2227 }
 0x223   : > { %927 = vadd.xlane.f32.xlu1 %v2879_v25 }
 0x27e   : > { %v922_v27 = vpop.xlane.xlu2 %921 }
 0x27f   : > { %2229 = vrcp.f32 %v922_v27  ;;  %v940_v32 = vand.u32 2147483648, %v922_v27  ;;  %v938_v34 = vand.u32 2147483647, %v922_v27  ;;  %vm934_vm2 = vweird.f32 %v922_v27 }
 0x281   : > { %v941_v37 = vor.u32 1.1754944e-38, %v940_v32  ;;  %vm939_vm4 = vcmp.eq.f32.partialorder %v938_v34, 8.507059e+37 }
 0x285   : > { %v2230_v28 = vpop.eup %2229 }
 0x286   : > { %v930_v29 = vmul.f32 %v2230_v28, %v922_v27  ;;  %v924_v30 = vpop.xlane.xlu2 %923  ;;  %vm935_vm1 = vweird.f32 %v2230_v28 }
 0x287   : > { %2231 = vrcp.f32 %v924_v30  ;;  %vm936_vm3 = vmor %vm934_vm2, %vm935_vm1  ;;  %v955_v44 = vand.u32 2147483648, %v924_v30  ;;  %v953_v46 = vand.u32 2147483647, %v924_v30  ;;  %vm949_vm6 = vweird.f32 %v924_v30 }
 0x288   : > { %v931_v31 = vsub.f32 1.0, %v930_v29  ;;  %v2059_v29 = vld [vmem:[#allocation10 + $0x18] sm:$0xff]  ;;  %vm1059_vm2 = vcmask 1041409  }
 0x289   : > { %v956_v49 = vor.u32 1.1754944e-38, %v955_v44  ;;  %vm954_vm8 = vcmp.eq.f32.partialorder %v953_v46, 8.507059e+37 }
 0x28a   : > { %v932_v33 = vmul.f32 %v2230_v28, %v931_v31  ;;  %v2057_v31 = vld [vmem:[#allocation10 + $0x8] sm:$0xff] }
 0x28c   : > { %v933_v35 = vadd.f32 %v2230_v28, %v932_v33  ;;  %v2056_v33 = vld [vmem:[#allocation10] sm:$0xff] }
 0x28d   : > { %v2232_v36 = vpop.eup %2231 }
 0x28e   : > { %v945_v38 = vmul.f32 %v2232_v36, %v924_v30  ;;  %v926_v39 = vpop.xlane.xlu0 %925  ;;  %v937_v40 = vsel %vm936_vm3, %v2230_v28, %v933_v35  ;;  %vm950_vm5 = vweird.f32 %v2232_v36  ;;  %v999_v28 = vunpack.c.l.bf16 %v609_v21  ;;  %v2058_v30 = vld [vmem:[#allocation10 + $0x10] sm:$0xff] }
 0x28f   : > { %2233 = vrcp.f32 %v926_v39  ;;  %v942_v41 = vsel %vm939_vm4, %v941_v37, %v937_v40  ;;  %vm951_vm7 = vmor %vm949_vm6, %vm950_vm5  ;;  %v970_v56 = vand.u32 2147483648, %v926_v39  ;;  %v968_v59 = vand.u32 2147483647, %v926_v39 }
 0x290   : > { %v946_v42 = vsub.f32 1.0, %v945_v38  ;;  %v2885_v43 = vmul.f32 %v2222_v15, %v942_v41  ;;  %vm964_vm10 = vweird.f32 %v926_v39  ;;  %v2063_v15 = vld [vmem:[#allocation10 + $0x38] sm:$0xff] }
 0x291   : > { %v971_v63 = vor.u32 1.1754944e-38, %v970_v56  ;;  %vm969_vm13 = vcmp.eq.f32.partialorder %v968_v59, 8.507059e+37 }
 0x292   : > { %v947_v45 = vmul.f32 %v2232_v36, %v946_v42  ;;  %1003 = vperm.xlu2 %2211, %v2885_v43  }
 0x294   : > { %v948_v47 = vadd.f32 %v2232_v36, %v947_v45 }
 0x295   : > { %v2234_v48 = vpop.eup %2233 }
 0x296   : > { %v960_v50 = vmul.f32 %v2234_v48, %v926_v39  ;;  %v928_v51 = vpop.xlane.xlu1 %927  ;;  %v952_v52 = vsel %vm951_vm7, %v2232_v36, %v948_v47  ;;  %vm965_vm9 = vweird.f32 %v2234_v48 }
 0x297   : > { %2235 = vrcp.f32 %v928_v51  ;;  %v957_v53 = vsel %vm954_vm8, %v956_v49, %v952_v52  ;;  %vm966_vm12 = vmor %vm964_vm10, %vm965_vm9  ;;  %v985_v5 = vand.u32 2147483648, %v928_v51  ;;  %v983_v7 = vand.u32 2147483647, %v928_v51 }
 0x298   : > { %v961_v54 = vsub.f32 1.0, %v960_v50  ;;  %v958_v55 = vmul.f32 %v2224_v19, %v957_v53  ;;  %vm979_vm15 = vweird.f32 %v928_v51  ;;  %v608_v19 = vld [vmem:[%s2844_s4 + $0x8] sm:$0xf]  ;;  %s3096_s4 = scalar_lea.vmem [#allocation13], %s2909_s23 }
 0x299   : > { %v986_v9 = vor.u32 1.1754944e-38, %v985_v5  ;;  %vm984_vm1 = vcmp.eq.f32.partialorder %v983_v7, 8.507059e+37  ;;  %v998_v24 = vunpack.c.l.bf16 %v608_v19 }
 0x29a   : > { %v962_v57 = vmul.f32 %v2234_v48, %v961_v54  ;;  %1008 = vperm.xlu0 %2212, %v958_v55   ;;  %v2076_v58 = vpack.c.bf16 %v958_v55, %v2885_v43 }
 0x29c   : > { %2077 = vst [vmem:[%s2890_s25] sm:$0xff] %v2076_v58   ;;  %1087 = vmatpush.bf16.msra.mxu3 %v2076_v58  ;;  %v963_v61 = vadd.f32 %v2234_v48, %v962_v57 }
 0x29d   : > { %v2236_v62 = vpop.eup %2235 }
 0x29e   : > { %v975_v0 = vmul.f32 %v2236_v62, %v928_v51  ;;  %v967_v1 = vsel %vm966_vm12, %v2234_v48, %v963_v61  ;;  %vm980_vm14 = vweird.f32 %v2236_v62 }
 0x29f   : > { %1943 = vmatmul.msk.bf16.vlgmr.msra.gmra.mxu3 %vm1076_vm11, %v2055_v60  ;;  %v972_v2 = vsel %vm969_vm13, %v971_v63, %v967_v1  ;;  %vm981_vm0 = vmor %vm979_vm15, %vm980_vm14 }
 0x2a0   : > { %v976_v3 = vsub.f32 1.0, %v975_v0  ;;  %v973_v4 = vmul.f32 %v2876_v23, %v972_v2  ;;  %v997_v23 = vunpack.c.l.bf16 %v607_v18 }
 0x2a2   : > { %v977_v6 = vmul.f32 %v2236_v62, %v976_v3  ;;  %1013 = vperm.xlu1 %2213, %v973_v4   ;;  %v2904_v27 = vadd.f32 %v998_v24, %v997_v23 }
 0x2a4   : > { %v978_v8 = vadd.f32 %v2236_v62, %v977_v6 }
 0x2a6   : > { %v982_v10 = vsel %vm981_vm0, %v2236_v62, %v978_v8 }
 0x2a7   : > { %v987_v11 = vsel %vm984_vm1, %v986_v9, %v982_v10 }
 0x2a8   : > { %v988_v12 = vmul.f32 %v2879_v25, %v987_v11  ;;  %v1000_v25 = vunpack.c.l.bf16 %v610_v20 }
 0x2aa   : > { %1018 = vperm.xlu2 %2211, %v988_v12   ;;  %2215 = vset.pattern.permute.xlu1 %v2635_v13  ;;  %v2081_v14 = vpack.c.bf16 %v988_v12, %v973_v4 }
 0x2ab   : > { %1212 = vperm.xlu1 %2215, %v988_v12  }
 0x2ac   : > { %2083 = vst [vmem:[%s2890_s25 + $0x8] sm:$0xff] %v2081_v14   ;;  %1191 = vmatpush.bf16.msrb.mxu3 %v2081_v14 }
 0x2af   : > { %1946 = vmatmul.msk.bf16.vlgmr.msrb.gmra.mxu3 %vm1076_vm11, %v2055_v60 }
 0x2b0   : > { %1368 = vmatpush.bf16.msra.mxu3 %v2063_v15 }
 0x2b2   : > { %2214 = vset.pattern.permute.xlu2 %v2635_v13 }
 0x2b3   : > { %1208 = vperm.xlu2 %2214, %v973_v4   ;;  %1108 = vperm.xlu1 %2215, %v958_v55  }
 0x2b4   : > { %1369 = vmatpush.bf16.msra.mxu3 %v2062_v16 }
 0x2b8   : > { %1370 = vmatpush.bf16.msra.mxu3 %v2061_v17 }
 0x2bb   : > { %1104 = vperm.xlu2 %2214, %v2885_v43   ;;  %2216 = vset.pattern.permute.xlu1 %v2634_v26  ;;  %v2906_v26 = vadd.f32 %v1000_v25, %v999_v28 }
 0x2bc   : > { %1371 = vmatpush.bf16.msra.mxu3 %v2060_v22 }
 0x2c0   : > { %1372 = vmatpush.bf16.msra.mxu3 %v2059_v29 }
 0x2c4   : > { %1373 = vmatpush.bf16.msra.mxu3 %v2058_v30 }
 0x2c8   : > { %1374 = vmatpush.bf16.msra.mxu3 %v2057_v31 }
 0x2cc   : > { %1375 = vmatpush.bf16.msra.mxu3 %v2056_v33 }
 0x2ec   : > { %v1004_v32 = vpop.permute.xlu2 %1003 }
 0x2ed   : > { %v1021_v35 = vmul.f32 %v1004_v32, %v997_v23 }
 0x304   : > { %v1019_v39 = vpop.permute.xlu2 %1018 }
 0x305   : > { %v1024_v42 = vmul.f32 %v1019_v39, %v1000_v25 }
 0x30c   : > { %v1009_v34 = vpop.permute.xlu0 %1008 }
 0x30d   : > { %v1022_v36 = vmul.f32 %v1009_v34, %v998_v24  ;;  %v1209_v52 = vpop.permute.xlu2 %1208 }
 0x30f   : > { %v1025_v37 = vadd.f32 %v1022_v36, %v1021_v35 }
 0x311   : > { %v1026_v38 = vrot.slane %v1025_v37, 4 }
 0x313   : > { %v1027_v40 = vadd.f32 %v1026_v38, %v1025_v37 }
 0x314   : > { %v1014_v41 = vpop.permute.xlu1 %1013 }
 0x315   : > { %v1028_v43 = vrot.slane %v1027_v40, 2  ;;  %v1023_v44 = vmul.f32 %v1014_v41, %v999_v28  ;;  %v1105_v0 = vpop.permute.xlu2 %1104 }
 0x317   : > { %v1029_v45 = vadd.f32 %v1028_v43, %v1027_v40  ;;  %v1032_v46 = vadd.f32 %v1024_v42, %v1023_v44  ;;  %v2071_v43 = vld [vmem:[#allocation11 + $0x38] sm:$0xff]  ;;  %v2070_v44 = vld [vmem:[#allocation11 + $0x30] sm:$0xff] }
 0x318   : > { %1451 = vmatpush.bf16.msrb.mxu0 %v2071_v43 }
 0x319   : > { %v1030_v47 = vrot.slane %v1029_v45, 1  ;;  %v1033_v48 = vrot.slane %v1032_v46, 4 }
 0x31b   : > { %v1034_v49 = vadd.f32 %v1033_v48, %v1032_v46  ;;  %v1031_v50 = vadd.f32 %v1030_v47, %v1029_v45  ;;  %v2069_v45 = vld [vmem:[#allocation11 + $0x28] sm:$0xff]  ;;  %v2068_v46 = vld [vmem:[#allocation11 + $0x20] sm:$0xff]  ;;  %v2067_v47 = vld [vmem:[#allocation11 + $0x18] sm:$0xff] }
 0x31c   : > { %1452 = vmatpush.bf16.msrb.mxu0 %v2070_v44  ;;  %v2066_v48 = vld [vmem:[#allocation11 + $0x10] sm:$0xff] }
 0x31d   : > { %v1035_v51 = vrot.slane %v1034_v49, 2  ;;  %v1213_v54 = vpop.permute.xlu1 %1212  ;;  %v1039_v55 = vmul.f32 0.0625, %v1031_v50  ;;  %v2064_v50 = vld [vmem:[#allocation11] sm:$0xff] }
 0x31f   : > { %v1036_v53 = vadd.f32 %v1035_v51, %v1034_v49  ;;  %v1291_v60 = vpack.c.bf16 %v1039_v55, %v1039_v55  ;;  %v2065_v49 = vld [vmem:[#allocation11 + $0x8] sm:$0xff] }
 0x320   : > { %1453 = vmatpush.bf16.msrb.mxu0 %v2069_v45 }
 0x321   : > { %v1037_v56 = vrot.slane %v1036_v53, 1  ;;  %v1315_v1 = vunpack.c.l.b16 %v1291_v60 }
 0x322   : > { %v1089_v57 = vpop.f32.mrf.mxu3 }
 0x323   : > { %v1038_v58 = vadd.f32 %v1037_v56, %v1036_v53  ;;  %v1094_v59 = vmul.f32 %v1089_v57, %v1004_v32  ;;  %v1111_v5 = vmul.f32 %v1105_v0, %v1089_v57 }
 0x324   : > { %1454 = vmatpush.bf16.msrb.mxu0 %v2068_v46 }
 0x325   : > { %v1040_v61 = vmul.f32 0.0625, %v1038_v58  ;;  %v1109_v3 = vpop.permute.xlu1 %1108 }
 0x327   : > { %v1292_v62 = vpack.c.bf16 %v1040_v61, %v1040_v61  ;;  %v1060_v63 = vsel %vm1059_vm2, %v1040_v61, %v1039_v55 }
 0x328   : > { %1062 = vst [vmem:[%s584_s17] sm:$0x3] %v1060_v63  ;;  %1455 = vmatpush.bf16.msrb.mxu0 %v2067_v47 }
 0x329   : > { %v1316_v2 = vunpack.c.l.b16 %v1292_v62 }
 0x32a   : > { %v1091_v4 = vpop.f32.mrf.mxu3 }
 0x32b   : > { %v1095_v6 = vmul.f32 %v1091_v4, %v1009_v34  ;;  %v1112_v7 = vmul.f32 %v1109_v3, %v1091_v4  ;;  %v1317_v8 = vsel %vm1059_vm2, %v1316_v2, %v1315_v1 }
 0x32c   : > { %v1318_v9 = vpack.c.b16 %v1317_v8, %v1317_v8  ;;  %1456 = vmatpush.bf16.msrb.mxu0 %v2066_v48 }
 0x32d   : > { %v1096_v10 = vadd.f32 %v1095_v6, %v1094_v59  ;;  %v1113_v11 = vadd.f32 %v1112_v7, %v1111_v5 }
 0x32e   : > { %1376 = vmatmul.bf16.vlgmr.msra.gmra.mxu3 %v1318_v9 }
 0x32f   : > { %v1114_v12 = vrot.slane %v1113_v11, 4  ;;  %v1097_v56 = vrot.slane %v1096_v10, 4 }
 0x330   : > { %1457 = vmatpush.bf16.msrb.mxu0 %v2065_v49 }
 0x331   : > { %v1115_v13 = vadd.f32 %v1114_v12, %v1113_v11  ;;  %v1098_v59 = vadd.f32 %v1097_v56, %v1096_v10 }
 0x332   : > { %v1193_v14 = vpop.f32.mrf.mxu3 }
 0x333   : > { %v1116_v15 = vrot.slane %v1115_v13, 2  ;;  %v1198_v19 = vmul.f32 %v1193_v14, %v1014_v41  ;;  %v1215_v21 = vmul.f32 %v1209_v52, %v1193_v14  ;;  %v1099_v62 = vrot.slane %v1098_v59, 2 }
 0x334   : > { %1458 = vmatpush.bf16.msrb.mxu0 %v2064_v50 }
 0x335   : > { %v1117_v16 = vadd.f32 %v1116_v15, %v1115_v13  ;;  %v1100_v63 = vadd.f32 %v1099_v62, %v1098_v59 }
 0x337   : > { %v1118_v17 = vrot.slane %v1117_v16, 1  ;;  %v1101_v3 = vrot.slane %v1100_v63, 1 }
 0x339   : > { %v2916_v18 = vadd.f32 %v1118_v17, %v1117_v16  ;;  %v2933_v4 = vadd.f32 %v1101_v3, %v1100_v63 }
 0x33a   : > { %v1195_v20 = vpop.f32.mrf.mxu3 }
 0x33b   : > { %v1199_v22 = vmul.f32 %v1195_v20, %v1019_v39  ;;  %v1216_v23 = vmul.f32 %v1213_v54, %v1195_v20  ;;  %v1127_v24 = vand.u32 2147483647, %v2916_v18  ;;  %v2219_v54 = vld [vmem:[%s3084_s7] ss:$0 sm:$0xff]  ;;  %v1120_v5 = vand.u32 2147483647, %v2933_v4 }
 0x33d   : > { %v1200_v25 = vadd.f32 %v1199_v22, %v1198_v19  ;;  %v1217_v28 = vadd.f32 %v1216_v23, %v1215_v21  ;;  %1129 = vrot.lane.b32.xlu2 %v1127_v24, %s2636_s12  ;;  %v2220_v21 = vld [vmem:[%s3086_s9] ss:$0 sm:$0xff] }
 0x33f   : > { %v1201_v29 = vrot.slane %v1200_v25, 4  ;;  %v1218_v30 = vrot.slane %v1217_v28, 4 }
 0x341   : > { %v1202_v31 = vadd.f32 %v1201_v29, %v1200_v25  ;;  %v1219_v32 = vadd.f32 %v1218_v30, %v1217_v28 }
 0x343   : > { %v1203_v33 = vrot.slane %v1202_v31, 2  ;;  %v1220_v34 = vrot.slane %v1219_v32, 2 }
 0x345   : > { %v1204_v35 = vadd.f32 %v1203_v33, %v1202_v31  ;;  %v1221_v36 = vadd.f32 %v1220_v34, %v1219_v32 }
 0x347   : > { %v1222_v37 = vrot.slane %v1221_v36, 1  ;;  %v1205_v38 = vrot.slane %v1204_v35, 1 }
 0x349   : > { %v2920_v40 = vadd.f32 %v1222_v37, %v1221_v36  ;;  %v2922_v39 = vadd.f32 %v1205_v38, %v1204_v35 }
 0x34b   : > { %v1231_v41 = vand.u32 2147483647, %v2920_v40  ;;  %v1224_v42 = vand.u32 2147483647, %v2922_v39 }
 0x34d   : > { %1233 = vrot.lane.b32.xlu0 %v1231_v41, %s2636_s12  ;;  %1226 = vrot.lane.b32.xlu2 %v1224_v42, %s2636_s12 }
 0x397   : > { %v1130_v51 = vpop.permute.xlu2 %1129 }
 0x398   : > { %v1132_v52 = vadd.f32 %v1130_v51, %v1127_v24 }
 0x39a   : > { %v1133_v53 = vmax.f32 %v1132_v52, 1e-05 }
 0x39c   : > { %1150 = vrot.lane.b32.xlu0 %v1133_v53, %s2637_s19 }
 0x3a7   : > { %v1227_v56 = vpop.permute.xlu2 %1226 }
 0x3a8   : > { %v1229_v62 = vadd.f32 %v1227_v56, %v1224_v42 }
 0x3aa   : > { %v1230_v63 = vmax.f32 %v1229_v62, 1e-05 }
 0x3ac   : > { %vm1243_vm0 = vweird.f32 %v1230_v63 }
 0x3b1   : > { %v1377_v55 = vpop.f32.mrf.mxu3 }
 0x3b2   : > { %v1378_v57 = vadd.f32 %v2219_v54, %v1377_v55 }
 0x3b4   : > { %v1381_v58 = vmax.f32 %v1378_v57, 0.0 }
 0x3b6   : > { %v1382_v60 = vpack.c.bf16 %v1381_v58, %v1381_v58 }
 0x3b8   : > { %1459 = vmatmul.bf16.vlgmr.msrb.gmra.mxu0 %v1382_v60 }
 0x3b9   : > { %v1379_v61 = vpop.f32.mrf.mxu3 }
 0x3bf   : > { %v1234_v0 = vpop.permute.xlu0 %1233 }
 0x3c0   : > { %v1236_v1 = vadd.f32 %v1234_v0, %v1231_v41 }
 0x3c2   : > { %v1237_v2 = vmax.f32 %v1236_v1, 1e-05 }
 0x3c4   : > { %1254 = vrot.lane.b32.xlu1 %v1237_v2, %s2637_s19  ;;  %s1514_s19 = sshll.u32 %s1510_s13, 4  ;;  %s1515_s19 = int_to_ptr.hbm [resolvable:$true] %s1514_s19 }
 0x3c5   : > { %s2439_s22 = sshra.s32 %s1515_s19, 4  ;;  %s2440_s22 = int_to_ptr.hbm [resolvable:$true] %s2439_s22 }
 0x3c6   : > { %s2441_s26 = scalar_lea.hbm %s2440_s22, 2  ;;  %p2446_p13 = scmp.lt.s32.totalorder %s2440_s22, %s3088_s11 }
 0x3c7   : > { %p2442_p1 = scmp.ne.s32.totalorder %s2440_s22, %s2441_s26  ;;  %p2447_p7 = scmp.lt.s32.totalorder %s2445_s21, %s2441_s26 }
 0x3c9   : > { %p2443_p3 = pnand %p2442_p1, %p2805_p0  ;;  %p2448_p8 = por %p2447_p7, %p2446_p13 }
 0x3cb   : > { %p2444_p5 = pneg %p2443_p3 }
 0x3cc   : > { %1122 = vrot.lane.b32.xlu1 %v1120_v5, %s2636_s12 }
 0x3cd   : > { %p2449_p9 = pnand %p2448_p8, %p2444_p5 }
 0x40e   : > { %v1151_v6 = vpop.permute.xlu0 %1150 }
 0x40f   : > { %2237 = vrcp.f32 %v1151_v6  ;;  %v1164_v10 = vand.u32 2147483648, %v1151_v6  ;;  %v1162_v12 = vand.u32 2147483647, %v1151_v6  ;;  %vm1158_vm4 = vweird.f32 %v1151_v6 }
 0x411   : > { %v1165_v14 = vor.u32 1.1754944e-38, %v1164_v10  ;;  %vm1163_vm6 = vcmp.eq.f32.partialorder %v1162_v12, 8.507059e+37 }
 0x415   : > { %v2238_v7 = vpop.eup %2237 }
 0x416   : > { %v1154_v8 = vmul.f32 %v2238_v7, %v1151_v6  ;;  %vm1159_vm3 = vweird.f32 %v2238_v7  ;;  %v1247_v6 = vand.u32 2147483647, %v1230_v63 }
 0x417   : > { %vm1160_vm5 = vmor %vm1158_vm4, %vm1159_vm3 }
 0x418   : > { %v1155_v9 = vsub.f32 1.0, %v1154_v8  ;;  %vm1248_vm3 = vcmp.eq.f32.partialorder %v1247_v6, 8.507059e+37 }
 0x41a   : > { %v1156_v11 = vmul.f32 %v2238_v7, %v1155_v9 }
 0x41c   : > { %v1157_v13 = vadd.f32 %v2238_v7, %v1156_v11 }
 0x41e   : > { %v1161_v15 = vsel %vm1160_vm5, %v2238_v7, %v1157_v13 }
 0x41f   : > { %v1166_v16 = vsel %vm1163_vm6, %v1165_v14, %v1161_v15 }
 0x420   : > { %v1167_v17 = vmul.f32 %v1166_v16, %v2916_v18 }
 0x422   : > { %v1945_v19 = vadd.f32 -1.0, %v1167_v17 }
 0x424   : > { %v1171_v20 = vmul.f32 %v1945_v19, %v1945_v19 }
 0x426   : > { %1173 = vrot.lane.b32.xlu2 %v1171_v20, %s2636_s12 }
 0x435   : > { %v1460_v22 = vpop.f32.mrf.mxu0 }
 0x436   : > { %v1461_v23 = vadd.f32 %v2220_v21, %v1460_v22  ;;  %v1255_v24 = vpop.permute.xlu1 %1254 }
 0x437   : > { %2239 = vrcp.f32 %v1255_v24  ;;  %v1268_v18 = vand.u32 2147483648, %v1255_v24  ;;  %v1266_v32 = vand.u32 2147483647, %v1255_v24  ;;  %vm1262_vm8 = vweird.f32 %v1255_v24 }
 0x438   : > { %1464 = vst [vmem:[%s3096_s4] sm:$0x3] %v1461_v23 }
 0x439   : > { %v1269_v34 = vor.u32 1.1754944e-38, %v1268_v18  ;;  %vm1267_vm10 = vcmp.eq.f32.partialorder %v1266_v32, 8.507059e+37 }
 0x43d   : > { %v2240_v25 = vpop.eup %2239  ;;  %v1462_v28 = vpop.f32.mrf.mxu0 }
 0x43e   : > { %v1258_v29 = vmul.f32 %v2240_v25, %v1255_v24  ;;  %vm1263_vm7 = vweird.f32 %v2240_v25  ;;  %v1123_v43 = vpop.permute.xlu1 %1122 }
 0x43f   : > { %vm1264_vm9 = vmor %vm1262_vm8, %vm1263_vm7  ;;  %v1125_v44 = vadd.f32 %v1123_v43, %v1120_v5  ;;  %v1249_v5 = vand.u32 2147483648, %v1230_v63 }
 0x440   : > { %v1259_v30 = vsub.f32 1.0, %v1258_v29 }
 0x441   : > { %v1126_v45 = vmax.f32 %v1125_v44, 1e-05  ;;  %v1250_v8 = vor.u32 1.1754944e-38, %v1249_v5 }
 0x442   : > { %v1260_v31 = vmul.f32 %v2240_v25, %v1259_v30 }
 0x443   : > { %2241 = vrcp.f32 %v1126_v45  ;;  %v1145_v51 = vand.u32 2147483648, %v1126_v45  ;;  %vm1139_vm12 = vweird.f32 %v1126_v45  ;;  %v1143_v52 = vand.u32 2147483647, %v1126_v45 }
 0x444   : > { %v1261_v33 = vadd.f32 %v2240_v25, %v1260_v31  ;;  %2243 = vrcp.f32 %v1230_v63 }
 0x445   : > { %vm1144_vm14 = vcmp.eq.f32.partialorder %v1143_v52, 8.507059e+37 }
 0x446   : > { %v1265_v35 = vsel %vm1264_vm9, %v2240_v25, %v1261_v33 }
 0x447   : > { %v1270_v36 = vsel %vm1267_vm10, %v1269_v34, %v1265_v35 }
 0x448   : > { %v1271_v37 = vmul.f32 %v1270_v36, %v2920_v40  ;;  %v1146_v40 = vor.u32 1.1754944e-38, %v1145_v51 }
 0x449   : > { %v2242_v46 = vpop.eup %2241 }
 0x44a   : > { %v1948_v38 = vadd.f32 -1.0, %v1271_v37  ;;  %v1135_v47 = vmul.f32 %v2242_v46, %v1126_v45  ;;  %vm1140_vm11 = vweird.f32 %v2242_v46  ;;  %v2244_v0 = vpop.eup %2243 }
 0x44b   : > { %vm1141_vm13 = vmor %vm1139_vm12, %vm1140_vm11  ;;  %v1239_v1 = vmul.f32 %v2244_v0, %v1230_v63  ;;  %vm1244_vm15 = vweird.f32 %v2244_v0 }
 0x44c   : > { %v1275_v41 = vmul.f32 %v1948_v38, %v1948_v38  ;;  %v1136_v48 = vsub.f32 1.0, %v1135_v47  ;;  %vm1245_vm1 = vmor %vm1243_vm0, %vm1244_vm15 }
 0x44d   : > { %v1240_v2 = vsub.f32 1.0, %v1239_v1 }
 0x44e   : > { %1277 = vrot.lane.b32.xlu0 %v1275_v41, %s2636_s12  ;;  %v1137_v49 = vmul.f32 %v2242_v46, %v1136_v48  ;;  %s1512_s12 = sshll.u32 %s584_s17, 4  ;;  %s1513_s12 = int_to_ptr.vmem [resolvable:$true] %s1512_s12 }
 0x44f   : > { %v1241_v3 = vmul.f32 %v2244_v0, %v1240_v2 }
 0x450   : > { %v1138_v50 = vadd.f32 %v2242_v46, %v1137_v49 }
 0x452   : > { %v1142_v53 = vsel %vm1141_vm13, %v2242_v46, %v1138_v50 }
 0x453   : > { %v1147_v54 = vsel %vm1144_vm14, %v1146_v40, %v1142_v53 }
 0x454   : > { %v1148_v55 = vmul.f32 %v1147_v54, %v2933_v4  ;;  %v1242_v4 = vadd.f32 %v2244_v0, %v1241_v3 }
 0x456   : > { %v1944_v57 = vadd.f32 -1.0, %v1148_v55  ;;  %v1246_v7 = vsel %vm1245_vm1, %v2244_v0, %v1242_v4 }
 0x457   : > { %v1251_v42 = vsel %vm1248_vm3, %v1250_v8, %v1246_v7 }
 0x458   : > { %v1169_v58 = vmul.f32 %v1944_v57, %v1944_v57  ;;  %v1252_v9 = vmul.f32 %v1251_v42, %v2922_v39 }
 0x45a   : > { %v1947_v10 = vadd.f32 -1.0, %v1252_v9 }
 0x480   : > { %v1174_v59 = vpop.permute.xlu2 %1173 }
 0x481   : > { %v1176_v60 = vadd.f32 %v1174_v59, %v1169_v58 }
 0x483   : > { %v1177_v61 = vmul.f32 0.5, %v1176_v60 }
 0x485   : > { %1180 = vperm.xlu0 %2212, %v1177_v61  }
 0x486   : > { %2452 = shalt.err (!%p2449_p9)
}
 0x487   : > { %2107 = dma.vmem_to_hbm [thread:$0]  (%p2805_p0), %s1513_s12, 32, %s1515_s19, %s2963_s27   ;;  %v1273_v39 = vmul.f32 %v1947_v10, %v1947_v10 }
 0x488   : > { %s1496_s0 = scalar_lea.hbm %s3087_s10, %s2952_s2  ;;  %s3126_s13 = scalar_lea.vmem [#allocation13], %s2909_s23 }
 0x489   : > { %s1498_s22 = sshll.u32 %s3126_s13, 4  ;;  %s1500_s26 = sshll.u32 %s1496_s0, 4  ;;  %s1499_s22 = int_to_ptr.vmem [resolvable:$true] %s1498_s22  ;;  %s1501_s26 = int_to_ptr.hbm [resolvable:$true] %s1500_s26 }
 0x48a   : > { %s1466_s8 = scalar_lea.sflag [#allocation4], %s2840_s28  ;;  %s2467_s21 = sshra.s32 %s1501_s26, 4  ;;  %s2468_s21 = int_to_ptr.hbm [resolvable:$true] %s2467_s21 }
 0x48b   : > { %s2469_s18 = scalar_lea.hbm %s2468_s21, 2  ;;  %s2473_s17 = scalar_lea.hbm %s3087_s10, 4 }
 0x48c   : > { %p2470_p10 = scmp.ne.s32.totalorder %s2468_s21, %s2469_s18  ;;  %p2474_p2 = scmp.lt.s32.totalorder %s2468_s21, %s3087_s10 }
 0x48d   : > { %p2475_p4 = scmp.lt.s32.totalorder %s2473_s17, %s2469_s18 }
 0x48e   : > { %p2471_p11 = pnand %p2470_p10, %p2805_p0 }
 0x48f   : > { %p2476_p1 = por %p2475_p4, %p2474_p2 }
 0x490   : > { %p2472_p12 = pneg %p2471_p11 }
 0x492   : > { %p2477_p3 = pnand %p2476_p1, %p2472_p12 }
 0x4c0   : > { %v1278_v11 = vpop.permute.xlu0 %1277 }
 0x4c1   : > { %v1280_v12 = vadd.f32 %v1278_v11, %v1273_v39 }
 0x4c3   : > { %v1281_v13 = vmul.f32 0.5, %v1280_v12 }
 0x4c5   : > { %1284 = vperm.xlu1 %2216, %v1281_v13  }
 0x4c6   : > { %2480 = shalt.err (!%p2477_p3)
}
 0x4c7   : > { %2106 = dma.vmem_to_hbm [thread:$0]  (%p2805_p0), %s1499_s22, 32, %s1501_s26, %s1466_s8   ;;  %v1042_v14 = vrot.slane %v2904_v27, 4  ;;  %v1049_v15 = vrot.slane %v2906_v26, 4 }
 0x4c8   : > { %s3127_s0 = sld [smem:[#allocation36_spill]]  ;;  %s591_s22 = scalar_lea.vmem [#allocation16], %s2909_s23 }
 0x4c9   : > { %v1043_v16 = vadd.f32 %v1042_v14, %v2904_v27  ;;  %v1050_v17 = vadd.f32 %v1049_v15, %v2906_v26  ;;  %s1526_s26 = sshll.u32 %s591_s22, 4  ;;  %s1527_s26 = int_to_ptr.vmem [resolvable:$true] %s1526_s26 }
 0x4cb   : > { %v1044_v19 = vrot.slane %v1043_v16, 2  ;;  %v1051_v20 = vrot.slane %v1050_v17, 2 }
 0x4cd   : > { %v1045_v21 = vadd.f32 %v1044_v19, %v1043_v16  ;;  %v1052_v22 = vadd.f32 %v1051_v20, %v1050_v17 }
 0x4ce   : > { %s1524_s13 = scalar_lea.hbm %s3127_s0, %s2952_s2  ;;  %s2501_s17 = scalar_lea.hbm %s3127_s0, 4 }
 0x4cf   : > { %v1046_v23 = vrot.slane %v1045_v21, 1  ;;  %v1053_v24 = vrot.slane %v1052_v22, 1  ;;  %s1528_s8 = sshll.u32 %s1524_s13, 4  ;;  %s1529_s8 = int_to_ptr.hbm [resolvable:$true] %s1528_s8 }
 0x4d0   : > { %s2495_s21 = sshra.s32 %s1529_s8, 4  ;;  %s2496_s21 = int_to_ptr.hbm [resolvable:$true] %s2495_s21 }
 0x4d1   : > { %v1047_v25 = vadd.f32 %v1046_v23, %v1045_v21  ;;  %v1054_v28 = vadd.f32 %v1053_v24, %v1052_v22  ;;  %s2497_s18 = scalar_lea.hbm %s2496_s21, 2  ;;  %p2502_p8 = scmp.lt.s32.totalorder %s2496_s21, %s3127_s0 }
 0x4d2   : > { %p2498_p5 = scmp.ne.s32.totalorder %s2496_s21, %s2497_s18  ;;  %p2503_p9 = scmp.lt.s32.totalorder %s2501_s17, %s2497_s18 }
 0x4d3   : > { %v1055_v29 = vmul.f32 0.0625, %v1047_v25  ;;  %v1056_v30 = vmul.f32 0.0625, %v1054_v28 }
 0x4d4   : > { %p2499_p13 = pnand %p2498_p5, %p2805_p0  ;;  %p2504_p10 = por %p2503_p9, %p2502_p8 }
 0x4d5   : > { %v1065_v27 = vsel %vm1059_vm2, %v1056_v30, %v1055_v29 }
 0x4d6   : > { %1067 = vst [vmem:[%s591_s22] sm:$0x3] %v1065_v27  ;;  %p2500_p7 = pneg %p2499_p13 }
 0x4d8   : > { %p2505_p11 = pnand %p2504_p10, %p2500_p7 }
 0x4da   : > { %2508 = shalt.err (!%p2505_p11)
}
 0x4db   : > { %2108 = dma.vmem_to_hbm [thread:$0]  (%p2805_p0), %s1527_s26, 32, %s1529_s8, %s2963_s27   ;;  %vm1288_vm2 = vcmask 1040384  }
 0x4dc   : > { %s2072_s6 = sshll.u32 %s2739_s20, 4  ;;  %s3128_s12 = sld [smem:[#allocation37_spill]] }
 0x4dd   : > { %s1554_s3 = sshll.u32 %s2890_s25, 4  ;;  %s3129_s18 = sld [smem:[#allocation38_spill]]  ;;  %s3024_s3 = int_to_ptr.vmem [resolvable:$true] %s1554_s3 }
 0x4de   : > { %s598_s28 = scalar_lea.vmem [#allocation17], %s2909_s23  ;;  %s3130_s25 = sand.u32 1, %s2739_s20  }
 0x4df   : > { %s1540_s0 = sshll.u32 %s598_s28, 4  ;;  %s1541_s0 = int_to_ptr.vmem [resolvable:$true] %s1540_s0 }
 0x4e2   : > { %s1538_s19 = scalar_lea.hbm %s3128_s12, %s2952_s2  ;;  %s3030_s2 = scalar_lea.sflag [#allocation18], %s3130_s25 }
 0x4e3   : > { %s1553_s17 = scalar_lea.hbm %s3129_s18, %s2072_s6  ;;  %s1542_s5 = sshll.u32 %s1538_s19, 4  ;;  %s1543_s5 = int_to_ptr.hbm [resolvable:$true] %s1542_s5 }
 0x4e4   : > { %s1556_s27 = sshll.u32 %s1553_s17, 4  ;;  %s2523_s23 = sshra.s32 %s1543_s5, 4  ;;  %s3026_s27 = int_to_ptr.hbm [resolvable:$true] %s1556_s27  ;;  %s2524_s23 = int_to_ptr.hbm [resolvable:$true] %s2523_s23 }
 0x4e5   : > { %s2525_s26 = scalar_lea.hbm %s2524_s23, 2  ;;  %s2529_s13 = scalar_lea.hbm %s3128_s12, 4 }
 0x4e6   : > { %p2526_p12 = scmp.ne.s32.totalorder %s2524_s23, %s2525_s26  ;;  %p2530_p1 = scmp.lt.s32.totalorder %s2524_s23, %s3128_s12 }
 0x4e7   : > { %p2531_p3 = scmp.lt.s32.totalorder %s2529_s13, %s2525_s26 }
 0x4e8   : > { %p2527_p2 = pnand %p2526_p12, %p2805_p0 }
 0x4e9   : > { %p2532_p5 = por %p2531_p3, %p2530_p1 }
 0x4ea   : > { %p2528_p4 = pneg %p2527_p2 }
 0x4ec   : > { %p2533_p13 = pnand %p2532_p5, %p2528_p4 }
 0x4f7   : > { %v1181_v31 = vpop.permute.xlu0 %1180 }
 0x537   : > { %v1285_v26 = vpop.permute.xlu1 %1284 }
 0x538   : > { %v1286_v18 = vrot.slane %v1285_v26, 7 }
 0x53a   : > { %v1289_v32 = vsel %vm1288_vm2, %v1181_v31, %v1286_v18 }
 0x53b   : > { %1290 = vst [vmem:[%s598_s28] sm:$0x3] %v1289_v32 }
 0x53c   : > { %2536 = shalt.err (!%p2533_p13)
}
 0x53d   : > { %2109 = dma.vmem_to_hbm [thread:$0]  (%p2805_p0), %s1541_s0, 32, %s1543_s5, %s3030_s2  }
 0x53e   : > { %s2551_s20 = sshra.s32 %s3026_s27, 4  ;;  %s2557_s28 = scalar_lea.hbm %s3129_s18, 32  ;;  %s2552_s20 = int_to_ptr.hbm [resolvable:$true] %s2551_s20 }
 0x53f   : > { %s2553_s4 = scalar_lea.hbm %s2552_s20, 16  ;;  %p2558_p10 = scmp.lt.s32.totalorder %s2552_s20, %s3129_s18 }
 0x540   : > { %p2554_p7 = scmp.ne.s32.totalorder %s2552_s20, %s2553_s4  ;;  %p2559_p11 = scmp.lt.s32.totalorder %s2557_s28, %s2553_s4 }
 0x542   : > { %p2555_p8 = pnand %p2554_p7, %p2805_p0  ;;  %p2560_p12 = por %p2559_p11, %p2558_p10 }
 0x544   : > { %p2556_p9 = pneg %p2555_p8 }
 0x546   : > { %p2561_p2 = pnand %p2560_p12, %p2556_p9 }
 0x548   : > { %2564 = shalt.err (!%p2561_p2)
}
 0x549   : > { %s2638_s5 = smov 64   ;;  %s2639_s0 = smov 4  }
 0x54a   : > { %2110 = dma.vmem_to_hbm [thread:$0]  (%p2805_p0), %s3024_s3, 256, %s3026_s27, %s3030_s2, %s2638_s5, %s2638_s5, %s2639_s0  }
 0x54b PF: > { %s1571_s26 = sand.u32 1, %s2611_s29   ;;  %p3131_p4 = scmp.ge.s32.totalorder %s2623_s16, 2 }
 0x54c   : > { %s1572_s8 = scalar_lea.sflag [#allocation4], %s1571_s26 }
 0x54d   : > { %p2137_p1 = pnand %p3131_p4, %p2813_p6 }
 0x54f   : > { %p2138_p3 = pneg %p2137_p1 }
 0x551   : > { %2598 = dma.done.wait (%p2138_p3), %s1572_s8, 32  }
 0x552   : > { %2600 = vsyncadd (%p2138_p3), %s1572_s8, 4294967264  ;;  %s3132_s6 = sadd.s32 4294967294, %s2623_s16  }
 0x553   : > { %s1581_s13 = sand.u32 1, %s3132_s6  }
 0x554   : > { %s1582_s22 = scalar_lea.sflag [#allocation15], %s1581_s13 }
 0x555   : > { %2602 = dma.done.wait (%p2138_p3), %s1582_s22, 64  }
 0x556   : > { %2604 = vsyncadd (%p2138_p3), %s1582_s22, 4294967232  ;;  %s1602_s14 = scalar_lea.sflag [#allocation18], %s1581_s13 }
 0x557   : > { %2606 = dma.done.wait (%p2138_p3), %s1602_s14, 288  }
 0x558   : > { %2608 = vsyncadd (%p2138_p3), %s1602_s14, 4294967008  ;;  %s3133_s3 = sld [smem:[#allocation27_spill]]  ;;  %p37_p0 = scmp.ge.s32.totalorder %s2781_s24, 4  }
 0x559   : > { %s3134_s29 = smov %s2615_s30  ;;  %s3135_s30 = smov %s2619_s15 }
 0x55a   : > { %s3137_s16 = smov %s2781_s24  ;;  %39 = sbr.rel (!%p37_p0) target bundleno = 24 (0x18), region = 189 }
 0x55e   : > { %s3136_s15 = smov %s3133_s3 }
 0x55f   :  { %1618 = vsyncpa [#allocation3], 1 }
 0x560   :  { %1620 = vsyncpa [#allocation3 + $0x1], 1 }
 0x561   :  { %1621 = vsyncpa [#allocation6], 1 }
 0x562   :  { %1622 = vsyncpa [#allocation9], 1 }
 0x563   :  { %1623 = vsyncpa [#allocation12], 1 }
 0x564   :  { %1624 = vsyncpa [#allocation4], 1 }
 0x565   :  { %1626 = vsyncpa [#allocation4 + $0x1], 1 }
 0x566   :  { %1627 = vsyncpa [#allocation15], 1 }
 0x567   :  { %1629 = vsyncpa [#allocation15 + $0x1], 1 }
 0x568   :  { %1630 = vsyncpa [#allocation18], 1 }
 0x569   :  { %1632 = vsyncpa [#allocation18 + $0x1], 1 }

</bundles_post_ra>
